<compile_context>
chip_gen: v6e
topology: v6e:2x2x1
jax: 0.10.0
libtpu: 0.0.40
codegen_flags: <defaults>
</compile_context>

<pallas_src>
import functools
import math

import jax
import jax.numpy as jnp
from jax.experimental import pallas as pl
from jax.experimental.pallas import tpu as pltpu

LEAK = 0.2
EPS = 1e-5
GROUPS = 8
_HI = jax.lax.Precision.HIGHEST


def _leaky(x):
    return jnp.where(x > 0, x, LEAK * x)


def _pick_block(n, cap=4):
    """Largest divisor of n (<= cap) that keeps the grid length >= 2."""
    best = 1
    for d in range(1, min(n, cap) + 1):
        if n % d == 0 and n // d >= 2:
            best = d
    return best


def _padded_bytes(shape, dtype):
    """VMEM footprint of one buffer, padded to the (8,128) tile grid."""
    itemsize = jnp.dtype(dtype).itemsize
    sub = 8 * (4 // itemsize)                      # f32 -> 8 sublanes, bf16 -> 16
    lead = 1
    for s in shape[:-2]:
        lead *= s
    r = shape[-2] if len(shape) >= 2 else 1
    c = shape[-1]
    r = -(-r // sub) * sub
    c = -(-c // 128) * 128
    return lead * r * c * itemsize


def _resblock_kernel(*refs, hout, wout, cin, cout, stride, has_skip, bsz):
    """One block of `bsz` samples per grid step.

    Flat layout: row index q = y*(wout+2) + x for y in [0,hout), x in [0,wout+2);
    the two x >= wout columns of every row are junk (masked out of the GroupNorm
    statistics and zeroed before feeding conv2); the wrapper strips them.
    """
    wrow = wout + 2
    q = hout * wrow
    head = wrow + 1
    p2pad = (hout + 3) * wrow
    tail = p2pad - head - q
    cg = cout // GROUPS
    inv_count = 1.0 / float(hout * wout * cg)

    (src_ref, mask_ref, w1_ref, b1_ref, g1_ref, be1_ref,
     w2_ref, b2_ref, g2_ref, be2_ref, mg_ref, mgt_ref) = refs[:12]
    idx = 12
    wsk_ref = bsk_ref = xs_ref = None
    if has_skip:
        wsk_ref, bsk_ref = refs[idx], refs[idx + 1]
        idx += 2
        if stride > 1:
            xs_ref = refs[idx]
            idx += 1
    o_ref, hpad_ref = refs[idx], refs[idx + 1]

    mask = mask_ref[...]        # (q, 1): 1.0 on valid pixels, 0.0 on junk columns
    mg = mg_ref[...]            # (cout, GROUPS) channel -> group membership
    mgt = mgt_ref[...]          # (GROUPS, cout)
    b1, g1, be1 = b1_ref[...], g1_ref[...], be1_ref[...]
    b2, g2, be2 = b2_ref[...], g2_ref[...], be2_ref[...]

    def group_norm(hval, gamma, beta):
        # Masked moments -> 2 tiny group dots -> folded per-channel affine.
        hm = hval * mask
        s = jnp.concatenate(
            [jnp.sum(hm, axis=0, keepdims=True),
             jnp.sum(hm * hval, axis=0, keepdims=True)], axis=0)           # (2, cout)
        g = jnp.dot(s, mg, preferred_element_type=jnp.float32) * inv_count  # (2, G)
        gmean = g[0:1, :]
        # E[x^2]-E[x]^2 form; clamp guards the (small) cancellation risk.
        gvar = jnp.maximum(g[1:2, :] - gmean * gmean, 0.0)
        grstd = jax.lax.rsqrt(gvar + EPS)
        c = jnp.dot(jnp.concatenate([gmean, grstd], axis=0), mgt,
                    preferred_element_type=jnp.float32)                     # (2, cout)
        scale = c[1:2, :] * gamma
        shift = beta - c[0:1, :] * scale
        return hval * scale + shift

    def conv3x3(tap, w_ref):
        # 9 per-tap dots accumulated in f32: no im2col scratch, no lane-misaligned
        # column copies; each tap is a plain sublane-offset slice of a ref.
        acc = None
        for t in range(9):
            off = (t // 3) * wrow + (t % 3)
            d = jnp.dot(tap(off), w_ref[t], preferred_element_type=jnp.float32)
            acc = d if acc is None else acc + d
        return acc

    for b in range(bsz):                       # static unroll over samples in block
        # ---- conv1: 3x3 stride s ----
        if stride == 1:
            h1 = conv3x3(lambda off: src_ref[b, off:off + q, :], w1_ref) + b1
        else:
            # compact pre-built im2col (q, 9*cin): one fused dot
            h1 = jnp.dot(src_ref[b], w1_ref[...],
                         preferred_element_type=jnp.float32) + b1
        h1 = _leaky(group_norm(h1, g1, be1))

        # ---- zero-padded conv2 input (bf16 scratch) ----
        # Border rows are re-zeroed every step: under a "parallel" grid split the
        # second core never runs program_id==0, so a one-time init is unsafe.
        hpad_ref[b, 0:head, :] = jnp.zeros((head, cout), jnp.bfloat16)
        hpad_ref[b, head + q:p2pad, :] = jnp.zeros((tail, cout), jnp.bfloat16)
        hpad_ref[b, head:head + q, :] = (h1 * mask).astype(jnp.bfloat16)

        # ---- conv2: 3x3 stride 1 ----
        h2 = conv3x3(lambda off: hpad_ref[b, off:off + q, :], w2_ref) + b2
        h2 = group_norm(h2, g2, be2)

        # ---- skip / identity path ----
        if has_skip:
            sk = src_ref[b, head:head + q, :] if stride == 1 else xs_ref[b]
            identity = jnp.dot(sk, wsk_ref[...],
                               preferred_element_type=jnp.float32) + bsk_ref[...]
        else:
            # bf16 residual (source is shipped in bf16); see tolerance note.
            identity = src_ref[b, head:head + q, :].astype(jnp.float32)

        o_ref[b] = _leaky(h2 + identity).astype(o_ref.dtype)


def resblock_forward(x_nchw, params, stride, *, out_dtype=jnp.float32, block_n=None):
    """Pallas ResBlockDiscriminator.forward. x_nchw: (N, Cin, H, W) -> (N, Cout, Ho, Wo)."""
    n, cin, h, w = x_nchw.shape
    cout = params["w1"].shape[0]
    assert cout % GROUPS == 0
    has_skip = (stride != 1) or (cin != cout)
    hout = (h - 1) // stride + 1
    wout = (w - 1) // stride + 1
    wrow = wout + 2
    q = hout * wrow
    p2pad = (hout + 3) * wrow

    bsz = block_n if block_n is not None else _pick_block(n)
    assert n % bsz == 0
    grid = (n // bsz,)

    # NCHW -> NHWC (channels on lanes)
    x = jnp.transpose(x_nchw, (0, 2, 3, 1)).astype(jnp.float32)

    # conv1 source (bf16: halves HBM->VMEM traffic; conv operands are bf16 anyway)
    if stride == 1:
        xpad = jnp.pad(x, ((0, 0), (1, 2), (1, 1), (0, 0)))        # (n, h+3, w+2, cin)
        src = xpad.reshape(n, (h + 3) * (w + 2), cin).astype(jnp.bfloat16)
        # torch OIHW -> (9, cin, cout): per-tap weight slabs
        w1k = jnp.transpose(params["w1"], (2, 3, 1, 0)).reshape(9, cin, cout).astype(jnp.bfloat16)
    else:
        # compact im2col for the strided conv (layout glue only; ~9/s^2 of input, bf16)
        xpad = jnp.pad(x, ((0, 0), (1, 1), (1, 1), (0, 0)))
        taps = [xpad[:, dy:dy + stride * (hout - 1) + 1:stride,
                        dx:dx + stride * (wout - 1) + 1:stride, :]
                for dy in range(3) for dx in range(3)]
        col = jnp.concatenate(taps, axis=-1)                        # (n, hout, wout, 9*cin)
        col = jnp.pad(col, ((0, 0), (0, 0), (0, 2), (0, 0)))        # width-extend (junk cols)
        src = col.reshape(n, q, 9 * cin).astype(jnp.bfloat16)
        w1k = jnp.transpose(params["w1"], (2, 3, 1, 0)).reshape(9 * cin, cout).astype(jnp.bfloat16)

    w2k = jnp.transpose(params["w2"], (2, 3, 1, 0)).reshape(9, cout, cout).astype(jnp.bfloat16)

    # valid-pixel row mask for the extended flat layout
    lane = jnp.arange(q, dtype=jnp.int32) % wrow
    mask = (lane < wout).astype(jnp.float32).reshape(q, 1)

    # GroupNorm channel<->group membership matrices (hoisted out of the kernel)
    cg = cout // GROUPS
    gidx = jnp.arange(cout, dtype=jnp.int32) // cg
    mg = (gidx[:, None] == jnp.arange(GROUPS, dtype=jnp.int32)[None, :]).astype(jnp.float32)
    mgt = jnp.transpose(mg)

    row = lambda v: v.reshape(1, cout).astype(jnp.float32)

    def const_spec(a):
        nd = a.ndim
        return pl.BlockSpec(a.shape, lambda i, _nd=nd: (0,) * _nd)

    inputs = [src, mask, w1k, row(params["b1"]), row(params["g1"]), row(params["be1"]),
              w2k, row(params["b2"]), row(params["g2"]), row(params["be2"]), mg, mgt]
    in_specs = [pl.BlockSpec((bsz,) + src.shape[1:], lambda i: (i, 0, 0))]
    in_specs += [const_spec(a) for a in inputs[1:]]

    if has_skip:
        wskk = jnp.transpose(params["wsk"][:, :, 0, 0]).astype(jnp.bfloat16)   # (cin, cout)
        bskk = params["bsk"].reshape(1, cout).astype(jnp.float32)
        inputs += [wskk, bskk]
        in_specs += [const_spec(wskk), const_spec(bskk)]
        if stride > 1:
            xs = x[:, ::stride, ::stride, :]                                   # skip-conv input
            xs = jnp.pad(xs, ((0, 0), (0, 0), (0, 2), (0, 0)))
            xs = xs.reshape(n, q, cin).astype(jnp.bfloat16)
            inputs += [xs]
            in_specs += [pl.BlockSpec((bsz, q, cin), lambda i: (i, 0, 0))]

    # explicit VMEM budget (double-buffered blocks + single-buffered scratch)
    est = 2 * _padded_bytes((bsz,) + src.shape[1:], src.dtype)
    est += 2 * _padded_bytes((bsz, q, cout), out_dtype)
    for a in inputs[1:]:
        if a.ndim == 3 and a.shape[0] == n:        # per-sample (xs)
            est += 2 * _padded_bytes((bsz,) + a.shape[1:], a.dtype)
        else:                                      # constants
            est += 2 * _padded_bytes(a.shape, a.dtype)
    est += _padded_bytes((bsz, p2pad, cout), jnp.bfloat16)
    vmem_limit = int(min(32 << 20, max(16 << 20, 2 * est + (4 << 20))))

    kernel = functools.partial(_resblock_kernel, hout=hout, wout=wout, cin=cin,
                               cout=cout, stride=stride, has_skip=has_skip, bsz=bsz)
    out_ext = pl.pallas_call(
        kernel,
        out_shape=jax.ShapeDtypeStruct((n, q, cout), out_dtype),
        grid_spec=pltpu.PrefetchScalarGridSpec(
            num_scalar_prefetch=0,
            grid=grid,
            in_specs=in_specs,
            out_specs=pl.BlockSpec((bsz, q, cout), lambda i: (i, 0, 0)),
            scratch_shapes=[
                pltpu.VMEM((bsz, p2pad, cout), jnp.bfloat16),   # zero-padded conv2 input
            ],
        ),
        compiler_params=pltpu.CompilerParams(
            dimension_semantics=("parallel",),
            vmem_limit_bytes=vmem_limit),
    )(*inputs)

    # strip the 2 junk columns per row, back to NCHW
    out = out_ext.reshape(n, hout, wrow, cout)[:, :, :wout, :]
    return jnp.transpose(out, (0, 3, 1, 2))


# ---------------- pure-JAX reference (for self-check) ----------------
def _conv2d_ref(x, w, b, stride, pad):
    y = jax.lax.conv_general_dilated(
        x, w, window_strides=(stride, stride), padding=[(pad, pad), (pad, pad)],
        dimension_numbers=("NCHW", "OIHW", "NCHW"), precision=_HI)
    return y + b[None, :, None, None]


def _group_norm_ref(x, gamma, beta, groups):
    n, c, h, w = x.shape
    xg = x.reshape(n, groups, c // groups, h, w)
    mean = xg.mean(axis=(2, 3, 4), keepdims=True)
    var = ((xg - mean) ** 2).mean(axis=(2, 3, 4), keepdims=True)
    xn = ((xg - mean) / jnp.sqrt(var + EPS)).reshape(n, c, h, w)
    return xn * gamma[None, :, None, None] + beta[None, :, None, None]


def resblock_ref(x, params, stride):
    cin, cout = x.shape[1], params["w1"].shape[0]
    has_skip = (stride != 1) or (cin != cout)
    identity = _conv2d_ref(x, params["wsk"], params["bsk"], stride, 0) if has_skip else x
    h = _conv2d_ref(x, params["w1"], params["b1"], stride, 1)
    h = _leaky(_group_norm_ref(h, params["g1"], params["be1"], GROUPS))
    h = _conv2d_ref(h, params["w2"], params["b2"], 1, 1)
    h = _group_norm_ref(h, params["g2"], params["be2"], GROUPS)
    return _leaky(h + identity)


def init_params(key, cin, cout, has_skip):
    ks = jax.random.split(key, 10)
    s1 = 1.0 / math.sqrt(cin * 9.0)
    s2 = 1.0 / math.sqrt(cout * 9.0)
    params = {
        "w1": jax.random.normal(ks[0], (cout, cin, 3, 3), jnp.float32) * s1,
        "b1": jax.random.normal(ks[1], (cout,), jnp.float32) * 0.1,
        "w2": jax.random.normal(ks[2], (cout, cout, 3, 3), jnp.float32) * s2,
        "b2": jax.random.normal(ks[3], (cout,), jnp.float32) * 0.1,
        "g1": 1.0 + 0.1 * jax.random.normal(ks[4], (cout,), jnp.float32),
        "be1": 0.1 * jax.random.normal(ks[5], (cout,), jnp.float32),
        "g2": 1.0 + 0.1 * jax.random.normal(ks[6], (cout,), jnp.float32),
        "be2": 0.1 * jax.random.normal(ks[7], (cout,), jnp.float32),
    }
    if has_skip:
        params["wsk"] = jax.random.normal(ks[8], (cout, cin, 1, 1), jnp.float32) / math.sqrt(cin)
        params["bsk"] = jax.random.normal(ks[9], (cout,), jnp.float32) * 0.1
    return params


if __name__ == "__main__":
    key = jax.random.PRNGKey(0)
    configs = [
        # (N, Cin, Cout, H, W, stride) — exercise all module branches + batching
        (4, 16, 32, 16, 16, 2),   # downsampling block: 1x1 stride-2 skip conv (bsz=2)
        (4, 32, 32, 16, 16, 1),   # plain residual: identity skip (bsz=2)
        (2, 16, 32, 16, 16, 1),   # stride 1 but channel change: 1x1 skip conv (bsz=1)
    ]
    for idx, (n, cin, cout, h, w, stride) in enumerate(configs):
        kx, kp = jax.random.split(jax.random.fold_in(key, idx))
        x = jax.random.normal(kx, (n, cin, h, w), jnp.float32)   # NCHW, like PyTorch
        has_skip = (stride != 1) or (cin != cout)
        params = init_params(kp, cin, cout, has_skip)

        y = jax.block_until_ready(resblock_forward(x, params, stride))
        y_ref = resblock_ref(x, params, stride)
        assert y.shape == y_ref.shape, (y.shape, y_ref.shape)
        err = float(jnp.max(jnp.abs(y - y_ref)))
        # error budget: bf16 conv/skip operands (f32 accumulation), bf16 residual
        # source on the identity path, default-precision GroupNorm statistic dots.
        assert err < 1e-1, f"config {idx}: max abs error {err}"
    print("KERNEL_OK")
</pallas_src>

<mosaic_0001>
module attributes {stable_mosaic.version = 11 : i64} {
  func.func @_resblock_kernel(%arg0: i32, %arg1: memref<2x80x144xbf16, #tpu.memory_space<vmem>>, %arg2: memref<80x1xf32, #tpu.memory_space<vmem>>, %arg3: memref<144x32xbf16, #tpu.memory_space<vmem>>, %arg4: memref<1x32xf32, #tpu.memory_space<vmem>>, %arg5: memref<1x32xf32, #tpu.memory_space<vmem>>, %arg6: memref<1x32xf32, #tpu.memory_space<vmem>>, %arg7: memref<9x32x32xbf16, #tpu.memory_space<vmem>>, %arg8: memref<1x32xf32, #tpu.memory_space<vmem>>, %arg9: memref<1x32xf32, #tpu.memory_space<vmem>>, %arg10: memref<1x32xf32, #tpu.memory_space<vmem>>, %arg11: memref<32x8xf32, #tpu.memory_space<vmem>>, %arg12: memref<8x32xf32, #tpu.memory_space<vmem>>, %arg13: memref<16x32xbf16, #tpu.memory_space<vmem>>, %arg14: memref<1x32xf32, #tpu.memory_space<vmem>>, %arg15: memref<2x80x16xbf16, #tpu.memory_space<vmem>>, %arg16: memref<2x80x32xf32, #tpu.memory_space<vmem>>, %arg17: memref<2x110x32xbf16, #tpu.memory_space<vmem>>) attributes {dimension_semantics = [#tpu.dimension_semantics<parallel>], iteration_bounds = array<i64: 2>, scalar_prefetch = 0 : i64, scratch_operands = 1 : i64, tpu.core_type = #tpu.core_type<tc>, window_params = [{transform_indices = @transform_0, window_bounds = array<i64: 2, 80, 144>}, {pipeline_mode = #tpu.pipeline_mode<synchronous>, transform_indices = @transform_1, window_bounds = array<i64: 80, 1>}, {pipeline_mode = #tpu.pipeline_mode<synchronous>, transform_indices = @transform_2, window_bounds = array<i64: 144, 32>}, {pipeline_mode = #tpu.pipeline_mode<synchronous>, transform_indices = @transform_3, window_bounds = array<i64: 1, 32>}, {pipeline_mode = #tpu.pipeline_mode<synchronous>, transform_indices = @transform_4, window_bounds = array<i64: 1, 32>}, {pipeline_mode = #tpu.pipeline_mode<synchronous>, transform_indices = @transform_5, window_bounds = array<i64: 1, 32>}, {pipeline_mode = #tpu.pipeline_mode<synchronous>, transform_indices = @transform_6, window_bounds = array<i64: 9, 32, 32>}, {pipeline_mode = #tpu.pipeline_mode<synchronous>, transform_indices = @transform_7, window_bounds = array<i64: 1, 32>}, {pipeline_mode = #tpu.pipeline_mode<synchronous>, transform_indices = @transform_8, window_bounds = array<i64: 1, 32>}, {pipeline_mode = #tpu.pipeline_mode<synchronous>, transform_indices = @transform_9, window_bounds = array<i64: 1, 32>}, {pipeline_mode = #tpu.pipeline_mode<synchronous>, transform_indices = @transform_10, window_bounds = array<i64: 32, 8>}, {pipeline_mode = #tpu.pipeline_mode<synchronous>, transform_indices = @transform_11, window_bounds = array<i64: 8, 32>}, {pipeline_mode = #tpu.pipeline_mode<synchronous>, transform_indices = @transform_12, window_bounds = array<i64: 16, 32>}, {pipeline_mode = #tpu.pipeline_mode<synchronous>, transform_indices = @transform_13, window_bounds = array<i64: 1, 32>}, {transform_indices = @transform_14, window_bounds = array<i64: 2, 80, 16>}, {transform_indices = @transform_15, window_bounds = array<i64: 2, 80, 32>}]} {
    %c0 = arith.constant 0 : index
    %c0_0 = arith.constant 0 : index
    %0 = vector.load %arg2[%c0, %c0_0] : memref<80x1xf32, #tpu.memory_space<vmem>>, vector<80x1xf32>
    %c0_1 = arith.constant 0 : index
    %c0_2 = arith.constant 0 : index
    %1 = vector.load %arg11[%c0_1, %c0_2] : memref<32x8xf32, #tpu.memory_space<vmem>>, vector<32x8xf32>
    %c0_3 = arith.constant 0 : index
    %c0_4 = arith.constant 0 : index
    %2 = vector.load %arg12[%c0_3, %c0_4] : memref<8x32xf32, #tpu.memory_space<vmem>>, vector<8x32xf32>
    %c0_5 = arith.constant 0 : index
    %c0_6 = arith.constant 0 : index
    %3 = vector.load %arg4[%c0_5, %c0_6] : memref<1x32xf32, #tpu.memory_space<vmem>>, vector<1x32xf32>
    %c0_7 = arith.constant 0 : index
    %c0_8 = arith.constant 0 : index
    %4 = vector.load %arg5[%c0_7, %c0_8] : memref<1x32xf32, #tpu.memory_space<vmem>>, vector<1x32xf32>
    %c0_9 = arith.constant 0 : index
    %c0_10 = arith.constant 0 : index
    %5 = vector.load %arg6[%c0_9, %c0_10] : memref<1x32xf32, #tpu.memory_space<vmem>>, vector<1x32xf32>
    %c0_11 = arith.constant 0 : index
    %c0_12 = arith.constant 0 : index
    %6 = vector.load %arg8[%c0_11, %c0_12] : memref<1x32xf32, #tpu.memory_space<vmem>>, vector<1x32xf32>
    %c0_13 = arith.constant 0 : index
    %c0_14 = arith.constant 0 : index
    %7 = vector.load %arg9[%c0_13, %c0_14] : memref<1x32xf32, #tpu.memory_space<vmem>>, vector<1x32xf32>
    %c0_15 = arith.constant 0 : index
    %c0_16 = arith.constant 0 : index
    %8 = vector.load %arg10[%c0_15, %c0_16] : memref<1x32xf32, #tpu.memory_space<vmem>>, vector<1x32xf32>
    %c0_17 = arith.constant 0 : index
    %c0_18 = arith.constant 0 : index
    %c0_19 = arith.constant 0 : index
    %9 = vector.load %arg1[%c0_17, %c0_18, %c0_19] : memref<2x80x144xbf16, #tpu.memory_space<vmem>>, vector<1x80x144xbf16>
    %10 = vector.shape_cast %9 : vector<1x80x144xbf16> to vector<80x144xbf16>
    %c0_20 = arith.constant 0 : index
    %c0_21 = arith.constant 0 : index
    %11 = vector.load %arg3[%c0_20, %c0_21] : memref<144x32xbf16, #tpu.memory_space<vmem>>, vector<144x32xbf16>
    %cst = arith.constant dense<0.000000e+00> : vector<80x32xf32>
    %12 = tpu.matmul %10, %11, %cst {dimension_numbers = #tpu.dot_dimension_numbers<[1], [0], [0], [1], [0, 0, 1, 1], [], []>} : vector<80x144xbf16>, vector<144x32xbf16>, vector<80x32xf32> -> vector<80x32xf32>
    %13 = vector.broadcast %3 : vector<1x32xf32> to vector<80x32xf32>
    %14 = arith.addf %12, %13 : vector<80x32xf32>
    %15 = vector.broadcast %0 : vector<80x1xf32> to vector<80x32xf32>
    %16 = arith.mulf %14, %15 : vector<80x32xf32>
    %cst_22 = arith.constant dense<0.000000e+00> : vector<32xf32>
    %17 = vector.multi_reduction <add>, %16, %cst_22 [0] : vector<80x32xf32> to vector<32xf32>
    %18 = vector.shape_cast %17 : vector<32xf32> to vector<1x32xf32>
    %19 = arith.mulf %16, %14 : vector<80x32xf32>
    %cst_23 = arith.constant dense<0.000000e+00> : vector<32xf32>
    %20 = vector.multi_reduction <add>, %19, %cst_23 [0] : vector<80x32xf32> to vector<32xf32>
    %21 = vector.shape_cast %20 : vector<32xf32> to vector<1x32xf32>
    %22 = tpu.concatenate %18, %21 in 0 : vector<1x32xf32>, vector<1x32xf32> -> vector<2x32xf32>
    %cst_24 = arith.constant dense<0.000000e+00> : vector<2x8xf32>
    %23 = tpu.matmul %22, %1, %cst_24 {dimension_numbers = #tpu.dot_dimension_numbers<[1], [0], [0], [1], [0, 0, 1, 1], [], []>} : vector<2x32xf32>, vector<32x8xf32>, vector<2x8xf32> -> vector<2x8xf32>
    %cst_25 = arith.constant 3.906250e-03 : f32
    %24 = vector.broadcast %cst_25 : f32 to vector<2x8xf32>
    %25 = arith.mulf %23, %24 : vector<2x8xf32>
    %26 = vector.extract_strided_slice %25 {offsets = [0, 0], sizes = [1, 8], strides = [1, 1]} : vector<2x8xf32> to vector<1x8xf32>
    %27 = vector.extract_strided_slice %25 {offsets = [1, 0], sizes = [1, 8], strides = [1, 1]} : vector<2x8xf32> to vector<1x8xf32>
    %28 = arith.mulf %26, %26 : vector<1x8xf32>
    %29 = arith.subf %27, %28 : vector<1x8xf32>
    %cst_26 = arith.constant 0.000000e+00 : f32
    %30 = vector.broadcast %cst_26 : f32 to vector<1x8xf32>
    %31 = arith.maximumf %29, %30 : vector<1x8xf32>
    %cst_27 = arith.constant 9.99999974E-6 : f32
    %32 = vector.broadcast %cst_27 : f32 to vector<1x8xf32>
    %33 = arith.addf %31, %32 : vector<1x8xf32>
    %34 = math.rsqrt %33 : vector<1x8xf32>
    %35 = tpu.concatenate %26, %34 in 0 : vector<1x8xf32>, vector<1x8xf32> -> vector<2x8xf32>
    %cst_28 = arith.constant dense<0.000000e+00> : vector<2x32xf32>
    %36 = tpu.matmul %35, %2, %cst_28 {dimension_numbers = #tpu.dot_dimension_numbers<[1], [0], [0], [1], [0, 0, 1, 1], [], []>} : vector<2x8xf32>, vector<8x32xf32>, vector<2x32xf32> -> vector<2x32xf32>
    %37 = vector.extract_strided_slice %36 {offsets = [1, 0], sizes = [1, 32], strides = [1, 1]} : vector<2x32xf32> to vector<1x32xf32>
    %38 = arith.mulf %37, %4 : vector<1x32xf32>
    %39 = vector.extract_strided_slice %36 {offsets = [0, 0], sizes = [1, 32], strides = [1, 1]} : vector<2x32xf32> to vector<1x32xf32>
    %40 = arith.mulf %39, %38 : vector<1x32xf32>
    %41 = arith.subf %5, %40 : vector<1x32xf32>
    %42 = vector.broadcast %38 : vector<1x32xf32> to vector<80x32xf32>
    %43 = arith.mulf %14, %42 : vector<80x32xf32>
    %44 = vector.broadcast %41 : vector<1x32xf32> to vector<80x32xf32>
    %45 = arith.addf %43, %44 : vector<80x32xf32>
    %cst_29 = arith.constant 0.000000e+00 : f32
    %46 = vector.broadcast %cst_29 : f32 to vector<80x32xf32>
    %47 = arith.cmpf ogt, %45, %46 : vector<80x32xf32>
    %cst_30 = arith.constant 2.000000e-01 : f32
    %48 = vector.broadcast %cst_30 : f32 to vector<80x32xf32>
    %49 = arith.mulf %48, %45 : vector<80x32xf32>
    %50 = arith.select %47, %45, %49 : vector<80x32xi1>, vector<80x32xf32>
    %cst_31 = arith.constant 0.000000e+00 : bf16
    %51 = vector.broadcast %cst_31 : bf16 to vector<11x32xbf16>
    %c0_32 = arith.constant 0 : index
    %c0_33 = arith.constant 0 : index
    %c0_34 = arith.constant 0 : index
    %52 = vector.load %arg17[%c0_32, %c0_33, %c0_34] : memref<2x110x32xbf16, #tpu.memory_space<vmem>>, vector<1x11x32xbf16>
    %53 = vector.shape_cast %52 : vector<1x11x32xbf16> to vector<11x32xbf16>
    %54 = vector.shape_cast %51 : vector<11x32xbf16> to vector<1x11x32xbf16>
    tpu.vector_store %arg17[%c0_32, %c0_33, %c0_34], %54 {strides = array<i32>} : memref<2x110x32xbf16, #tpu.memory_space<vmem>>, vector<1x11x32xbf16>,
    %cst_35 = arith.constant 0.000000e+00 : bf16
    %55 = vector.broadcast %cst_35 : bf16 to vector<19x32xbf16>
    %c0_36 = arith.constant 0 : index
    %c91 = arith.constant 91 : index
    %c0_37 = arith.constant 0 : index
    %56 = vector.load %arg17[%c0_36, %c91, %c0_37] : memref<2x110x32xbf16, #tpu.memory_space<vmem>>, vector<1x19x32xbf16>
    %57 = vector.shape_cast %56 : vector<1x19x32xbf16> to vector<19x32xbf16>
    %58 = vector.shape_cast %55 : vector<19x32xbf16> to vector<1x19x32xbf16>
    tpu.vector_store %arg17[%c0_36, %c91, %c0_37], %58 {strides = array<i32>} : memref<2x110x32xbf16, #tpu.memory_space<vmem>>, vector<1x19x32xbf16>,
    %59 = vector.broadcast %0 : vector<80x1xf32> to vector<80x32xf32>
    %60 = arith.mulf %50, %59 : vector<80x32xf32>
    %61 = arith.truncf %60 : vector<80x32xf32> to vector<80x32xbf16>
    %c0_38 = arith.constant 0 : index
    %c11 = arith.constant 11 : index
    %c0_39 = arith.constant 0 : index
    %62 = vector.load %arg17[%c0_38, %c11, %c0_39] : memref<2x110x32xbf16, #tpu.memory_space<vmem>>, vector<1x80x32xbf16>
    %63 = vector.shape_cast %62 : vector<1x80x32xbf16> to vector<80x32xbf16>
    %64 = vector.shape_cast %61 : vector<80x32xbf16> to vector<1x80x32xbf16>
    tpu.vector_store %arg17[%c0_38, %c11, %c0_39], %64 {strides = array<i32>} : memref<2x110x32xbf16, #tpu.memory_space<vmem>>, vector<1x80x32xbf16>,
    %c0_40 = arith.constant 0 : index
    %c0_41 = arith.constant 0 : index
    %c0_42 = arith.constant 0 : index
    %65 = vector.load %arg17[%c0_40, %c0_41, %c0_42] : memref<2x110x32xbf16, #tpu.memory_space<vmem>>, vector<1x80x32xbf16>
    %66 = vector.shape_cast %65 : vector<1x80x32xbf16> to vector<80x32xbf16>
    %c0_43 = arith.constant 0 : index
    %c0_44 = arith.constant 0 : index
    %c0_45 = arith.constant 0 : index
    %67 = vector.load %arg7[%c0_43, %c0_44, %c0_45] : memref<9x32x32xbf16, #tpu.memory_space<vmem>>, vector<1x32x32xbf16>
    %68 = vector.shape_cast %67 : vector<1x32x32xbf16> to vector<32x32xbf16>
    %cst_46 = arith.constant dense<0.000000e+00> : vector<80x32xf32>
    %69 = tpu.matmul %66, %68, %cst_46 {dimension_numbers = #tpu.dot_dimension_numbers<[1], [0], [0], [1], [0, 0, 1, 1], [], []>} : vector<80x32xbf16>, vector<32x32xbf16>, vector<80x32xf32> -> vector<80x32xf32>
    %c0_47 = arith.constant 0 : index
    %c1 = arith.constant 1 : index
    %c0_48 = arith.constant 0 : index
    %70 = vector.load %arg17[%c0_47, %c1, %c0_48] : memref<2x110x32xbf16, #tpu.memory_space<vmem>>, vector<1x80x32xbf16>
    %71 = vector.shape_cast %70 : vector<1x80x32xbf16> to vector<80x32xbf16>
    %c1_49 = arith.constant 1 : index
    %c0_50 = arith.constant 0 : index
    %c0_51 = arith.constant 0 : index
    %72 = vector.load %arg7[%c1_49, %c0_50, %c0_51] : memref<9x32x32xbf16, #tpu.memory_space<vmem>>, vector<1x32x32xbf16>
    %73 = vector.shape_cast %72 : vector<1x32x32xbf16> to vector<32x32xbf16>
    %cst_52 = arith.constant dense<0.000000e+00> : vector<80x32xf32>
    %74 = tpu.matmul %71, %73, %cst_52 {dimension_numbers = #tpu.dot_dimension_numbers<[1], [0], [0], [1], [0, 0, 1, 1], [], []>} : vector<80x32xbf16>, vector<32x32xbf16>, vector<80x32xf32> -> vector<80x32xf32>
    %75 = arith.addf %69, %74 : vector<80x32xf32>
    %c0_53 = arith.constant 0 : index
    %c2 = arith.constant 2 : index
    %c0_54 = arith.constant 0 : index
    %76 = vector.load %arg17[%c0_53, %c2, %c0_54] : memref<2x110x32xbf16, #tpu.memory_space<vmem>>, vector<1x80x32xbf16>
    %77 = vector.shape_cast %76 : vector<1x80x32xbf16> to vector<80x32xbf16>
    %c2_55 = arith.constant 2 : index
    %c0_56 = arith.constant 0 : index
    %c0_57 = arith.constant 0 : index
    %78 = vector.load %arg7[%c2_55, %c0_56, %c0_57] : memref<9x32x32xbf16, #tpu.memory_space<vmem>>, vector<1x32x32xbf16>
    %79 = vector.shape_cast %78 : vector<1x32x32xbf16> to vector<32x32xbf16>
    %cst_58 = arith.constant dense<0.000000e+00> : vector<80x32xf32>
    %80 = tpu.matmul %77, %79, %cst_58 {dimension_numbers = #tpu.dot_dimension_numbers<[1], [0], [0], [1], [0, 0, 1, 1], [], []>} : vector<80x32xbf16>, vector<32x32xbf16>, vector<80x32xf32> -> vector<80x32xf32>
    %81 = arith.addf %75, %80 : vector<80x32xf32>
    %c0_59 = arith.constant 0 : index
    %c10 = arith.constant 10 : index
    %c0_60 = arith.constant 0 : index
    %82 = vector.load %arg17[%c0_59, %c10, %c0_60] : memref<2x110x32xbf16, #tpu.memory_space<vmem>>, vector<1x80x32xbf16>
    %83 = vector.shape_cast %82 : vector<1x80x32xbf16> to vector<80x32xbf16>
    %c3 = arith.constant 3 : index
    %c0_61 = arith.constant 0 : index
    %c0_62 = arith.constant 0 : index
    %84 = vector.load %arg7[%c3, %c0_61, %c0_62] : memref<9x32x32xbf16, #tpu.memory_space<vmem>>, vector<1x32x32xbf16>
    %85 = vector.shape_cast %84 : vector<1x32x32xbf16> to vector<32x32xbf16>
    %cst_63 = arith.constant dense<0.000000e+00> : vector<80x32xf32>
    %86 = tpu.matmul %83, %85, %cst_63 {dimension_numbers = #tpu.dot_dimension_numbers<[1], [0], [0], [1], [0, 0, 1, 1], [], []>} : vector<80x32xbf16>, vector<32x32xbf16>, vector<80x32xf32> -> vector<80x32xf32>
    %87 = arith.addf %81, %86 : vector<80x32xf32>
    %c0_64 = arith.constant 0 : index
    %c11_65 = arith.constant 11 : index
    %c0_66 = arith.constant 0 : index
    %88 = vector.load %arg17[%c0_64, %c11_65, %c0_66] : memref<2x110x32xbf16, #tpu.memory_space<vmem>>, vector<1x80x32xbf16>
    %89 = vector.shape_cast %88 : vector<1x80x32xbf16> to vector<80x32xbf16>
    %c4 = arith.constant 4 : index
    %c0_67 = arith.constant 0 : index
    %c0_68 = arith.constant 0 : index
    %90 = vector.load %arg7[%c4, %c0_67, %c0_68] : memref<9x32x32xbf16, #tpu.memory_space<vmem>>, vector<1x32x32xbf16>
    %91 = vector.shape_cast %90 : vector<1x32x32xbf16> to vector<32x32xbf16>
    %cst_69 = arith.constant dense<0.000000e+00> : vector<80x32xf32>
    %92 = tpu.matmul %89, %91, %cst_69 {dimension_numbers = #tpu.dot_dimension_numbers<[1], [0], [0], [1], [0, 0, 1, 1], [], []>} : vector<80x32xbf16>, vector<32x32xbf16>, vector<80x32xf32> -> vector<80x32xf32>
    %93 = arith.addf %87, %92 : vector<80x32xf32>
    %c0_70 = arith.constant 0 : index
    %c12 = arith.constant 12 : index
    %c0_71 = arith.constant 0 : index
    %94 = vector.load %arg17[%c0_70, %c12, %c0_71] : memref<2x110x32xbf16, #tpu.memory_space<vmem>>, vector<1x80x32xbf16>
    %95 = vector.shape_cast %94 : vector<1x80x32xbf16> to vector<80x32xbf16>
    %c5 = arith.constant 5 : index
    %c0_72 = arith.constant 0 : index
    %c0_73 = arith.constant 0 : index
    %96 = vector.load %arg7[%c5, %c0_72, %c0_73] : memref<9x32x32xbf16, #tpu.memory_space<vmem>>, vector<1x32x32xbf16>
    %97 = vector.shape_cast %96 : vector<1x32x32xbf16> to vector<32x32xbf16>
    %cst_74 = arith.constant dense<0.000000e+00> : vector<80x32xf32>
    %98 = tpu.matmul %95, %97, %cst_74 {dimension_numbers = #tpu.dot_dimension_numbers<[1], [0], [0], [1], [0, 0, 1, 1], [], []>} : vector<80x32xbf16>, vector<32x32xbf16>, vector<80x32xf32> -> vector<80x32xf32>
    %99 = arith.addf %93, %98 : vector<80x32xf32>
    %c0_75 = arith.constant 0 : index
    %c20 = arith.constant 20 : index
    %c0_76 = arith.constant 0 : index
    %100 = vector.load %arg17[%c0_75, %c20, %c0_76] : memref<2x110x32xbf16, #tpu.memory_space<vmem>>, vector<1x80x32xbf16>
    %101 = vector.shape_cast %100 : vector<1x80x32xbf16> to vector<80x32xbf16>
    %c6 = arith.constant 6 : index
    %c0_77 = arith.constant 0 : index
    %c0_78 = arith.constant 0 : index
    %102 = vector.load %arg7[%c6, %c0_77, %c0_78] : memref<9x32x32xbf16, #tpu.memory_space<vmem>>, vector<1x32x32xbf16>
    %103 = vector.shape_cast %102 : vector<1x32x32xbf16> to vector<32x32xbf16>
    %cst_79 = arith.constant dense<0.000000e+00> : vector<80x32xf32>
    %104 = tpu.matmul %101, %103, %cst_79 {dimension_numbers = #tpu.dot_dimension_numbers<[1], [0], [0], [1], [0, 0, 1, 1], [], []>} : vector<80x32xbf16>, vector<32x32xbf16>, vector<80x32xf32> -> vector<80x32xf32>
    %105 = arith.addf %99, %104 : vector<80x32xf32>
    %c0_80 = arith.constant 0 : index
    %c21 = arith.constant 21 : index
    %c0_81 = arith.constant 0 : index
    %106 = vector.load %arg17[%c0_80, %c21, %c0_81] : memref<2x110x32xbf16, #tpu.memory_space<vmem>>, vector<1x80x32xbf16>
    %107 = vector.shape_cast %106 : vector<1x80x32xbf16> to vector<80x32xbf16>
    %c7 = arith.constant 7 : index
    %c0_82 = arith.constant 0 : index
    %c0_83 = arith.constant 0 : index
    %108 = vector.load %arg7[%c7, %c0_82, %c0_83] : memref<9x32x32xbf16, #tpu.memory_space<vmem>>, vector<1x32x32xbf16>
    %109 = vector.shape_cast %108 : vector<1x32x32xbf16> to vector<32x32xbf16>
    %cst_84 = arith.constant dense<0.000000e+00> : vector<80x32xf32>
    %110 = tpu.matmul %107, %109, %cst_84 {dimension_numbers = #tpu.dot_dimension_numbers<[1], [0], [0], [1], [0, 0, 1, 1], [], []>} : vector<80x32xbf16>, vector<32x32xbf16>, vector<80x32xf32> -> vector<80x32xf32>
    %111 = arith.addf %105, %110 : vector<80x32xf32>
    %c0_85 = arith.constant 0 : index
    %c22 = arith.constant 22 : index
    %c0_86 = arith.constant 0 : index
    %112 = vector.load %arg17[%c0_85, %c22, %c0_86] : memref<2x110x32xbf16, #tpu.memory_space<vmem>>, vector<1x80x32xbf16>
    %113 = vector.shape_cast %112 : vector<1x80x32xbf16> to vector<80x32xbf16>
    %c8 = arith.constant 8 : index
    %c0_87 = arith.constant 0 : index
    %c0_88 = arith.constant 0 : index
    %114 = vector.load %arg7[%c8, %c0_87, %c0_88] : memref<9x32x32xbf16, #tpu.memory_space<vmem>>, vector<1x32x32xbf16>
    %115 = vector.shape_cast %114 : vector<1x32x32xbf16> to vector<32x32xbf16>
    %cst_89 = arith.constant dense<0.000000e+00> : vector<80x32xf32>
    %116 = tpu.matmul %113, %115, %cst_89 {dimension_numbers = #tpu.dot_dimension_numbers<[1], [0], [0], [1], [0, 0, 1, 1], [], []>} : vector<80x32xbf16>, vector<32x32xbf16>, vector<80x32xf32> -> vector<80x32xf32>
    %117 = arith.addf %111, %116 : vector<80x32xf32>
    %118 = vector.broadcast %6 : vector<1x32xf32> to vector<80x32xf32>
    %119 = arith.addf %117, %118 : vector<80x32xf32>
    %120 = vector.broadcast %0 : vector<80x1xf32> to vector<80x32xf32>
    %121 = arith.mulf %119, %120 : vector<80x32xf32>
    %cst_90 = arith.constant dense<0.000000e+00> : vector<32xf32>
    %122 = vector.multi_reduction <add>, %121, %cst_90 [0] : vector<80x32xf32> to vector<32xf32>
    %123 = vector.shape_cast %122 : vector<32xf32> to vector<1x32xf32>
    %124 = arith.mulf %121, %119 : vector<80x32xf32>
    %cst_91 = arith.constant dense<0.000000e+00> : vector<32xf32>
    %125 = vector.multi_reduction <add>, %124, %cst_91 [0] : vector<80x32xf32> to vector<32xf32>
    %126 = vector.shape_cast %125 : vector<32xf32> to vector<1x32xf32>
    %127 = tpu.concatenate %123, %126 in 0 : vector<1x32xf32>, vector<1x32xf32> -> vector<2x32xf32>
    %cst_92 = arith.constant dense<0.000000e+00> : vector<2x8xf32>
    %128 = tpu.matmul %127, %1, %cst_92 {dimension_numbers = #tpu.dot_dimension_numbers<[1], [0], [0], [1], [0, 0, 1, 1], [], []>} : vector<2x32xf32>, vector<32x8xf32>, vector<2x8xf32> -> vector<2x8xf32>
    %cst_93 = arith.constant 3.906250e-03 : f32
    %129 = vector.broadcast %cst_93 : f32 to vector<2x8xf32>
    %130 = arith.mulf %128, %129 : vector<2x8xf32>
    %131 = vector.extract_strided_slice %130 {offsets = [0, 0], sizes = [1, 8], strides = [1, 1]} : vector<2x8xf32> to vector<1x8xf32>
    %132 = vector.extract_strided_slice %130 {offsets = [1, 0], sizes = [1, 8], strides = [1, 1]} : vector<2x8xf32> to vector<1x8xf32>
    %133 = arith.mulf %131, %131 : vector<1x8xf32>
    %134 = arith.subf %132, %133 : vector<1x8xf32>
    %cst_94 = arith.constant 0.000000e+00 : f32
    %135 = vector.broadcast %cst_94 : f32 to vector<1x8xf32>
    %136 = arith.maximumf %134, %135 : vector<1x8xf32>
    %cst_95 = arith.constant 9.99999974E-6 : f32
    %137 = vector.broadcast %cst_95 : f32 to vector<1x8xf32>
    %138 = arith.addf %136, %137 : vector<1x8xf32>
    %139 = math.rsqrt %138 : vector<1x8xf32>
    %140 = tpu.concatenate %131, %139 in 0 : vector<1x8xf32>, vector<1x8xf32> -> vector<2x8xf32>
    %cst_96 = arith.constant dense<0.000000e+00> : vector<2x32xf32>
    %141 = tpu.matmul %140, %2, %cst_96 {dimension_numbers = #tpu.dot_dimension_numbers<[1], [0], [0], [1], [0, 0, 1, 1], [], []>} : vector<2x8xf32>, vector<8x32xf32>, vector<2x32xf32> -> vector<2x32xf32>
    %142 = vector.extract_strided_slice %141 {offsets = [1, 0], sizes = [1, 32], strides = [1, 1]} : vector<2x32xf32> to vector<1x32xf32>
    %143 = arith.mulf %142, %7 : vector<1x32xf32>
    %144 = vector.extract_strided_slice %141 {offsets = [0, 0], sizes = [1, 32], strides = [1, 1]} : vector<2x32xf32> to vector<1x32xf32>
    %145 = arith.mulf %144, %143 : vector<1x32xf32>
    %146 = arith.subf %8, %145 : vector<1x32xf32>
    %147 = vector.broadcast %143 : vector<1x32xf32> to vector<80x32xf32>
    %148 = arith.mulf %119, %147 : vector<80x32xf32>
    %149 = vector.broadcast %146 : vector<1x32xf32> to vector<80x32xf32>
    %150 = arith.addf %148, %149 : vector<80x32xf32>
    %c0_97 = arith.constant 0 : index
    %c0_98 = arith.constant 0 : index
    %c0_99 = arith.constant 0 : index
    %151 = vector.load %arg15[%c0_97, %c0_98, %c0_99] : memref<2x80x16xbf16, #tpu.memory_space<vmem>>, vector<1x80x16xbf16>
    %152 = vector.shape_cast %151 : vector<1x80x16xbf16> to vector<80x16xbf16>
    %c0_100 = arith.constant 0 : index
    %c0_101 = arith.constant 0 : index
    %153 = vector.load %arg13[%c0_100, %c0_101] : memref<16x32xbf16, #tpu.memory_space<vmem>>, vector<16x32xbf16>
    %cst_102 = arith.constant dense<0.000000e+00> : vector<80x32xf32>
    %154 = tpu.matmul %152, %153, %cst_102 {dimension_numbers = #tpu.dot_dimension_numbers<[1], [0], [0], [1], [0, 0, 1, 1], [], []>} : vector<80x16xbf16>, vector<16x32xbf16>, vector<80x32xf32> -> vector<80x32xf32>
    %c0_103 = arith.constant 0 : index
    %c0_104 = arith.constant 0 : index
    %155 = vector.load %arg14[%c0_103, %c0_104] : memref<1x32xf32, #tpu.memory_space<vmem>>, vector<1x32xf32>
    %156 = vector.broadcast %155 : vector<1x32xf32> to vector<80x32xf32>
    %157 = arith.addf %154, %156 : vector<80x32xf32>
    %158 = arith.addf %150, %157 : vector<80x32xf32>
    %cst_105 = arith.constant 0.000000e+00 : f32
    %159 = vector.broadcast %cst_105 : f32 to vector<80x32xf32>
    %160 = arith.cmpf ogt, %158, %159 : vector<80x32xf32>
    %cst_106 = arith.constant 2.000000e-01 : f32
    %161 = vector.broadcast %cst_106 : f32 to vector<80x32xf32>
    %162 = arith.mulf %161, %158 : vector<80x32xf32>
    %163 = arith.select %160, %158, %162 : vector<80x32xi1>, vector<80x32xf32>
    %c0_107 = arith.constant 0 : index
    %c0_108 = arith.constant 0 : index
    %c0_109 = arith.constant 0 : index
    %164 = vector.load %arg16[%c0_107, %c0_108, %c0_109] : memref<2x80x32xf32, #tpu.memory_space<vmem>>, vector<1x80x32xf32>
    %165 = vector.shape_cast %164 : vector<1x80x32xf32> to vector<80x32xf32>
    %166 = vector.shape_cast %163 : vector<80x32xf32> to vector<1x80x32xf32>
    tpu.vector_store %arg16[%c0_107, %c0_108, %c0_109], %166 {strides = array<i32>} : memref<2x80x32xf32, #tpu.memory_space<vmem>>, vector<1x80x32xf32>,
    %c1_110 = arith.constant 1 : index
    %c0_111 = arith.constant 0 : index
    %c0_112 = arith.constant 0 : index
    %167 = vector.load %arg1[%c1_110, %c0_111, %c0_112] : memref<2x80x144xbf16, #tpu.memory_space<vmem>>, vector<1x80x144xbf16>
    %168 = vector.shape_cast %167 : vector<1x80x144xbf16> to vector<80x144xbf16>
    %c0_113 = arith.constant 0 : index
    %c0_114 = arith.constant 0 : index
    %169 = vector.load %arg3[%c0_113, %c0_114] : memref<144x32xbf16, #tpu.memory_space<vmem>>, vector<144x32xbf16>
    %cst_115 = arith.constant dense<0.000000e+00> : vector<80x32xf32>
    %170 = tpu.matmul %168, %169, %cst_115 {dimension_numbers = #tpu.dot_dimension_numbers<[1], [0], [0], [1], [0, 0, 1, 1], [], []>} : vector<80x144xbf16>, vector<144x32xbf16>, vector<80x32xf32> -> vector<80x32xf32>
    %171 = vector.broadcast %3 : vector<1x32xf32> to vector<80x32xf32>
    %172 = arith.addf %170, %171 : vector<80x32xf32>
    %173 = vector.broadcast %0 : vector<80x1xf32> to vector<80x32xf32>
    %174 = arith.mulf %172, %173 : vector<80x32xf32>
    %cst_116 = arith.constant dense<0.000000e+00> : vector<32xf32>
    %175 = vector.multi_reduction <add>, %174, %cst_116 [0] : vector<80x32xf32> to vector<32xf32>
    %176 = vector.shape_cast %175 : vector<32xf32> to vector<1x32xf32>
    %177 = arith.mulf %174, %172 : vector<80x32xf32>
    %cst_117 = arith.constant dense<0.000000e+00> : vector<32xf32>
    %178 = vector.multi_reduction <add>, %177, %cst_117 [0] : vector<80x32xf32> to vector<32xf32>
    %179 = vector.shape_cast %178 : vector<32xf32> to vector<1x32xf32>
    %180 = tpu.concatenate %176, %179 in 0 : vector<1x32xf32>, vector<1x32xf32> -> vector<2x32xf32>
    %cst_118 = arith.constant dense<0.000000e+00> : vector<2x8xf32>
    %181 = tpu.matmul %180, %1, %cst_118 {dimension_numbers = #tpu.dot_dimension_numbers<[1], [0], [0], [1], [0, 0, 1, 1], [], []>} : vector<2x32xf32>, vector<32x8xf32>, vector<2x8xf32> -> vector<2x8xf32>
    %cst_119 = arith.constant 3.906250e-03 : f32
    %182 = vector.broadcast %cst_119 : f32 to vector<2x8xf32>
    %183 = arith.mulf %181, %182 : vector<2x8xf32>
    %184 = vector.extract_strided_slice %183 {offsets = [0, 0], sizes = [1, 8], strides = [1, 1]} : vector<2x8xf32> to vector<1x8xf32>
    %185 = vector.extract_strided_slice %183 {offsets = [1, 0], sizes = [1, 8], strides = [1, 1]} : vector<2x8xf32> to vector<1x8xf32>
    %186 = arith.mulf %184, %184 : vector<1x8xf32>
    %187 = arith.subf %185, %186 : vector<1x8xf32>
    %cst_120 = arith.constant 0.000000e+00 : f32
    %188 = vector.broadcast %cst_120 : f32 to vector<1x8xf32>
    %189 = arith.maximumf %187, %188 : vector<1x8xf32>
    %cst_121 = arith.constant 9.99999974E-6 : f32
    %190 = vector.broadcast %cst_121 : f32 to vector<1x8xf32>
    %191 = arith.addf %189, %190 : vector<1x8xf32>
    %192 = math.rsqrt %191 : vector<1x8xf32>
    %193 = tpu.concatenate %184, %192 in 0 : vector<1x8xf32>, vector<1x8xf32> -> vector<2x8xf32>
    %cst_122 = arith.constant dense<0.000000e+00> : vector<2x32xf32>
    %194 = tpu.matmul %193, %2, %cst_122 {dimension_numbers = #tpu.dot_dimension_numbers<[1], [0], [0], [1], [0, 0, 1, 1], [], []>} : vector<2x8xf32>, vector<8x32xf32>, vector<2x32xf32> -> vector<2x32xf32>
    %195 = vector.extract_strided_slice %194 {offsets = [1, 0], sizes = [1, 32], strides = [1, 1]} : vector<2x32xf32> to vector<1x32xf32>
    %196 = arith.mulf %195, %4 : vector<1x32xf32>
    %197 = vector.extract_strided_slice %194 {offsets = [0, 0], sizes = [1, 32], strides = [1, 1]} : vector<2x32xf32> to vector<1x32xf32>
    %198 = arith.mulf %197, %196 : vector<1x32xf32>
    %199 = arith.subf %5, %198 : vector<1x32xf32>
    %200 = vector.broadcast %196 : vector<1x32xf32> to vector<80x32xf32>
    %201 = arith.mulf %172, %200 : vector<80x32xf32>
    %202 = vector.broadcast %199 : vector<1x32xf32> to vector<80x32xf32>
    %203 = arith.addf %201, %202 : vector<80x32xf32>
    %cst_123 = arith.constant 0.000000e+00 : f32
    %204 = vector.broadcast %cst_123 : f32 to vector<80x32xf32>
    %205 = arith.cmpf ogt, %203, %204 : vector<80x32xf32>
    %cst_124 = arith.constant 2.000000e-01 : f32
    %206 = vector.broadcast %cst_124 : f32 to vector<80x32xf32>
    %207 = arith.mulf %206, %203 : vector<80x32xf32>
    %208 = arith.select %205, %203, %207 : vector<80x32xi1>, vector<80x32xf32>
    %cst_125 = arith.constant 0.000000e+00 : bf16
    %209 = vector.broadcast %cst_125 : bf16 to vector<11x32xbf16>
    %c1_126 = arith.constant 1 : index
    %c0_127 = arith.constant 0 : index
    %c0_128 = arith.constant 0 : index
    %210 = vector.load %arg17[%c1_126, %c0_127, %c0_128] : memref<2x110x32xbf16, #tpu.memory_space<vmem>>, vector<1x11x32xbf16>
    %211 = vector.shape_cast %210 : vector<1x11x32xbf16> to vector<11x32xbf16>
    %212 = vector.shape_cast %209 : vector<11x32xbf16> to vector<1x11x32xbf16>
    tpu.vector_store %arg17[%c1_126, %c0_127, %c0_128], %212 {strides = array<i32>} : memref<2x110x32xbf16, #tpu.memory_space<vmem>>, vector<1x11x32xbf16>,
    %cst_129 = arith.constant 0.000000e+00 : bf16
    %213 = vector.broadcast %cst_129 : bf16 to vector<19x32xbf16>
    %c1_130 = arith.constant 1 : index
    %c91_131 = arith.constant 91 : index
    %c0_132 = arith.constant 0 : index
    %214 = vector.load %arg17[%c1_130, %c91_131, %c0_132] : memref<2x110x32xbf16, #tpu.memory_space<vmem>>, vector<1x19x32xbf16>
    %215 = vector.shape_cast %214 : vector<1x19x32xbf16> to vector<19x32xbf16>
    %216 = vector.shape_cast %213 : vector<19x32xbf16> to vector<1x19x32xbf16>
    tpu.vector_store %arg17[%c1_130, %c91_131, %c0_132], %216 {strides = array<i32>} : memref<2x110x32xbf16, #tpu.memory_space<vmem>>, vector<1x19x32xbf16>,
    %217 = vector.broadcast %0 : vector<80x1xf32> to vector<80x32xf32>
    %218 = arith.mulf %208, %217 : vector<80x32xf32>
    %219 = arith.truncf %218 : vector<80x32xf32> to vector<80x32xbf16>
    %c1_133 = arith.constant 1 : index
    %c11_134 = arith.constant 11 : index
    %c0_135 = arith.constant 0 : index
    %220 = vector.load %arg17[%c1_133, %c11_134, %c0_135] : memref<2x110x32xbf16, #tpu.memory_space<vmem>>, vector<1x80x32xbf16>
    %221 = vector.shape_cast %220 : vector<1x80x32xbf16> to vector<80x32xbf16>
    %222 = vector.shape_cast %219 : vector<80x32xbf16> to vector<1x80x32xbf16>
    tpu.vector_store %arg17[%c1_133, %c11_134, %c0_135], %222 {strides = array<i32>} : memref<2x110x32xbf16, #tpu.memory_space<vmem>>, vector<1x80x32xbf16>,
    %c1_136 = arith.constant 1 : index
    %c0_137 = arith.constant 0 : index
    %c0_138 = arith.constant 0 : index
    %223 = vector.load %arg17[%c1_136, %c0_137, %c0_138] : memref<2x110x32xbf16, #tpu.memory_space<vmem>>, vector<1x80x32xbf16>
    %224 = vector.shape_cast %223 : vector<1x80x32xbf16> to vector<80x32xbf16>
    %c0_139 = arith.constant 0 : index
    %c0_140 = arith.constant 0 : index
    %c0_141 = arith.constant 0 : index
    %225 = vector.load %arg7[%c0_139, %c0_140, %c0_141] : memref<9x32x32xbf16, #tpu.memory_space<vmem>>, vector<1x32x32xbf16>
    %226 = vector.shape_cast %225 : vector<1x32x32xbf16> to vector<32x32xbf16>
    %cst_142 = arith.constant dense<0.000000e+00> : vector<80x32xf32>
    %227 = tpu.matmul %224, %226, %cst_142 {dimension_numbers = #tpu.dot_dimension_numbers<[1], [0], [0], [1], [0, 0, 1, 1], [], []>} : vector<80x32xbf16>, vector<32x32xbf16>, vector<80x32xf32> -> vector<80x32xf32>
    %c1_143 = arith.constant 1 : index
    %c1_144 = arith.constant 1 : index
    %c0_145 = arith.constant 0 : index
    %228 = vector.load %arg17[%c1_143, %c1_144, %c0_145] : memref<2x110x32xbf16, #tpu.memory_space<vmem>>, vector<1x80x32xbf16>
    %229 = vector.shape_cast %228 : vector<1x80x32xbf16> to vector<80x32xbf16>
    %c1_146 = arith.constant 1 : index
    %c0_147 = arith.constant 0 : index
    %c0_148 = arith.constant 0 : index
    %230 = vector.load %arg7[%c1_146, %c0_147, %c0_148] : memref<9x32x32xbf16, #tpu.memory_space<vmem>>, vector<1x32x32xbf16>
    %231 = vector.shape_cast %230 : vector<1x32x32xbf16> to vector<32x32xbf16>
    %cst_149 = arith.constant dense<0.000000e+00> : vector<80x32xf32>
    %232 = tpu.matmul %229, %231, %cst_149 {dimension_numbers = #tpu.dot_dimension_numbers<[1], [0], [0], [1], [0, 0, 1, 1], [], []>} : vector<80x32xbf16>, vector<32x32xbf16>, vector<80x32xf32> -> vector<80x32xf32>
    %233 = arith.addf %227, %232 : vector<80x32xf32>
    %c1_150 = arith.constant 1 : index
    %c2_151 = arith.constant 2 : index
    %c0_152 = arith.constant 0 : index
    %234 = vector.load %arg17[%c1_150, %c2_151, %c0_152] : memref<2x110x32xbf16, #tpu.memory_space<vmem>>, vector<1x80x32xbf16>
    %235 = vector.shape_cast %234 : vector<1x80x32xbf16> to vector<80x32xbf16>
    %c2_153 = arith.constant 2 : index
    %c0_154 = arith.constant 0 : index
    %c0_155 = arith.constant 0 : index
    %236 = vector.load %arg7[%c2_153, %c0_154, %c0_155] : memref<9x32x32xbf16, #tpu.memory_space<vmem>>, vector<1x32x32xbf16>
    %237 = vector.shape_cast %236 : vector<1x32x32xbf16> to vector<32x32xbf16>
    %cst_156 = arith.constant dense<0.000000e+00> : vector<80x32xf32>
    %238 = tpu.matmul %235, %237, %cst_156 {dimension_numbers = #tpu.dot_dimension_numbers<[1], [0], [0], [1], [0, 0, 1, 1], [], []>} : vector<80x32xbf16>, vector<32x32xbf16>, vector<80x32xf32> -> vector<80x32xf32>
    %239 = arith.addf %233, %238 : vector<80x32xf32>
    %c1_157 = arith.constant 1 : index
    %c10_158 = arith.constant 10 : index
    %c0_159 = arith.constant 0 : index
    %240 = vector.load %arg17[%c1_157, %c10_158, %c0_159] : memref<2x110x32xbf16, #tpu.memory_space<vmem>>, vector<1x80x32xbf16>
    %241 = vector.shape_cast %240 : vector<1x80x32xbf16> to vector<80x32xbf16>
    %c3_160 = arith.constant 3 : index
    %c0_161 = arith.constant 0 : index
    %c0_162 = arith.constant 0 : index
    %242 = vector.load %arg7[%c3_160, %c0_161, %c0_162] : memref<9x32x32xbf16, #tpu.memory_space<vmem>>, vector<1x32x32xbf16>
    %243 = vector.shape_cast %242 : vector<1x32x32xbf16> to vector<32x32xbf16>
    %cst_163 = arith.constant dense<0.000000e+00> : vector<80x32xf32>
    %244 = tpu.matmul %241, %243, %cst_163 {dimension_numbers = #tpu.dot_dimension_numbers<[1], [0], [0], [1], [0, 0, 1, 1], [], []>} : vector<80x32xbf16>, vector<32x32xbf16>, vector<80x32xf32> -> vector<80x32xf32>
    %245 = arith.addf %239, %244 : vector<80x32xf32>
    %c1_164 = arith.constant 1 : index
    %c11_165 = arith.constant 11 : index
    %c0_166 = arith.constant 0 : index
    %246 = vector.load %arg17[%c1_164, %c11_165, %c0_166] : memref<2x110x32xbf16, #tpu.memory_space<vmem>>, vector<1x80x32xbf16>
    %247 = vector.shape_cast %246 : vector<1x80x32xbf16> to vector<80x32xbf16>
    %c4_167 = arith.constant 4 : index
    %c0_168 = arith.constant 0 : index
    %c0_169 = arith.constant 0 : index
    %248 = vector.load %arg7[%c4_167, %c0_168, %c0_169] : memref<9x32x32xbf16, #tpu.memory_space<vmem>>, vector<1x32x32xbf16>
    %249 = vector.shape_cast %248 : vector<1x32x32xbf16> to vector<32x32xbf16>
    %cst_170 = arith.constant dense<0.000000e+00> : vector<80x32xf32>
    %250 = tpu.matmul %247, %249, %cst_170 {dimension_numbers = #tpu.dot_dimension_numbers<[1], [0], [0], [1], [0, 0, 1, 1], [], []>} : vector<80x32xbf16>, vector<32x32xbf16>, vector<80x32xf32> -> vector<80x32xf32>
    %251 = arith.addf %245, %250 : vector<80x32xf32>
    %c1_171 = arith.constant 1 : index
    %c12_172 = arith.constant 12 : index
    %c0_173 = arith.constant 0 : index
    %252 = vector.load %arg17[%c1_171, %c12_172, %c0_173] : memref<2x110x32xbf16, #tpu.memory_space<vmem>>, vector<1x80x32xbf16>
    %253 = vector.shape_cast %252 : vector<1x80x32xbf16> to vector<80x32xbf16>
    %c5_174 = arith.constant 5 : index
    %c0_175 = arith.constant 0 : index
    %c0_176 = arith.constant 0 : index
    %254 = vector.load %arg7[%c5_174, %c0_175, %c0_176] : memref<9x32x32xbf16, #tpu.memory_space<vmem>>, vector<1x32x32xbf16>
    %255 = vector.shape_cast %254 : vector<1x32x32xbf16> to vector<32x32xbf16>
    %cst_177 = arith.constant dense<0.000000e+00> : vector<80x32xf32>
    %256 = tpu.matmul %253, %255, %cst_177 {dimension_numbers = #tpu.dot_dimension_numbers<[1], [0], [0], [1], [0, 0, 1, 1], [], []>} : vector<80x32xbf16>, vector<32x32xbf16>, vector<80x32xf32> -> vector<80x32xf32>
    %257 = arith.addf %251, %256 : vector<80x32xf32>
    %c1_178 = arith.constant 1 : index
    %c20_179 = arith.constant 20 : index
    %c0_180 = arith.constant 0 : index
    %258 = vector.load %arg17[%c1_178, %c20_179, %c0_180] : memref<2x110x32xbf16, #tpu.memory_space<vmem>>, vector<1x80x32xbf16>
    %259 = vector.shape_cast %258 : vector<1x80x32xbf16> to vector<80x32xbf16>
    %c6_181 = arith.constant 6 : index
    %c0_182 = arith.constant 0 : index
    %c0_183 = arith.constant 0 : index
    %260 = vector.load %arg7[%c6_181, %c0_182, %c0_183] : memref<9x32x32xbf16, #tpu.memory_space<vmem>>, vector<1x32x32xbf16>
    %261 = vector.shape_cast %260 : vector<1x32x32xbf16> to vector<32x32xbf16>
    %cst_184 = arith.constant dense<0.000000e+00> : vector<80x32xf32>
    %262 = tpu.matmul %259, %261, %cst_184 {dimension_numbers = #tpu.dot_dimension_numbers<[1], [0], [0], [1], [0, 0, 1, 1], [], []>} : vector<80x32xbf16>, vector<32x32xbf16>, vector<80x32xf32> -> vector<80x32xf32>
    %263 = arith.addf %257, %262 : vector<80x32xf32>
    %c1_185 = arith.constant 1 : index
    %c21_186 = arith.constant 21 : index
    %c0_187 = arith.constant 0 : index
    %264 = vector.load %arg17[%c1_185, %c21_186, %c0_187] : memref<2x110x32xbf16, #tpu.memory_space<vmem>>, vector<1x80x32xbf16>
    %265 = vector.shape_cast %264 : vector<1x80x32xbf16> to vector<80x32xbf16>
    %c7_188 = arith.constant 7 : index
    %c0_189 = arith.constant 0 : index
    %c0_190 = arith.constant 0 : index
    %266 = vector.load %arg7[%c7_188, %c0_189, %c0_190] : memref<9x32x32xbf16, #tpu.memory_space<vmem>>, vector<1x32x32xbf16>
    %267 = vector.shape_cast %266 : vector<1x32x32xbf16> to vector<32x32xbf16>
    %cst_191 = arith.constant dense<0.000000e+00> : vector<80x32xf32>
    %268 = tpu.matmul %265, %267, %cst_191 {dimension_numbers = #tpu.dot_dimension_numbers<[1], [0], [0], [1], [0, 0, 1, 1], [], []>} : vector<80x32xbf16>, vector<32x32xbf16>, vector<80x32xf32> -> vector<80x32xf32>
    %269 = arith.addf %263, %268 : vector<80x32xf32>
    %c1_192 = arith.constant 1 : index
    %c22_193 = arith.constant 22 : index
    %c0_194 = arith.constant 0 : index
    %270 = vector.load %arg17[%c1_192, %c22_193, %c0_194] : memref<2x110x32xbf16, #tpu.memory_space<vmem>>, vector<1x80x32xbf16>
    %271 = vector.shape_cast %270 : vector<1x80x32xbf16> to vector<80x32xbf16>
    %c8_195 = arith.constant 8 : index
    %c0_196 = arith.constant 0 : index
    %c0_197 = arith.constant 0 : index
    %272 = vector.load %arg7[%c8_195, %c0_196, %c0_197] : memref<9x32x32xbf16, #tpu.memory_space<vmem>>, vector<1x32x32xbf16>
    %273 = vector.shape_cast %272 : vector<1x32x32xbf16> to vector<32x32xbf16>
    %cst_198 = arith.constant dense<0.000000e+00> : vector<80x32xf32>
    %274 = tpu.matmul %271, %273, %cst_198 {dimension_numbers = #tpu.dot_dimension_numbers<[1], [0], [0], [1], [0, 0, 1, 1], [], []>} : vector<80x32xbf16>, vector<32x32xbf16>, vector<80x32xf32> -> vector<80x32xf32>
    %275 = arith.addf %269, %274 : vector<80x32xf32>
    %276 = vector.broadcast %6 : vector<1x32xf32> to vector<80x32xf32>
    %277 = arith.addf %275, %276 : vector<80x32xf32>
    %278 = vector.broadcast %0 : vector<80x1xf32> to vector<80x32xf32>
    %279 = arith.mulf %277, %278 : vector<80x32xf32>
    %cst_199 = arith.constant dense<0.000000e+00> : vector<32xf32>
    %280 = vector.multi_reduction <add>, %279, %cst_199 [0] : vector<80x32xf32> to vector<32xf32>
    %281 = vector.shape_cast %280 : vector<32xf32> to vector<1x32xf32>
    %282 = arith.mulf %279, %277 : vector<80x32xf32>
    %cst_200 = arith.constant dense<0.000000e+00> : vector<32xf32>
    %283 = vector.multi_reduction <add>, %282, %cst_200 [0] : vector<80x32xf32> to vector<32xf32>
    %284 = vector.shape_cast %283 : vector<32xf32> to vector<1x32xf32>
    %285 = tpu.concatenate %281, %284 in 0 : vector<1x32xf32>, vector<1x32xf32> -> vector<2x32xf32>
    %cst_201 = arith.constant dense<0.000000e+00> : vector<2x8xf32>
    %286 = tpu.matmul %285, %1, %cst_201 {dimension_numbers = #tpu.dot_dimension_numbers<[1], [0], [0], [1], [0, 0, 1, 1], [], []>} : vector<2x32xf32>, vector<32x8xf32>, vector<2x8xf32> -> vector<2x8xf32>
    %cst_202 = arith.constant 3.906250e-03 : f32
    %287 = vector.broadcast %cst_202 : f32 to vector<2x8xf32>
    %288 = arith.mulf %286, %287 : vector<2x8xf32>
    %289 = vector.extract_strided_slice %288 {offsets = [0, 0], sizes = [1, 8], strides = [1, 1]} : vector<2x8xf32> to vector<1x8xf32>
    %290 = vector.extract_strided_slice %288 {offsets = [1, 0], sizes = [1, 8], strides = [1, 1]} : vector<2x8xf32> to vector<1x8xf32>
    %291 = arith.mulf %289, %289 : vector<1x8xf32>
    %292 = arith.subf %290, %291 : vector<1x8xf32>
    %cst_203 = arith.constant 0.000000e+00 : f32
    %293 = vector.broadcast %cst_203 : f32 to vector<1x8xf32>
    %294 = arith.maximumf %292, %293 : vector<1x8xf32>
    %cst_204 = arith.constant 9.99999974E-6 : f32
    %295 = vector.broadcast %cst_204 : f32 to vector<1x8xf32>
    %296 = arith.addf %294, %295 : vector<1x8xf32>
    %297 = math.rsqrt %296 : vector<1x8xf32>
    %298 = tpu.concatenate %289, %297 in 0 : vector<1x8xf32>, vector<1x8xf32> -> vector<2x8xf32>
    %cst_205 = arith.constant dense<0.000000e+00> : vector<2x32xf32>
    %299 = tpu.matmul %298, %2, %cst_205 {dimension_numbers = #tpu.dot_dimension_numbers<[1], [0], [0], [1], [0, 0, 1, 1], [], []>} : vector<2x8xf32>, vector<8x32xf32>, vector<2x32xf32> -> vector<2x32xf32>
    %300 = vector.extract_strided_slice %299 {offsets = [1, 0], sizes = [1, 32], strides = [1, 1]} : vector<2x32xf32> to vector<1x32xf32>
    %301 = arith.mulf %300, %7 : vector<1x32xf32>
    %302 = vector.extract_strided_slice %299 {offsets = [0, 0], sizes = [1, 32], strides = [1, 1]} : vector<2x32xf32> to vector<1x32xf32>
    %303 = arith.mulf %302, %301 : vector<1x32xf32>
    %304 = arith.subf %8, %303 : vector<1x32xf32>
    %305 = vector.broadcast %301 : vector<1x32xf32> to vector<80x32xf32>
    %306 = arith.mulf %277, %305 : vector<80x32xf32>
    %307 = vector.broadcast %304 : vector<1x32xf32> to vector<80x32xf32>
    %308 = arith.addf %306, %307 : vector<80x32xf32>
    %c1_206 = arith.constant 1 : index
    %c0_207 = arith.constant 0 : index
    %c0_208 = arith.constant 0 : index
    %309 = vector.load %arg15[%c1_206, %c0_207, %c0_208] : memref<2x80x16xbf16, #tpu.memory_space<vmem>>, vector<1x80x16xbf16>
    %310 = vector.shape_cast %309 : vector<1x80x16xbf16> to vector<80x16xbf16>
    %c0_209 = arith.constant 0 : index
    %c0_210 = arith.constant 0 : index
    %311 = vector.load %arg13[%c0_209, %c0_210] : memref<16x32xbf16, #tpu.memory_space<vmem>>, vector<16x32xbf16>
    %cst_211 = arith.constant dense<0.000000e+00> : vector<80x32xf32>
    %312 = tpu.matmul %310, %311, %cst_211 {dimension_numbers = #tpu.dot_dimension_numbers<[1], [0], [0], [1], [0, 0, 1, 1], [], []>} : vector<80x16xbf16>, vector<16x32xbf16>, vector<80x32xf32> -> vector<80x32xf32>
    %c0_212 = arith.constant 0 : index
    %c0_213 = arith.constant 0 : index
    %313 = vector.load %arg14[%c0_212, %c0_213] : memref<1x32xf32, #tpu.memory_space<vmem>>, vector<1x32xf32>
    %314 = vector.broadcast %313 : vector<1x32xf32> to vector<80x32xf32>
    %315 = arith.addf %312, %314 : vector<80x32xf32>
    %316 = arith.addf %308, %315 : vector<80x32xf32>
    %cst_214 = arith.constant 0.000000e+00 : f32
    %317 = vector.broadcast %cst_214 : f32 to vector<80x32xf32>
    %318 = arith.cmpf ogt, %316, %317 : vector<80x32xf32>
    %cst_215 = arith.constant 2.000000e-01 : f32
    %319 = vector.broadcast %cst_215 : f32 to vector<80x32xf32>
    %320 = arith.mulf %319, %316 : vector<80x32xf32>
    %321 = arith.select %318, %316, %320 : vector<80x32xi1>, vector<80x32xf32>
    %c1_216 = arith.constant 1 : index
    %c0_217 = arith.constant 0 : index
    %c0_218 = arith.constant 0 : index
    %322 = vector.load %arg16[%c1_216, %c0_217, %c0_218] : memref<2x80x32xf32, #tpu.memory_space<vmem>>, vector<1x80x32xf32>
    %323 = vector.shape_cast %322 : vector<1x80x32xf32> to vector<80x32xf32>
    %324 = vector.shape_cast %321 : vector<80x32xf32> to vector<1x80x32xf32>
    tpu.vector_store %arg16[%c1_216, %c0_217, %c0_218], %324 {strides = array<i32>} : memref<2x80x32xf32, #tpu.memory_space<vmem>>, vector<1x80x32xf32>,
    return
  }
  func.func @transform_0(%arg0: i32) -> (i32, i32, i32) {
    %c0_i32 = arith.constant 0 : i32
    %c0_i32_0 = arith.constant 0 : i32
    %c0_i32_1 = arith.constant 0 : i32
    return %arg0, %c0_i32, %c0_i32_0 : i32, i32, i32
  }
  func.func @transform_1(%arg0: i32) -> (i32, i32) {
    %c0_i32 = arith.constant 0 : i32
    %c0_i32_0 = arith.constant 0 : i32
    %c0_i32_1 = arith.constant 0 : i32
    return %c0_i32, %c0_i32_0 : i32, i32
  }
  func.func @transform_2(%arg0: i32) -> (i32, i32) {
    %c0_i32 = arith.constant 0 : i32
    %c0_i32_0 = arith.constant 0 : i32
    %c0_i32_1 = arith.constant 0 : i32
    return %c0_i32, %c0_i32_0 : i32, i32
  }
  func.func @transform_3(%arg0: i32) -> (i32, i32) {
    %c0_i32 = arith.constant 0 : i32
    %c0_i32_0 = arith.constant 0 : i32
    %c0_i32_1 = arith.constant 0 : i32
    return %c0_i32, %c0_i32_0 : i32, i32
  }
  func.func @transform_4(%arg0: i32) -> (i32, i32) {
    %c0_i32 = arith.constant 0 : i32
    %c0_i32_0 = arith.constant 0 : i32
    %c0_i32_1 = arith.constant 0 : i32
    return %c0_i32, %c0_i32_0 : i32, i32
  }
  func.func @transform_5(%arg0: i32) -> (i32, i32) {
    %c0_i32 = arith.constant 0 : i32
    %c0_i32_0 = arith.constant 0 : i32
    %c0_i32_1 = arith.constant 0 : i32
    return %c0_i32, %c0_i32_0 : i32, i32
  }
  func.func @transform_6(%arg0: i32) -> (i32, i32, i32) {
    %c0_i32 = arith.constant 0 : i32
    %c0_i32_0 = arith.constant 0 : i32
    %c0_i32_1 = arith.constant 0 : i32
    %c0_i32_2 = arith.constant 0 : i32
    return %c0_i32, %c0_i32_0, %c0_i32_1 : i32, i32, i32
  }
  func.func @transform_7(%arg0: i32) -> (i32, i32) {
    %c0_i32 = arith.constant 0 : i32
    %c0_i32_0 = arith.constant 0 : i32
    %c0_i32_1 = arith.constant 0 : i32
    return %c0_i32, %c0_i32_0 : i32, i32
  }
  func.func @transform_8(%arg0: i32) -> (i32, i32) {
    %c0_i32 = arith.constant 0 : i32
    %c0_i32_0 = arith.constant 0 : i32
    %c0_i32_1 = arith.constant 0 : i32
    return %c0_i32, %c0_i32_0 : i32, i32
  }
  func.func @transform_9(%arg0: i32) -> (i32, i32) {
    %c0_i32 = arith.constant 0 : i32
    %c0_i32_0 = arith.constant 0 : i32
    %c0_i32_1 = arith.constant 0 : i32
    return %c0_i32, %c0_i32_0 : i32, i32
  }
  func.func @transform_10(%arg0: i32) -> (i32, i32) {
    %c0_i32 = arith.constant 0 : i32
    %c0_i32_0 = arith.constant 0 : i32
    %c0_i32_1 = arith.constant 0 : i32
    return %c0_i32, %c0_i32_0 : i32, i32
  }
  func.func @transform_11(%arg0: i32) -> (i32, i32) {
    %c0_i32 = arith.constant 0 : i32
    %c0_i32_0 = arith.constant 0 : i32
    %c0_i32_1 = arith.constant 0 : i32
    return %c0_i32, %c0_i32_0 : i32, i32
  }
  func.func @transform_12(%arg0: i32) -> (i32, i32) {
    %c0_i32 = arith.constant 0 : i32
    %c0_i32_0 = arith.constant 0 : i32
    %c0_i32_1 = arith.constant 0 : i32
    return %c0_i32, %c0_i32_0 : i32, i32
  }
  func.func @transform_13(%arg0: i32) -> (i32, i32) {
    %c0_i32 = arith.constant 0 : i32
    %c0_i32_0 = arith.constant 0 : i32
    %c0_i32_1 = arith.constant 0 : i32
    return %c0_i32, %c0_i32_0 : i32, i32
  }
  func.func @transform_14(%arg0: i32) -> (i32, i32, i32) {
    %c0_i32 = arith.constant 0 : i32
    %c0_i32_0 = arith.constant 0 : i32
    %c0_i32_1 = arith.constant 0 : i32
    return %arg0, %c0_i32, %c0_i32_0 : i32, i32, i32
  }
  func.func @transform_15(%arg0: i32) -> (i32, i32, i32) {
    %c0_i32 = arith.constant 0 : i32
    %c0_i32_0 = arith.constant 0 : i32
    %c0_i32_1 = arith.constant 0 : i32
    return %arg0, %c0_i32, %c0_i32_0 : i32, i32, i32
  }
}

</mosaic_0001>

<bundles_post_ra>
// kernel: tpu_custom_call.1
= control target key start
LH: loop header
LB: loop body
LE: loop exit
PB: predicated region body
PF: predicated region fallthrough
CT: control target
= control target key end

     0   :  { %s7078_s18 = smov 0   ;;  %s9007_s0 = inlined_call_operand.vmem [shape: bf16[4,80,144], index: 0, kind: input, shape index: {}]   ;;  %s9008_s1 = inlined_call_operand.vmem [shape: f32[80,1], index: 1, kind: input, shape index: {}]   ;;  %s9009_s2 = inlined_call_operand.vmem [shape: bf16[144,32], index: 2, kind: input, shape index: {}]   ;;  %s9010_s3 = inlined_call_operand.vmem [shape: f32[1,32], index: 3, kind: input, shape index: {}]   ;;  %s9011_s4 = inlined_call_operand.vmem [shape: f32[1,32], index: 4, kind: input, shape index: {}]   ;;  %s9012_s5 = inlined_call_operand.vmem [shape: f32[1,32], index: 5, kind: input, shape index: {}]   ;;  %s9013_s6 = inlined_call_operand.vmem [shape: bf16[9,32,32], index: 6, kind: input, shape index: {}]   ;;  %s9014_s7 = inlined_call_operand.vmem [shape: f32[1,32], index: 7, kind: input, shape index: {}]   ;;  %s9015_s8 = inlined_call_operand.vmem [shape: f32[1,32], index: 8, kind: input, shape index: {}]   ;;  %s9016_s9 = inlined_call_operand.vmem [shape: f32[1,32], index: 9, kind: input, shape index: {}]   ;;  %s9017_s10 = inlined_call_operand.vmem [shape: f32[32,8], index: 10, kind: input, shape index: {}]   ;;  %s9018_s11 = inlined_call_operand.vmem [shape: f32[8,32], index: 11, kind: input, shape index: {}]   ;;  %s9019_s12 = inlined_call_operand.vmem [shape: bf16[16,32], index: 12, kind: input, shape index: {}]   ;;  %s9020_s13 = inlined_call_operand.vmem [shape: f32[1,32], index: 13, kind: input, shape index: {}]   ;;  %s9021_s14 = inlined_call_operand.vmem [shape: bf16[4,80,16], index: 14, kind: input, shape index: {}]   ;;  %s9022_s15 = inlined_call_operand.vmem [shape: f32[4,80,32], index: 15, kind: output, shape index: {}]  }
   0x1 LB: > { %s5698_s19 = sadd.s32 4294967295, %s6993_s18   ;;  %p5702_p0 = scmp.ge.s32.totalorder %s6993_s18, 1  ;;  %s6993_s18 = sphi %s7078_s18, %s25_s18  }
   0x2   : > { %p451_p1 = scmp.lt.s32.totalorder %s6993_s18, 3 }
   0x4   : > { %p452_p2 = pnand %p5702_p0, %p451_p1 }
   0x6   : > { %455 = sbr.rel (%p452_p2) target bundleno = 2775 (0xad7), region = 80 }
   0xb   : > { %v9026_v0 = vmov 0   ;;  %v6822_v1 = vld [vmem:[%s9009_s2 + $0x38] sm:$0xff]   ;;  %s5703_s22 = sshll.u32 %s5698_s19, 1  ;;  %v6823_v2 = vld [vmem:[%s9009_s2 + $0x30] sm:$0xff]   ;;  %v6824_v3 = vld [vmem:[%s9009_s2 + $0x28] sm:$0xff]   ;;  %vm9025_vm0 = vcmask 130048  }
   0xc   : > { %699 = vmatprep.subr.bf16.mxu0 %v9026_v0  ;;  %6820 = vset.pattern.permute.xlu0 %v9026_v0  ;;  %p508_p3 = scmp.lt.s32.totalorder %s5703_s22, 3  ;;  %v6825_v5 = vld [vmem:[%s9009_s2 + $0x20] sm:$0xff]   ;;  %v6826_v6 = vld [vmem:[%s9009_s2 + $0x18] sm:$0xff]   ;;  %v531_v8 = vld [vmem:[%s9008_s1 + $0x10] sm:$0xff]  ;;  %v9028_v31 = vmov 0.0   ;;  %vm6997_vm1 = vmmov 0  }
   0xd   : > { %6821 = vset.pattern.permute.xlu1 %v9026_v0  ;;  %700 = vmatpush1.bf16.msra.mxu0 %v6822_v1  ;;  %v529_v7 = vld [vmem:[%s9008_s1] sm:$0xff]  ;;  %v530_v9 = vld [vmem:[%s9008_s1 + $0x8] sm:$0xff]  ;;  %v532_v10 = vld [vmem:[%s9008_s1 + $0x18] sm:$0xff]  ;;  %vm832_vm2 = vcmask 261120   ;;  %vm9024_vm3 = vcmask 1040384   ;;  %vm9023_vm4 = vcmask 64512  }
   0xe   : > { %701 = vmatprep.subr.bf16.mxu0 %v9026_v0  ;;  %s9114_s22 = smov (!%p508_p3, %s5703_s22), 3  ;;  %774 = vperm.xlu0 %6820, %v529_v7   ;;  %v6827_v11 = vld [vmem:[%s9009_s2 + $0x10] sm:$0xff]   ;;  %v533_v12 = vld [vmem:[%s9008_s1 + $0x20] sm:$0xff]  ;;  %v534_v13 = vld [vmem:[%s9008_s1 + $0x28] sm:$0xff]  ;;  %vm1124_vm5 = vcmask 257024   ;;  %vm1126_vm6 = vcmask 254976  }
   0xf   : > { %s6807_s25 = smul.u32 80, %s9114_s22  ;;  %784 = vperm.xlu1 %6821, %v531_v8   ;;  %v6828_v14 = vld [vmem:[%s9009_s2 + $0x8] sm:$0xff]   ;;  %v535_v15 = vld [vmem:[%s9008_s1 + $0x30] sm:$0xff]  ;;  %v536_v16 = vld [vmem:[%s9008_s1 + $0x38] sm:$0xff]  ;;  %6278 = vmatprep.subr.mxu1 %v9028_v31  ;;  %1125 = vst.msk [vmem:[#allocation2] sm:$0xf] %vm1124_vm5, %v9026_v0 }
  0x10   : > { %s6808_s20 = smul.u32 40, %s9114_s22  ;;  %v6829_v17 = vld [vmem:[%s9009_s2] sm:$0xff]   ;;  %v538_v19 = vld [vmem:[%s9008_s1 + $0x48] sm:$0xff]  ;;  %v542_v30 = vld [vmem:[%s9017_s10 + $0x18] sm:$0xff]  ;;  %6280 = vmatprep.mubr.msk.f32.mxu1 %vm6997_vm1, %v9028_v31  ;;  %vm1127_vm7 = vsmask.f32 1280 }
  0x11   : > { %702 = vmatpush1.bf16.msra.mxu0 %v6823_v2  ;;  %s7108_s30 = scalar_lea.vmem %s9007_s0, %s6807_s25  ;;  %v537_v18 = vld [vmem:[%s9008_s1 + $0x40] sm:$0xff]  ;;  %v541_v32 = vld [vmem:[%s9017_s10 + $0x10] sm:$0xff]  ;;  %v540_v33 = vld [vmem:[%s9017_s10 + $0x8] sm:$0xff]  ;;  %1138 = vst.msk [vmem:[#allocation2 + $0x30] sm:$0xf] %vm1124_vm5, %v9026_v0  ;;  %vm1132_vm9 = vcmask 257025   ;;  %s8285_s24 = scalar_lea.vmem %s9022_s15, %s6807_s25 }
  0x12   : > { %703 = vmatprep.subr.bf16.mxu0 %v9026_v0  ;;  %v6833_v4 = vld [vmem:[%s7108_s30 + $0x4] ss:$8 sps:$4 sm:$0xff]   ;;  %779 = vperm.xlu0 %6820, %v530_v9   ;;  %v6831_v21 = vld [vmem:[%s7108_s30] ss:$8 sps:$4 sm:$0xff]   ;;  %v6834_v22 = vld [vmem:[%s7108_s30 + $0x14] ss:$8 sps:$4 sm:$0xff]   ;;  %s7175_s21 = scalar_lea.vmem %s9021_s14, %s6808_s20 }
  0x13   : > { %5729 = vmatprep.mubr.msk.bf16.mxu0 %vm9025_vm0, %v6833_v4  ;;  %789 = vperm.xlu1 %6821, %v532_v10   ;;  %v6830_v20 = vld [vmem:[%s9009_s2 + $0x40] sm:$0xff]   ;;  %v6836_v23 = vld [vmem:[%s7108_s30 + $0x10] ss:$8 sps:$4 sm:$0xff]   ;;  %v6840_v26 = vld [vmem:[%s7108_s30 + $0x34] ss:$8 sps:$4 sm:$0xff]  }
  0x14   : > { %v6837_v24 = vld [vmem:[%s7108_s30 + $0x24] ss:$8 sps:$4 sm:$0xff]   ;;  %v6839_v25 = vld [vmem:[%s7108_s30 + $0x20] ss:$8 sps:$4 sm:$0xff]   ;;  %v6842_v27 = vld [vmem:[%s7108_s30 + $0x30] ss:$8 sps:$4 sm:$0xff]  }
  0x15   : > { %704 = vmatpush1.bf16.msra.mxu0 %v6824_v3  ;;  %v6843_v28 = vld [vmem:[%s7108_s30 + $0x44] ss:$8 sps:$4 sm:$0xff]   ;;  %v6845_v29 = vld [vmem:[%s7108_s30 + $0x40] ss:$8 sps:$4 sm:$0xff]   ;;  %3648 = vst.msk [vmem:[#allocation2 + $0x38] sm:$0xf] %vm1124_vm5, %v9026_v0  ;;  %vm7347_vm8 = vmand %vm1126_vm6, %vm1127_vm7 }
  0x16   : > { %705 = vmatprep.subr.bf16.mxu0 %v9026_v0  ;;  %794 = vperm.xlu0 %6820, %v533_v12   ;;  %v539_v34 = vld [vmem:[%s9017_s10] sm:$0xff]  ;;  %3655 = vst.msk [vmem:[#allocation2 + $0x68] sm:$0xf] %vm1124_vm5, %v9026_v0  ;;  %vm1133_vm10 = vsmask.f32 7942 }
  0x17   : > { %799 = vperm.xlu1 %6821, %v534_v13   ;;  %v7214_v42 = vld [vmem:[%s9010_s3] ss:$0 sm:$0xff]  ;;  %vm7357_vm11 = vmand %vm1132_vm9, %vm1133_vm10 }
  0x19   : > { %706 = vmatpush1.bf16.msra.mxu0 %v6825_v5 }
  0x1a   : > { %707 = vmatprep.subr.bf16.mxu0 %v9026_v0  ;;  %804 = vperm.xlu0 %6820, %v535_v15  }
  0x1b   : > { %809 = vperm.xlu1 %6821, %v536_v16  }
  0x1d   : > { %708 = vmatpush1.bf16.msra.mxu0 %v6826_v6 }
  0x1e   : > { %709 = vmatprep.subr.bf16.mxu0 %v9026_v0  ;;  %814 = vperm.xlu0 %6820, %v537_v18  }
  0x1f   : > { %819 = vperm.xlu1 %6821, %v538_v19  }
  0x21   : > { %710 = vmatpush1.bf16.msra.mxu0 %v6827_v11 }
  0x22   : > { %711 = vmatprep.subr.bf16.mxu0 %v9026_v0 }
  0x25   : > { %712 = vmatpush1.bf16.msra.mxu0 %v6828_v14 }
  0x26   : > { %713 = vmatprep.subr.bf16.mxu0 %v9026_v0 }
  0x29   : > { %714 = vmatpush1.bf16.msra.mxu0 %v6829_v17 }
  0x2a   : > { %729 = vmatprep.subr.bf16.mxu0 %v9026_v0 }
  0x2d   : > { %730 = vmatpush2.bf16.msra.mxu0 %v6830_v20 }
  0x2e   : > { %6267 = vmatprep.subr.mxu0 %v9028_v31 }
  0x30   : > { %732 = vmatmul.mubr.bf16.vlgmr.msra.gmra.mxu0 %v6831_v21 }
  0x31   : > { %5730 = vmatprep.mubr.msk.bf16.mxu0 %vm9025_vm0, %v6834_v22  ;;  %6268 = vmatpush3.msra.mxu0 %v542_v30 }
  0x32   : > { %6269 = vmatprep.subr.mxu0 %v9028_v31 }
  0x33   : > { %6270 = vmatpush3.msra.mxu0 %v541_v32 }
  0x34   : > { %6271 = vmatprep.subr.mxu0 %v9028_v31 }
  0x35   : > { %6272 = vmatpush3.msra.mxu0 %v540_v33 }
  0x36   : > { %6273 = vmatprep.subr.mxu0 %v9028_v31 }
  0x37   : > { %6274 = vmatpush3.msra.mxu0 %v539_v34 }
  0x38   : > { %740 = vmatmul.mubr.bf16.gmra.mxu0 %v6836_v23  ;;  %6331 = vmatprep.subr.bf16.mxu0 %v9028_v31 }
  0x39   : > { %5731 = vmatprep.mubr.msk.bf16.mxu0 %vm9025_vm0, %v6837_v24 }
  0x40   : > { %748 = vmatmul.mubr.bf16.gmra.mxu0 %v6839_v25 }
  0x41   : > { %5732 = vmatprep.mubr.msk.bf16.mxu0 %vm9025_vm0, %v6840_v26 }
  0x48   : > { %756 = vmatmul.mubr.bf16.gmra.mxu0 %v6842_v27 }
  0x49   : > { %5733 = vmatprep.mubr.msk.bf16.mxu0 %vm9025_vm0, %v6843_v28  ;;  %vm1181_vm0 = vsmask.f32 5392 }
  0x50   : > { %764 = vmatmul.mubr.bf16.gmra.mxu0 %v6845_v29 }
  0x51   : > { %6275 = vmatprep.mubr.msk.f32.mxu0 %vm6997_vm1, %v9028_v31 }
  0x89   : > { %v7209_v39 = vpop.permute.xlu0 %774 }
  0x8a   : > { %v7219_v44 = vpop.permute.xlu1 %784 }
  0x8d   : > { %v7221_v46 = vpop.permute.xlu0 %779 }
  0x8e   : > { %v7236_v54 = vpop.permute.xlu1 %789 }
  0x91   : > { %v7244_v59 = vpop.permute.xlu0 %794 }
  0x92   : > { %v7258_v7 = vpop.permute.xlu1 %799 }
  0x95   : > { %v7268_v15 = vpop.permute.xlu0 %804 }
  0x96   : > { %9041 = vst [vmem:[#allocation3_spill] sm:$0xff] %v7268_v15  ;;  %v7281_v30 = vpop.permute.xlu1 %809 }
  0xf0   : > { %v733_v35 = vpop.f32.mrf.mxu0 }
  0xf1   : > { %v7224_v47 = vadd.f32 %v7214_v42, %v733_v35 }
  0xf2   : > { %v735_v36 = vpop.f32.mrf.mxu0 }
  0xf3   : > { %v822_v53 = vmul.f32 %v7209_v39, %v7224_v47 }
  0xf4   : > { %v736_v37 = vpop.f32.mrf.mxu0 }
  0xf5   : > { %v7217_v43 = vadd.f32 %v7214_v42, %v736_v37  ;;  %v858_v63 = vmul.f32 %v822_v53, %v7224_v47  ;;  %v833_v5 = vsel %vm832_vm2, %v822_v53, 0.0  ;;  %v7294_v53 = vpop.permute.xlu0 %814 }
  0xf6   : > { %v738_v38 = vpop.f32.mrf.mxu0 }
  0xf7   : > { %v823_v50 = vmul.f32 %v7221_v46, %v7217_v43  ;;  %v868_v14 = vsel %vm832_vm2, %v858_v63, 0.0 }
  0xf8   : > { %v741_v40 = vpop.f32.mrf.mxu0 }
  0xf9   : > { %v7227_v49 = vadd.f32 %v7214_v42, %v741_v40  ;;  %v859_v58 = vmul.f32 %v823_v50, %v7217_v43  ;;  %v834_v2 = vsel %vm832_vm2, %v823_v50, 0.0 }
  0xfa   : > { %v743_v41 = vpop.f32.mrf.mxu0  ;;  %v835_v13 = vadd.f32 %v834_v2, %v833_v5 }
  0xfb   : > { %v824_v56 = vmul.f32 %v7219_v44, %v7227_v49  ;;  %v869_v6 = vsel %vm832_vm2, %v859_v58, 0.0 }
  0xfc   : > { %v744_v45 = vpop.f32.mrf.mxu0  ;;  %v870_v22 = vadd.f32 %v869_v6, %v868_v14 }
  0xfd   : > { %v7232_v52 = vadd.f32 %v7214_v42, %v744_v45  ;;  %v860_v3 = vmul.f32 %v824_v56, %v7227_v49  ;;  %v836_v9 = vsel %vm832_vm2, %v824_v56, 0.0 }
  0xfe   : > { %v746_v48 = vpop.f32.mrf.mxu0  ;;  %v837_v21 = vadd.f32 %v836_v9, %v835_v13 }
  0xff   : > { %v825_v61 = vmul.f32 %v7236_v54, %v7232_v52  ;;  %v871_v17 = vsel %vm832_vm2, %v860_v3, 0.0 }
 0x100   : > { %v749_v51 = vpop.f32.mrf.mxu0  ;;  %v872_v28 = vadd.f32 %v871_v17, %v870_v22 }
 0x101   : > { %v7241_v57 = vadd.f32 %v7214_v42, %v749_v51  ;;  %v861_v10 = vmul.f32 %v825_v61, %v7232_v52  ;;  %v838_v18 = vsel %vm832_vm2, %v825_v61, 0.0 }
 0x102   : > { %v751_v55 = vpop.f32.mrf.mxu0  ;;  %v839_v29 = vadd.f32 %v838_v18, %v837_v21 }
 0x103   : > { %v826_v4 = vmul.f32 %v7244_v59, %v7241_v57  ;;  %v873_v24 = vsel %vm832_vm2, %v861_v10, 0.0 }
 0x104   : > { %v752_v60 = vpop.f32.mrf.mxu0  ;;  %v874_v37 = vadd.f32 %v873_v24, %v872_v28 }
 0x105   : > { %v7249_v62 = vadd.f32 %v7214_v42, %v752_v60  ;;  %v862_v19 = vmul.f32 %v826_v4, %v7241_v57  ;;  %v840_v25 = vsel %vm832_vm2, %v826_v4, 0.0 }
 0x106   : > { %v754_v1 = vpop.f32.mrf.mxu0  ;;  %v841_v38 = vadd.f32 %v840_v25, %v839_v29 }
 0x107   : > { %v827_v11 = vmul.f32 %v7258_v7, %v7249_v62  ;;  %v875_v33 = vsel %vm832_vm2, %v862_v19, 0.0 }
 0x108   : > { %v757_v8 = vpop.f32.mrf.mxu0  ;;  %v876_v51 = vadd.f32 %v875_v33, %v874_v37 }
 0x109   : > { %v7265_v12 = vadd.f32 %v7214_v42, %v757_v8  ;;  %v863_v26 = vmul.f32 %v827_v11, %v7249_v62  ;;  %v842_v34 = vsel %vm832_vm2, %v827_v11, 0.0  ;;  %v7306_v8 = vpop.permute.xlu1 %819 }
 0x10a   : > { %v759_v16 = vpop.f32.mrf.mxu0  ;;  %v843_v55 = vadd.f32 %v842_v34, %v841_v38 }
 0x10b   : > { %v828_v20 = vmul.f32 %v7268_v15, %v7265_v12  ;;  %v877_v41 = vsel %vm832_vm2, %v863_v26, 0.0 }
 0x10c   : > { %v760_v23 = vpop.f32.mrf.mxu0  ;;  %v878_v63 = vadd.f32 %v877_v41, %v876_v51 }
 0x10d   : > { %v7279_v27 = vadd.f32 %v7214_v42, %v760_v23  ;;  %v864_v35 = vmul.f32 %v828_v20, %v7265_v12  ;;  %v844_v45 = vsel %vm832_vm2, %v828_v20, 0.0 }
 0x10e   : > { %v762_v32 = vpop.f32.mrf.mxu0  ;;  %v845_v1 = vadd.f32 %v844_v45, %v843_v55 }
 0x10f   : > { %v829_v36 = vmul.f32 %v7281_v30, %v7279_v27  ;;  %v879_v58 = vsel %vm832_vm2, %v864_v35, 0.0 }
 0x110   : > { %v765_v40 = vpop.f32.mrf.mxu0  ;;  %v880_v9 = vadd.f32 %v879_v58, %v878_v63 }
 0x111   : > { %v865_v48 = vmul.f32 %v829_v36, %v7279_v27  ;;  %v7292_v50 = vadd.f32 %v7214_v42, %v765_v40  ;;  %v846_v60 = vsel %vm832_vm2, %v829_v36, 0.0  ;;  %v543_v40 = vld [vmem:[%s9018_s11] sm:$0xff] }
 0x112   : > { %v767_v56 = vpop.f32.mrf.mxu0  ;;  %v847_v10 = vadd.f32 %v846_v60, %v845_v1  ;;  %6279 = vmatpush3.msra.mxu1 %v543_v40  ;;  %v6846_v1 = vld [vmem:[%s9013_s6 + $0x28] sm:$0xff]  }
 0x113   : > { %v830_v61 = vmul.f32 %v7294_v53, %v7292_v50  ;;  %v881_v3 = vsel %vm832_vm2, %v865_v48, 0.0  ;;  %6283 = vmatprep.subr.bf16.mxu1 %v9028_v31 }
 0x114   : > { %v768_v2 = vpop.f32.mrf.mxu0  ;;  %v882_v16 = vadd.f32 %v881_v3, %v880_v9  ;;  %v1129_v3 = vld [vmem:[#allocation2 + $0x4] sm:$0x3] }
 0x115   : > { %v848_v4 = vsel %vm832_vm2, %v830_v61, 0.0  ;;  %v866_v5 = vmul.f32 %v830_v61, %v7292_v50  ;;  %v7304_v6 = vadd.f32 %v7214_v42, %v768_v2  ;;  %v6847_v2 = vld [vmem:[%s9013_s6 + $0x18] sm:$0xff]  }
 0x116   : > { %v770_v11 = vpop.f32.mrf.mxu0  ;;  %v849_v17 = vadd.f32 %v848_v4, %v847_v10  ;;  %v6848_v4 = vld [vmem:[%s9013_s6 + $0x20] sm:$0xff]   ;;  %v1130_v10 = vsel %vm7347_vm8, 0, %v1129_v3 }
 0x117   : > { %v883_v13 = vsel %vm832_vm2, %v866_v5, 0.0  ;;  %v831_v14 = vmul.f32 %v7306_v8, %v7304_v6  ;;  %v6849_v5 = vld [vmem:[%s9013_s6 + $0x10] sm:$0xff]   ;;  %1131 = vst [vmem:[#allocation2 + $0x4] sm:$0x3] %v1130_v10  ;;  %v9044_v11 = vmov 0 }
 0x118   : > { %v884_v20 = vadd.f32 %v883_v13, %v882_v16  ;;  %v9045_v11 = vsel %vm7357_vm11, 4294967295, %v9044_v11  ;;  %v1135_v13 = vld [vmem:[#allocation2 + $0x2c] sm:$0xe]  ;;  %v1064_v16 = vlaneseq }
 0x119   : > { %v850_v18 = vsel %vm832_vm2, %v831_v14, 0.0  ;;  %v867_v19 = vmul.f32 %v831_v14, %v7304_v6  ;;  %9046 = vst [vmem:[#allocation4_spill] sm:$0xff] %v9045_v11  ;;  %v1136_v14 = vsel %vm7357_vm11, 0, %v1135_v13 }
 0x11a   : > { %v851_v21 = vadd.f32 %v850_v18, %v849_v17  ;;  %1137 = vst [vmem:[#allocation2 + $0x2c] sm:$0xe] %v1136_v14  ;;  %v1065_v17 = vshrl.u32 %v1064_v16, 7  ;;  %v5736_v18 = vld [vmem:[%s9011_s4] ss:$0 sm:$0xff] }
 0x11b   : > { %v885_v42 = vsel %vm832_vm2, %v867_v19, 0.0 }
 0x11c   : > { %v852_v22 = vrot.slane %v851_v21, 4  ;;  %v886_v23 = vadd.f32 %v885_v42, %v884_v20  ;;  %v7366_v20 = vsub.s32 1, %v1065_v17 }
 0x11e   : > { %v853_v24 = vadd.f32 %v852_v22, %v851_v21  ;;  %v887_v25 = vrot.slane %v886_v23, 4 }
 0x120   : > { %v854_v26 = vrot.slane %v853_v24, 2  ;;  %v888_v28 = vadd.f32 %v887_v25, %v886_v23  ;;  %v546_v23 = vld [vmem:[%s9012_s5] sm:$0x1] }
 0x122   : > { %v855_v29 = vadd.f32 %v854_v26, %v853_v24  ;;  %v889_v32 = vrot.slane %v888_v28, 2  ;;  %v7372_v26 = vsub.s32 0, %v1065_v17 }
 0x124   : > { %v856_v33 = vrot.slane %v855_v29, 1  ;;  %v890_v34 = vadd.f32 %v889_v32, %v888_v28 }
 0x126   : > { %v891_v35 = vrot.slane %v890_v34, 1  ;;  %v857_v36 = vadd.f32 %v856_v33, %v855_v29 }
 0x128   : > { %v892_v37 = vadd.f32 %v891_v35, %v890_v34 }
 0x12a   : > { %v894_v38 = vsel %vm9024_vm3, %v857_v36, %v892_v37 }
 0x12b   : > { %6276 = vmatmul.mubr.msk.f32.vlgmr.msra.gmra.mxu0 %vm832_vm2, %v894_v38 }
 0x12c   : > { %6335 = vmatprep.mubr.msk.bf16.mxu0 %vm6997_vm1, %v9028_v31  ;;  %6332 = vmatpush3.bf16.msra.mxu0 %v6846_v1 }
 0x12d   : > { %6333 = vmatprep.subr.bf16.mxu0 %v9028_v31 }
 0x130   : > { %6334 = vmatpush3.bf16.msra.mxu0 %v6848_v4 }
 0x131   : > { %6379 = vmatprep.subr.bf16.mxu0 %v9028_v31 }
 0x1eb   : > { %v964_v41 = vpop.f32.mrf.mxu0 }
 0x1ec   : > { %v968_v45 = vmul.f32 0.00390625, %v964_v41 }
 0x1ed   : > { %v6277_v48 = vpop.f32.mrf.mxu0 }
 0x1ee   : > { %v969_v51 = vmul.f32 %v968_v45, %v968_v45 }
 0x1f0   : > { %v971_v55 = vrot.slane %v969_v51, 7 }
 0x1f2   : > { %v973_v56 = vsub.f32 %v968_v45, %v971_v55 }
 0x1f4   : > { %v974_v58 = vmax.f32 %v973_v56, 0.0 }
 0x1f6   : > { %v975_v60 = vadd.f32 1e-05, %v974_v58 }
 0x1f8   : > { %6963 = vrsqrt.f32 %v975_v60 }
 0x205   : > { %v6964_v61 = vpop.eup %6963 }
 0x206   : > { %v977_v63 = vsel %vm9024_vm3, %v968_v45, %v6964_v61 }
 0x207   : > { %6281 = vmatmul.mubr.msk.f32.vlgmr.msra.gmra.mxu1 %vm9023_vm4, %v977_v63 }
 0x208   : > { %6287 = vmatprep.mubr.msk.bf16.mxu1 %vm6997_vm1, %v9028_v31  ;;  %6284 = vmatpush3.bf16.msra.mxu1 %v6847_v2 }
 0x209   : > { %6285 = vmatprep.subr.bf16.mxu1 %v9028_v31 }
 0x20c   : > { %6286 = vmatpush3.bf16.msra.mxu1 %v6849_v5 }
 0x20d   : > { %6307 = vmatprep.subr.bf16.mxu1 %v9028_v31 }
 0x2c7   : > { %v1048_v19 = vpop.f32.mrf.mxu1 }
 0x2c8   : > { %v1058_v21 = vmul.f32 %v5736_v18, %v1048_v19 }
 0x2c9   : > { %v6282_v42 = vpop.f32.mrf.mxu1 }
 0x2ca   : > { %v1060_v22 = vrot.slane %v1058_v21, 1  ;;  %v1067_v24 = vrot.slane %v1058_v21, %v7366_v20 }
 0x2cc   : > { %v1062_v25 = vmul.f32 %v1060_v22, %v1048_v19  ;;  %v1068_v29 = vmul.f32 %v1067_v24, %v7224_v47  ;;  %v1069_v32 = vmul.f32 %v1067_v24, %v7217_v43  ;;  %v1070_v33 = vmul.f32 %v1067_v24, %v7227_v49 }
 0x2cd   : > { %v1071_v34 = vmul.f32 %v1067_v24, %v7232_v52  ;;  %v1072_v35 = vmul.f32 %v1067_v24, %v7241_v57  ;;  %v1073_v37 = vmul.f32 %v1067_v24, %v7249_v62  ;;  %v1074_v38 = vmul.f32 %v1067_v24, %v7265_v12 }
 0x2ce   : > { %v1063_v28 = vsub.f32 %v546_v23, %v1062_v25  ;;  %v1075_v40 = vmul.f32 %v1067_v24, %v7279_v27  ;;  %v1076_v41 = vmul.f32 %v1067_v24, %v7292_v50  ;;  %v1077_v57 = vmul.f32 %v1067_v24, %v7304_v6 }
 0x2d0   : > { %v1082_v36 = vrot.slane %v1063_v28, %v7372_v26 }
 0x2d2   : > { %v1084_v45 = vadd.f32 %v1082_v36, %v1068_v29  ;;  %v1085_v47 = vadd.f32 %v1082_v36, %v1069_v32  ;;  %v1086_v48 = vadd.f32 %v1082_v36, %v1070_v33  ;;  %v1087_v43 = vadd.f32 %v1082_v36, %v1071_v34 }
 0x2d3   : > { %v1088_v51 = vadd.f32 %v1082_v36, %v1072_v35  ;;  %v1089_v49 = vadd.f32 %v1082_v36, %v1073_v37  ;;  %v1090_v55 = vadd.f32 %v1082_v36, %v1074_v38  ;;  %v1091_v52 = vadd.f32 %v1082_v36, %v1075_v40 }
 0x2d4   : > { %v1092_v56 = vadd.f32 %v1082_v36, %v1076_v41  ;;  %vm1094_vm12 = vcmp.gt.f32.partialorder %v1084_v45, 0.0  ;;  %vm1095_vm13 = vcmp.gt.f32.partialorder %v1085_v47, 0.0  ;;  %vm1096_vm14 = vcmp.gt.f32.partialorder %v1086_v48, 0.0 }
 0x2d5   : > { %vm1097_vm15 = vcmp.gt.f32.partialorder %v1087_v43, 0.0  ;;  %vm1098_vm6 = vcmp.gt.f32.partialorder %v1088_v51, 0.0  ;;  %vm1099_vm9 = vcmp.gt.f32.partialorder %v1089_v49, 0.0  ;;  %vm1100_vm10 = vcmp.gt.f32.partialorder %v1090_v55, 0.0 }
 0x2d6   : > { %vm1101_vm4 = vcmp.gt.f32.partialorder %v1091_v52, 0.0  ;;  %vm1102_vm3 = vcmp.gt.f32.partialorder %v1092_v56, 0.0  ;;  %v1104_v62 = vmul.f32 0.2, %v1084_v45  ;;  %v7385_v12 = vadd.f32 %v1082_v36, %v1077_v57 }
 0x2d7   : > { %v1105_v27 = vmul.f32 0.2, %v1085_v47  ;;  %v1106_v50 = vmul.f32 0.2, %v1086_v48  ;;  %v1107_v58 = vmul.f32 0.2, %v1087_v43 }
 0x2d8   : > { %v1108_v60 = vmul.f32 0.2, %v1088_v51  ;;  %v1109_v61 = vmul.f32 0.2, %v1089_v49  ;;  %v1110_v63 = vmul.f32 0.2, %v1090_v55  ;;  %v1114_v6 = vsel %vm1094_vm12, %v1084_v45, %v1104_v62 }
 0x2d9   : > { %v1111_v1 = vmul.f32 0.2, %v1091_v52  ;;  %v1112_v2 = vmul.f32 0.2, %v1092_v56  ;;  %v1115_v3 = vsel %vm1095_vm13, %v1085_v47, %v1105_v27  ;;  %v1116_v4 = vsel %vm1096_vm14, %v1086_v48, %v1106_v50 }
 0x2da   : > { %v1117_v5 = vsel %vm1097_vm15, %v1087_v43, %v1107_v58  ;;  %v1118_v10 = vsel %vm1098_vm6, %v1088_v51, %v1108_v60  ;;  %v1119_v13 = vsel %vm1099_vm9, %v1089_v49, %v1109_v61  ;;  %v1120_v14 = vsel %vm1100_vm10, %v1090_v55, %v1110_v63  ;;  %v1293_v58 = vld [vmem:[#allocation2 + $0x4] sm:$0xe] }
 0x2db   : > { %v1121_v16 = vsel %vm1101_vm4, %v1091_v52, %v1111_v1  ;;  %v1122_v17 = vsel %vm1102_vm3, %v1092_v56, %v1112_v2  ;;  %v1142_v18 = vmul.f32 %v1115_v3, %v7221_v46  ;;  %v1143_v19 = vmul.f32 %v1116_v4, %v7219_v44  ;;  %vm7406_vm3 = vmor %vm1127_vm7, %vm1181_vm0 }
 0x2dc   : > { %v1141_v21 = vmul.f32 %v1114_v6, %v7209_v39  ;;  %v1144_v42 = vmul.f32 %v1117_v5, %v7236_v54  ;;  %v1145_v22 = vmul.f32 %v1118_v10, %v7244_v59  ;;  %v1146_v23 = vmul.f32 %v1119_v13, %v7258_v7 }
 0x2dd   : > { %v6082_v24 = vpack.c.bf16 %v1142_v18, %v1142_v18  ;;  %v6083_v25 = vpack.c.bf16 %v1143_v19, %v1143_v19  ;;  %v1147_v28 = vmul.f32 %v1120_v14, %v7268_v15  ;;  %v1148_v29 = vmul.f32 %v1121_v16, %v7281_v30 }
 0x2de   : > { %v6081_v32 = vpack.c.bf16 %v1141_v21, %v1141_v21  ;;  %v6084_v33 = vpack.c.bf16 %v1144_v42, %v1144_v42  ;;  %v6085_v34 = vpack.c.bf16 %v1145_v22, %v1145_v22  ;;  %v6086_v35 = vpack.c.bf16 %v1146_v23, %v1146_v23 }
 0x2df   : > { %v1193_v36 = vshrl.u32 %v6082_v24, 16  ;;  %v1196_v37 = vshll.u32 %v6082_v24, 16  ;;  %v1203_v38 = vshrl.u32 %v6083_v25, 16  ;;  %v1206_v40 = vshll.u32 %v6083_v25, 16 }
 0x2e0   : > { %v1184_v41 = vshrl.u32 %v6081_v32, 16  ;;  %v1187_v45 = vshll.u32 %v6081_v32, 16  ;;  %v1213_v47 = vshrl.u32 %v6084_v33, 16  ;;  %v1216_v48 = vshll.u32 %v6084_v33, 16 }
 0x2e1   : > { %v1195_v43 = vrot.slane %v1193_v36, 6  ;;  %v1198_v51 = vrot.slane %v1196_v37, 7  ;;  %v1205_v49 = vrot.slane %v1203_v38, 6  ;;  %v1208_v55 = vrot.slane %v1206_v40, 7 }
 0x2e2   : > { %v1186_v52 = vrot.slane %v1184_v41, 6  ;;  %v1189_v57 = vrot.slane %v1187_v45, 7  ;;  %v1215_v56 = vrot.slane %v1213_v47, 6  ;;  %v1218_v62 = vrot.slane %v1216_v48, 7  ;;  %v1308_v48 = vld [vmem:[#allocation2] sm:$0xf] }
 0x2e3   : > { %v1199_v27 = vor.u32 %v1198_v51, %v1195_v43  ;;  %v1209_v50 = vor.u32 %v1208_v55, %v1205_v49  ;;  %v1223_v60 = vshrl.u32 %v6085_v34, 16  ;;  %v1226_v61 = vshll.u32 %v6085_v34, 16  ;;  %v1596_v43 = vld [vmem:[#allocation2] sm:$0xe] }
 0x2e4   : > { %v9047_v63 = vmov 0  ;;  %v1190_v6 = vor.u32 %v1189_v57, %v1186_v52  ;;  %v1219_v1 = vor.u32 %v1218_v62, %v1215_v56  ;;  %v6087_v2 = vpack.c.bf16 %v1147_v28, %v1147_v28 }
 0x2e5   : > { %v9048_v63 = vsel %vm7406_vm3, 4294967295, %v9047_v63  ;;  %v1233_v3 = vshrl.u32 %v6086_v35, 16  ;;  %v1201_v4 = vrot.slane %v1199_v27, 4  ;;  %v1211_v5 = vrot.slane %v1209_v50, 4 }
 0x2e6   : > { %9049 = vst [vmem:[#allocation5_spill] sm:$0xff] %v9048_v63  ;;  %v1225_v10 = vrot.slane %v1223_v60, 6  ;;  %v1228_v13 = vrot.slane %v1226_v61, 7  ;;  %v1191_v14 = vrot.slane %v1190_v6, 4  ;;  %v1294_v16 = vsel %vm7357_vm11, %v1190_v6, %v1293_v58 }
 0x2e7   : > { %v1221_v18 = vrot.slane %v1219_v1, 4  ;;  %v1235_v19 = vrot.slane %v1233_v3, 6  ;;  %v1210_v21 = vsel %vm7406_vm3, %v1201_v4, %v1209_v50  ;;  %1295 = vst [vmem:[#allocation2 + $0x4] sm:$0xe] %v1294_v16  ;;  %v1220_v42 = vsel %vm7406_vm3, %v1211_v5, %v1219_v1 }
 0x2e8   : > { %v1229_v22 = vor.u32 %v1228_v13, %v1225_v10  ;;  %v1236_v23 = vshll.u32 %v6086_v35, 16  ;;  %v1200_v24 = vsel %vm7406_vm3, %v1191_v14, %v1199_v27  ;;  %1297 = vst.msk [vmem:[#allocation2 + $0xc] sm:$0xf] %vm1124_vm5, %v1210_v21  ;;  %1298 = vst.msk [vmem:[#allocation2 + $0x10] sm:$0xf] %vm1124_vm5, %v1220_v42  ;;  %v1243_v25 = vshrl.u32 %v6087_v2, 16 }
 0x2e9   : > { %v1246_v28 = vshll.u32 %v6087_v2, 16  ;;  %v1149_v32 = vmul.f32 %v1122_v17, %v7294_v53  ;;  %1296 = vst.msk [vmem:[#allocation2 + $0x8] sm:$0xf] %vm1124_vm5, %v1200_v24  ;;  %v6088_v37 = vpack.c.bf16 %v1148_v29, %v1148_v29  ;;  %vm1103_vm0 = vcmp.gt.f32.partialorder %v7385_v12, 0.0 }
 0x2ea   : > { %v1230_v33 = vsel %vm7406_vm3, %v1221_v18, %v1229_v22  ;;  %v1231_v34 = vrot.slane %v1229_v22, 4  ;;  %v1238_v36 = vrot.slane %v1236_v23, 7  ;;  %v1245_v35 = vrot.slane %v1243_v25, 6 }
 0x2eb   : > { %1299 = vst.msk [vmem:[#allocation2 + $0x14] sm:$0xf] %vm1124_vm5, %v1230_v33  ;;  %v1248_v38 = vrot.slane %v1246_v28, 7  ;;  %v6089_v40 = vpack.c.bf16 %v1149_v32, %v1149_v32  ;;  %v1253_v45 = vshrl.u32 %v6088_v37, 16  ;;  %v1256_v47 = vshll.u32 %v6088_v37, 16  ;;  %v6853_v33 = vld [vmem:[%s9013_s6 + $0x8] sm:$0xff]  }
 0x2ec   : > { %v1239_v41 = vor.u32 %v1238_v36, %v1235_v19  ;;  %v1113_v17 = vmul.f32 0.2, %v7385_v12  ;;  %vm9040_vm4 = vcmask 1046528   ;;  %v6859_v19 = vld [vmem:[%s9013_s6 + $0x48] sm:$0xff]   ;;  %vm1356_vm7 = vsmask.f32 7424 }
 0x2ed   : > { %v1249_v51 = vor.u32 %v1248_v38, %v1245_v35  ;;  %v1263_v49 = vshrl.u32 %v6089_v40, 16  ;;  %v1266_v55 = vshll.u32 %v6089_v40, 16  ;;  %v1255_v57 = vrot.slane %v1253_v45, 6  ;;  %v6860_v37 = vld [vmem:[%s9013_s6 + $0x40] sm:$0xff]  }
 0x2ee   : > { %v1240_v29 = vsel %vm7406_vm3, %v1231_v34, %v1239_v41  ;;  %v1241_v52 = vrot.slane %v1239_v41, 4  ;;  %v1258_v56 = vrot.slane %v1256_v47, 7  ;;  %v1309_v62 = vld [vmem:[#allocation2 + $0x4] sm:$0xf]  ;;  %v1123_v60 = vsel %vm1103_vm0, %v7385_v12, %v1113_v17 }
 0x2ef   : > { %1300 = vst.msk [vmem:[#allocation2 + $0x18] sm:$0xf] %vm1124_vm5, %v1240_v29  ;;  %v1251_v27 = vrot.slane %v1249_v51, 4  ;;  %v1265_v50 = vrot.slane %v1263_v49, 6  ;;  %v1268_v58 = vrot.slane %v1266_v55, 7  ;;  %v7433_v61 = vcombine.low %v1308_v48, %v1309_v62  ;;  %v6856_v48 = vld [vmem:[%s9013_s6] sm:$0xff]  }
 0x2f0   : > { %v5775_v6 = vcombine.low %v1596_v43, %v1309_v62  ;;  %v1250_v1 = vsel %vm7406_vm3, %v1241_v52, %v1249_v51  ;;  %v1259_v2 = vor.u32 %v1258_v56, %v1255_v57  ;;  %v7437_v3 = vld [vmem:[#allocation2 + $0x8] sm:$0xff]   ;;  %v1150_v4 = vmul.f32 %v1123_v60, %v7306_v8 }
 0x2f1   : > { %1301 = vst.msk [vmem:[#allocation2 + $0x1c] sm:$0xf] %vm1124_vm5, %v1250_v1  ;;  %v1360_v10 = vshll.u32 %v7433_v61, 16  ;;  %v1607_v13 = vrot.slane %v7437_v3, 1  ;;  %v1365_v14 = vshll.u32 %v7437_v3, 16  ;;  %v1269_v18 = vor.u32 %v1268_v58, %v1265_v50 }
 0x2f2   : > { %v1606_v5 = vrot.slane %v5775_v6, 1  ;;  %v1260_v12 = vsel %vm7406_vm3, %v1251_v27, %v1259_v2  ;;  %v1261_v16 = vrot.slane %v1259_v2, 4  ;;  %v1358_v21 = vshrl.u32 %v7433_v61, 16  ;;  %v7452_v24 = vld [vmem:[#allocation2 + $0x10] sm:$0xff]   ;;  %v1305_v57 = vld [vmem:[#allocation2 + $0x2c] sm:$0x3] }
 0x2f3   : > { %1302 = vst.msk [vmem:[#allocation2 + $0x20] sm:$0xf] %vm1124_vm5, %v1260_v12  ;;  %v1362_v42 = vrot.slane %v1360_v10, 1  ;;  %v1367_v23 = vrot.slane %v1365_v14, 1  ;;  %v6090_v28 = vpack.c.bf16 %v1150_v4, %v1150_v4  ;;  %v1609_v38 = vrot.slane %v7452_v24, 1  ;;  %v7498_v2 = vld [vmem:[#allocation2 + $0xc] sm:$0xff]  }
 0x2f4   : > { %v1608_v22 = vsel %vm9040_vm4, %v1606_v5, %v1607_v13  ;;  %v1270_v25 = vsel %vm7406_vm3, %v1261_v16, %v1269_v18  ;;  %v1271_v40 = vrot.slane %v1269_v18, 4  ;;  %v1369_v47 = vshrl.u32 %v7437_v3, 16  ;;  %v1728_v58 = vld [vmem:[#allocation2 + $0x8] sm:$0xf]  ;;  %v1727_v1 = vld [vmem:[#allocation2 + $0x4] sm:$0xe] }
 0x2f5   : > { %6336 = vmatmul.mubr.msk.bf16.vlgmr.msra.gmra.mxu0 %vm832_vm2, %v1608_v22  ;;  %v1363_v32 = vor.u32 %v1362_v42, %v1358_v21  ;;  %1303 = vst.msk [vmem:[#allocation2 + $0x24] sm:$0xf] %vm1124_vm5, %v1270_v25  ;;  %v1273_v34 = vshrl.u32 %v6090_v28, 16  ;;  %v1276_v36 = vshll.u32 %v6090_v28, 16  ;;  %v1373_v17 = vshll.u32 %v7452_v24, 16 }
 0x2f6   : > { %6339 = vmatprep.mubr.msk.bf16.mxu0 %vm6997_vm1, %v9028_v31  ;;  %6380 = vmatpush3.bf16.msra.mxu0 %v6859_v19  ;;  %v1371_v51 = vor.u32 %v1369_v47, %v1367_v23  ;;  %v1610_v49 = vsel %vm9040_vm4, %v1607_v13, %v1609_v38  ;;  %v1377_v60 = vshrl.u32 %v7452_v24, 16  ;;  %v7502_v10 = vcombine.low %v1727_v1, %v1728_v58 }
 0x2f7   : > { %v1368_v35 = vsel %vm1356_vm7, %v1363_v32, %v1367_v23  ;;  %6381 = vmatprep.subr.bf16.mxu0 %v9028_v31  ;;  %v1275_v41 = vrot.slane %v1273_v34, 6  ;;  %v1278_v45 = vrot.slane %v1276_v36, 7  ;;  %v1375_v56 = vrot.slane %v1373_v17, 1  ;;  %v2065_v23 = vld [vmem:[#allocation2 + $0x4] sm:$0xc] }
 0x2f8   : > { %6288 = vmatmul.mubr.msk.bf16.vlgmr.msra.gmra.mxu1 %vm832_vm2, %v1368_v35  ;;  %v7480_v55 = vld [vmem:[#allocation2 + $0x18] sm:$0xff]   ;;  %v1911_v14 = vshrl.u32 %v7498_v2, 16  ;;  %v1903_v19 = vshrl.u32 %v7502_v10, 16  ;;  %v1914_v21 = vshll.u32 %v7498_v2, 16  ;;  %v1906_v22 = vshll.u32 %v7502_v10, 16 }
 0x2f9   : > { %6308 = vmatpush3.bf16.msra.mxu1 %v6853_v33  ;;  %6291 = vmatprep.mubr.msk.bf16.mxu1 %vm6997_vm1, %v9028_v31  ;;  %v1279_v43 = vor.u32 %v1278_v45, %v1275_v41  ;;  %v1376_v62 = vsel %vm1356_vm7, %v1371_v51, %v1375_v56  ;;  %v1611_v50 = vrot.slane %v7480_v55, 1  ;;  %v1381_v6 = vshll.u32 %v7480_v55, 16  ;;  %v7519_v33 = vld [vmem:[#allocation2 + $0x14] sm:$0xff]   ;;  %v2196_v34 = vld [vmem:[#allocation2 + $0x8] sm:$0xc] }
 0x2fa   : > { %6309 = vmatprep.subr.bf16.mxu1 %v9028_v31  ;;  %6382 = vmatpush3.bf16.msra.mxu0 %v6860_v37  ;;  %v1379_v4 = vor.u32 %v1377_v60, %v1375_v56  ;;  %v1385_v25 = vshrl.u32 %v7480_v55, 16  ;;  %v5816_v32 = vcombine.low %v2065_v23, %v1728_v58  ;;  %vm9039_vm12 = vcmask 1045504   ;;  %v7525_v41 = vld [vmem:[#allocation2 + $0xc] sm:$0xf]  ;;  %v7542_v56 = vld [vmem:[#allocation2 + $0x10] sm:$0xff]  }
 0x2fb   : > { %6427 = vmatprep.subr.bf16.mxu0 %v9028_v31  ;;  %v1280_v29 = vsel %vm7406_vm3, %v1271_v40, %v1279_v43  ;;  %v1281_v52 = vrot.slane %v1279_v43, 4  ;;  %v1612_v12 = vsel %vm9040_vm4, %v1609_v38, %v1611_v50  ;;  %v1383_v13 = vrot.slane %v1381_v6, 1  ;;  %v7523_v40 = vld [vmem:[#allocation2 + $0x1c] sm:$0xff]  }
 0x2fc   : > { %1304 = vst.msk [vmem:[#allocation2 + $0x28] sm:$0xf] %vm1124_vm5, %v1280_v29  ;;  %v7500_v5 = vld [vmem:[#allocation2 + $0x20] sm:$0xff]   ;;  %v7521_v35 = vrot.slane %v1903_v19, 1  ;;  %v1913_v38 = vrot.slane %v1911_v14, 1  ;;  %v7529_v17 = vrot.slane %v1906_v22, 2 }
 0x2fd   : > { %6340 = vmatmul.mubr.msk.bf16.gmra.mxu0 %vm832_vm2, %v1610_v49  ;;  %6310 = vmatpush3.bf16.msra.mxu1 %v6856_v48  ;;  %v1306_v27 = vsel %vm7347_vm8, %v1281_v52, %v1305_v57  ;;  %v1384_v16 = vsel %vm1356_vm7, %v1379_v4, %v1383_v13  ;;  %v1389_v18 = vshll.u32 %v7500_v5, 16  ;;  %v1613_v42 = vrot.slane %v7500_v5, 1 }
 0x2fe   : > { %6343 = vmatprep.mubr.msk.bf16.mxu0 %vm6997_vm1, %v9028_v31  ;;  %6355 = vmatprep.subr.bf16.mxu1 %v9028_v31  ;;  %1307 = vst [vmem:[#allocation2 + $0x2c] sm:$0x3] %v1306_v27  ;;  %v1387_v36 = vor.u32 %v1385_v25, %v1383_v13  ;;  %v1393_v47 = vshrl.u32 %v7500_v5, 16  ;;  %v1916_v48 = vrot.slane %v1914_v21, 2  ;;  %v2075_v29 = vrot.slane %v5816_v32, 2 }
 0x2ff   : > { %v1391_v37 = vrot.slane %v1389_v18, 1  ;;  %v1614_v45 = vsel %vm9040_vm4, %v1611_v50, %v1613_v42  ;;  %vm9037_vm13 = vsmask.f32 5376  ;;  %v1920_v52 = vshrl.u32 %v7519_v33, 16  ;;  %v7562_v18 = vld [vmem:[#allocation2 + $0x20] sm:$0xff]  }
 0x300   : > { %6292 = vmatmul.mubr.msk.bf16.gmra.mxu1 %vm832_vm2, %v1376_v62  ;;  %v7540_v57 = vcombine.low %v2196_v34, %v7525_v41  ;;  %v2076_v62 = vrot.slane %v7498_v2, 2  ;;  %v2078_v27 = vrot.slane %v7519_v33, 2  ;;  %v2080_v6 = vrot.slane %v7523_v40, 2 }
 0x301   : > { %6295 = vmatprep.mubr.msk.bf16.mxu1 %vm6997_vm1, %v9028_v31  ;;  %v1392_v50 = vsel %vm1356_vm7, %v1387_v36, %v1391_v37  ;;  %v1395_v60 = vor.u32 %v1393_v47, %v1391_v37  ;;  %v7549_v1 = vor.u32 %v1916_v48, %v1913_v38  ;;  %v1923_v4 = vshll.u32 %v7519_v33, 16 }
 0x302   : > { %v7556_v13 = vsel %vm9039_vm12, %v2076_v62, %v2078_v27  ;;  %v7565_v19 = vsel %vm9039_vm12, %v2078_v27, %v2080_v6  ;;  %v2372_v25 = vshrl.u32 %v7540_v57, 16  ;;  %v2380_v32 = vshrl.u32 %v7542_v56, 16 }
 0x303   : > { %v6858_v28 = vld [vmem:[#allocation2 + $0x28] ss:$0 sps:$4 sm:$0x11]   ;;  %v2383_v34 = vshll.u32 %v7542_v56, 16  ;;  %vm9038_vm14 = vsmask.f32 6400 }
 0x304   : > { %v1397_v43 = vshll.u32 %v6858_v28, 16  ;;  %v7532_v51 = vld [vmem:[#allocation2 + $0x24] sm:$0xff]   ;;  %v1615_v58 = vrot.slane %v6858_v28, 1  ;;  %v2375_v28 = vshll.u32 %v7540_v57, 16  ;;  %v2374_v47 = vrot.slane %v2372_v25, 2 }
 0x305   : > { %6344 = vmatmul.mubr.msk.bf16.gmra.mxu0 %vm832_vm2, %v1612_v12  ;;  %v7534_v49 = vld [vmem:[#allocation2 + $0x2c] ss:$0 sps:$4 sm:$0x33]   ;;  %v7553_v12 = vsel %vm9039_vm12, %v2075_v29, %v2076_v62  ;;  %v2082_v21 = vrot.slane %v7532_v51, 2  ;;  %v2385_v29 = vrot.slane %v2383_v34, 3  ;;  %vm9036_vm15 = vcmask 1044480  }
 0x306   : > { %6347 = vmatprep.mubr.msk.bf16.mxu0 %vm6997_vm1, %v9028_v31  ;;  %v1399_v14 = vrot.slane %v1397_v43, 1  ;;  %v2084_v22 = vrot.slane %v7534_v49, 2  ;;  %v7569_v23 = vld [vmem:[#allocation2 + $0x28] sm:$0xff]   ;;  %v1616_v36 = vsel %vm9040_vm4, %v1613_v42, %v1615_v58  ;;  %v2377_v48 = vrot.slane %v2375_v28, 3 }
 0x307   : > { %v7578_v38 = vsel %vm9039_vm12, %v2080_v6, %v2082_v21  ;;  %v2382_v43 = vrot.slane %v2380_v32, 2  ;;  %v2398_v42 = vshrl.u32 %v7562_v18, 16  ;;  %v2407_v6 = vshrl.u32 %v7569_v23, 16 }
 0x308   : > { %6296 = vmatmul.mubr.msk.bf16.gmra.mxu1 %vm832_vm2, %v1384_v16  ;;  %v7560_v16 = vld [vmem:[#allocation2 + $0x18] sm:$0xff]   ;;  %v1400_v37 = vsel %vm1356_vm7, %v1395_v60, %v1399_v14  ;;  %v2378_v58 = vor.u32 %v2377_v48, %v2374_v47  ;;  %v2410_v14 = vshll.u32 %v7569_v23, 16  ;;  %v1909_v32 = vor.u32 %v7529_v17, %v7521_v35 }
 0x309   : > { %6299 = vmatprep.mubr.msk.bf16.mxu1 %vm6997_vm1, %v9028_v31  ;;  %v2389_v62 = vshrl.u32 %v7560_v16, 16  ;;  %v2392_v27 = vshll.u32 %v7560_v16, 16  ;;  %v2386_v60 = vor.u32 %v2385_v29, %v2382_v43  ;;  %v2400_v25 = vrot.slane %v2398_v42, 2  ;;  %v6869_v43 = vld [vmem:[%s9013_s6 + $0x68] sm:$0xff]  }
 0x30a   : > { %v2412_v0 = vrot.slane %v2410_v14, 3  ;;  %v1918_v17 = vsel %vm9038_vm14, %v1909_v32, %v7549_v1  ;;  %vm9051_vm6 = vcmask 130048  }
 0x30b   : > { %v7596_v34 = vsel %vm9037_vm13, %v2378_v58, %v2386_v60  ;;  %v1932_v58 = vshll.u32 %v7523_v40, 16  ;;  %vm9052_vm9 = vmmov %vm9051_vm6 }
 0x30c   : > { %vm9053_vm10 = vmmov %vm9051_vm6 }
 0x30d   : > { %6348 = vmatmul.mubr.msk.bf16.gmra.mxu0 %vm832_vm2, %v1614_v45  ;;  %v7581_v45 = vsel %vm9039_vm12, %v2082_v21, %v2084_v22  ;;  %v2391_v21 = vrot.slane %v2389_v62, 2  ;;  %v2394_v22 = vrot.slane %v2392_v27, 3  ;;  %v1922_v62 = vrot.slane %v1920_v52, 1  ;;  %vm9054_vm0 = vmmov %vm9051_vm6 }
 0x30e   : > { %6351 = vmatprep.mubr.msk.bf16.mxu0 %vm6997_vm1, %v9028_v31  ;;  %v1925_v27 = vrot.slane %v1923_v4, 2  ;;  %v1929_v4 = vshrl.u32 %v7523_v40, 16  ;;  %v1934_v14 = vrot.slane %v1932_v58, 2  ;;  %v1774_v58 = vrot.slane %v7519_v33, 1 }
 0x30f   : > { %v2395_v47 = vor.u32 %v2394_v22, %v2391_v21  ;;  %v1938_v22 = vshrl.u32 %v7532_v51, 16  ;;  %v1776_v33 = vrot.slane %v7523_v40, 1 }
 0x310   : > { %6300 = vmatmul.mubr.msk.bf16.gmra.mxu1 %vm832_vm2, %v1392_v50  ;;  %v2401_v50 = vshll.u32 %v7562_v18, 16  ;;  %v1926_v52 = vor.u32 %v1925_v27, %v1922_v62  ;;  %v2240_v62 = vrot.slane %v7540_v57, 2  ;;  %v2241_v27 = vrot.slane %v7542_v56, 2  ;;  %v6881_v57 = vld [vmem:[%s9013_s6 + $0x80] sm:$0xff]  }
 0x311   : > { %6303 = vmatprep.mubr.msk.bf16.mxu1 %vm6997_vm1, %v9028_v31 }
 0x312   : > { %v2403_v28 = vrot.slane %v2401_v50, 3  ;;  %v6870_v50 = vld [vmem:[%s9013_s6 + $0x60] sm:$0xff]  }
 0x314   : > { %v2404_v48 = vor.u32 %v2403_v28, %v2400_v25  ;;  %v1941_v25 = vshll.u32 %v7532_v51, 16  ;;  %v1940_v28 = vrot.slane %v1938_v22, 1  ;;  %v1777_v22 = vsel %vm9040_vm4, %v1774_v58, %v1776_v33 }
 0x315   : > { %6352 = vmatmul.mubr.msk.bf16.gmra.mxu0 %vm832_vm2, %v1616_v36  ;;  %v2409_v36 = vrot.slane %v2407_v6, 2  ;;  %v1931_v6 = vrot.slane %v1929_v4, 1  ;;  %v6876_v4 = vld [vmem:[%s9013_s6 + $0x50] sm:$0xff]  }
 0x316   : > { %6383 = vmatprep.mubr.msk.bf16.mxu0 %vm6997_vm1, %v9028_v31  ;;  %v7609_v35 = vsel %vm9037_vm13, %v2395_v47, %v2404_v48  ;;  %v1943_v32 = vrot.slane %v1941_v25, 2  ;;  %v2247_v25 = vrot.slane %v7569_v23, 2 }
 0x317   : > { %v7603_v29 = vor.u32 %v2412_v0, %v2409_v36  ;;  %v6863_v0 = vld [vmem:[%s9013_s6 + $0x38] sm:$0xff]   ;;  %v1935_v21 = vor.u32 %v1934_v14, %v1931_v6  ;;  %v1947_v36 = vshrl.u32 %v7534_v49, 16  ;;  %v2245_v14 = vrot.slane %v7562_v18, 2 }
 0x318   : > { %6304 = vmatmul.mubr.msk.bf16.gmra.mxu1 %vm832_vm2, %v1400_v37  ;;  %v7606_v37 = vsel %vm9037_vm13, %v2386_v60, %v2395_v47  ;;  %v6866_v60 = vld [vmem:[%s9013_s6 + $0x30] sm:$0xff]   ;;  %v1950_v47 = vshll.u32 %v7534_v49, 16 }
 0x319   : > { %6311 = vmatprep.mubr.msk.bf16.mxu1 %vm6997_vm1, %v9028_v31  ;;  %v7617_v42 = vsel %vm9037_vm13, %v2404_v48, %v7603_v29  ;;  %v2248_v40 = vsel %vm9039_vm12, %v2245_v14, %v2247_v25 }
 0x31d   : > { %6384 = vmatmul.mubr.msk.bf16.vlgmr.msra.gmra.mxu0 %vm832_vm2, %v1918_v17  ;;  %v1952_v17 = vrot.slane %v1950_v47, 2  ;;  %v2534_v47 = vld [vmem:[#allocation2 + $0x8] sm:$0x8] }
 0x31e   : > { %6387 = vmatprep.mubr.msk.bf16.mxu0 %vm6997_vm1, %v9028_v31  ;;  %6428 = vmatpush3.bf16.msra.mxu0 %v6869_v43  ;;  %v1949_v43 = vrot.slane %v1947_v36, 1 }
 0x31f   : > { %6429 = vmatprep.subr.bf16.mxu0 %v9028_v31 }
 0x320   : > { %6312 = vmatmul.mubr.msk.bf16.vlgmr.msra.gmra.mxu1 %vm832_vm2, %v7433_v61  ;;  %v1927_v61 = vsel %vm9038_vm14, %v7549_v1, %v1926_v52  ;;  %v1936_v1 = vsel %vm9038_vm14, %v1926_v52, %v1935_v21  ;;  %v2242_v52 = vsel %vm9039_vm12, %v2240_v62, %v2241_v27 }
 0x321   : > { %6356 = vmatpush3.bf16.msra.mxu1 %v6863_v0  ;;  %6315 = vmatprep.mubr.msk.bf16.mxu1 %vm6997_vm1, %v9028_v31  ;;  %v1771_v0 = vrot.slane %v7502_v10, 1 }
 0x322   : > { %6357 = vmatprep.subr.bf16.mxu1 %v9028_v31  ;;  %6430 = vmatpush3.bf16.msra.mxu0 %v6870_v50  ;;  %v1772_v50 = vrot.slane %v7498_v2, 1  ;;  %v2243_v2 = vrot.slane %v7560_v16, 2 }
 0x323   : > { %6475 = vmatprep.subr.bf16.mxu0 %v9028_v31 }
 0x324   : > { %v1773_v10 = vsel %vm9040_vm4, %v1771_v0, %v1772_v50  ;;  %v1775_v6 = vsel %vm9040_vm4, %v1772_v50, %v1774_v58  ;;  %v6890_v0 = vld [vmem:[%s9013_s6 + $0x70] sm:$0xff]   ;;  %v6887_v50 = vld [vmem:[%s9009_s2 + $0x28] sm:$0xff]   ;;  %v6895_v58 = vld [vmem:[%s9009_s2 + $0x40] sm:$0xff]  }
 0x325   : > { %6388 = vmatmul.mubr.msk.bf16.gmra.mxu0 %vm832_vm2, %v1927_v61  ;;  %6358 = vmatpush3.bf16.msra.mxu1 %v6866_v60  ;;  %v9050_v60 = vmov 0   ;;  %v2244_v61 = vsel %vm9039_vm12, %v2241_v27, %v2243_v2  ;;  %v6884_v27 = vld [vmem:[%s9013_s6 + $0x78] sm:$0xff]  }
 0x326   : > { %6391 = vmatprep.mubr.msk.bf16.mxu0 %vm6997_vm1, %v9028_v31  ;;  %6403 = vmatprep.subr.bf16.mxu1 %v9028_v31 }
 0x328   : > { %6316 = vmatmul.mubr.msk.bf16.gmra.mxu1 %vm832_vm2, %v7437_v3  ;;  %v1944_v3 = vor.u32 %v1943_v32, %v1940_v28  ;;  %v6878_v28 = vld [vmem:[#allocation2 + $0x30] ss:$0 sps:$4 sm:$0x33]  }
 0x329   : > { %6319 = vmatprep.mubr.msk.bf16.mxu1 %vm6997_vm1, %v9028_v31  ;;  %v2249_v36 = vrot.slane %v6878_v28, 2  ;;  %v6908_v28 = vld [vmem:[%s7108_s30 + $0x94] ss:$8 sps:$4 sm:$0xff]  }
 0x32a   : > { %v1945_v48 = vsel %vm9038_vm14, %v1935_v21, %v1944_v3  ;;  %v2246_v21 = vsel %vm9039_vm12, %v2243_v2, %v2245_v14  ;;  %v6899_v14 = vld [vmem:[%s7108_s30 + $0x64] ss:$8 sps:$4 sm:$0xff]  }
 0x32d   : > { %6392 = vmatmul.mubr.msk.bf16.gmra.mxu0 %vm832_vm2, %v1936_v1  ;;  %v1778_v1 = vrot.slane %v7532_v51, 1  ;;  %v2250_v51 = vsel %vm9039_vm12, %v2247_v25, %v2249_v36  ;;  %v6904_v25 = vld [vmem:[%s7108_s30 + $0x70] ss:$8 sps:$4 sm:$0xff]  }
 0x32e   : > { %6395 = vmatprep.mubr.msk.bf16.mxu0 %vm6997_vm1, %v9028_v31 }
 0x32f   : > { %v1779_v32 = vsel %vm9040_vm4, %v1776_v33, %v1778_v1  ;;  %v7844_v33 = vld [vmem:[%s9017_s10 + $0x18] sm:$0xff] }
 0x330   : > { %6320 = vmatmul.mubr.msk.bf16.gmra.mxu1 %vm832_vm2, %v7452_v24  ;;  %v1953_v24 = vor.u32 %v1952_v17, %v1949_v43  ;;  %v5857_v43 = vcombine.low %v2534_v47, %v7525_v41  ;;  %v6885_v41 = vld [vmem:[%s9009_s2 + $0x38] sm:$0xff]  }
 0x331   : > { %6323 = vmatprep.mubr.msk.bf16.mxu1 %vm6997_vm1, %v9028_v31  ;;  %v6910_v47 = vld [vmem:[%s7108_s30 + $0x90] ss:$8 sps:$4 sm:$0xff]  }
 0x332   : > { %v1954_v49 = vsel %vm9038_vm14, %v1944_v3, %v1953_v24  ;;  %v6880_v3 = vld [vmem:[#allocation2 + $0x2c] ss:$0 sps:$4 sm:$0x11]   ;;  %v2544_v24 = vrot.slane %v5857_v43, 3 }
 0x335   : > { %6396 = vmatmul.mubr.msk.bf16.gmra.mxu0 %vm832_vm2, %v1945_v48  ;;  %v1780_v48 = vrot.slane %v6880_v3, 1 }
 0x336   : > { %6399 = vmatprep.mubr.msk.bf16.mxu0 %vm6997_vm1, %v9028_v31 }
 0x337   : > { %v1781_v17 = vsel %vm9040_vm4, %v1778_v1, %v1780_v48  ;;  %v6905_v1 = vld [vmem:[%s7108_s30 + $0x84] ss:$8 sps:$4 sm:$0xff]  }
 0x338   : > { %6324 = vmatmul.mubr.msk.bf16.gmra.mxu1 %vm832_vm2, %v7480_v55  ;;  %v6879_v55 = vld [vmem:[%s9013_s6 + $0x88] sm:$0xff]  }
 0x339   : > { %6327 = vmatprep.mubr.msk.bf16.mxu1 %vm6997_vm1, %v9028_v31 }
 0x33d   : > { %6400 = vmatmul.mubr.msk.bf16.gmra.mxu0 %vm832_vm2, %v1954_v49  ;;  %v2545_v49 = vrot.slane %v7542_v56, 3  ;;  %v6886_v56 = vld [vmem:[%s9009_s2 + $0x30] sm:$0xff]  }
 0x33e   : > { %6431 = vmatprep.mubr.msk.bf16.mxu0 %vm6997_vm1, %v9028_v31 }
 0x33f   : > { %v2546_v62 = vsel %vm9036_vm15, %v2544_v24, %v2545_v49 }
 0x340   : > { %6328 = vmatmul.mubr.msk.bf16.gmra.mxu1 %vm832_vm2, %v7500_v5  ;;  %v6873_v5 = vld [vmem:[%s9013_s6 + $0x58] sm:$0xff]  }
 0x341   : > { %6359 = vmatprep.mubr.msk.bf16.mxu1 %vm6997_vm1, %v9028_v31 }
 0x345   : > { %6432 = vmatmul.mubr.msk.bf16.vlgmr.msra.gmra.mxu0 %vm832_vm2, %v2242_v52  ;;  %v2549_v52 = vrot.slane %v7562_v18, 3  ;;  %v2551_v18 = vrot.slane %v7569_v23, 3 }
 0x346   : > { %6435 = vmatprep.mubr.msk.bf16.mxu0 %vm6997_vm1, %v9028_v31  ;;  %6476 = vmatpush3.bf16.msra.mxu0 %v6879_v55  ;;  %v2547_v55 = vrot.slane %v7560_v16, 3  ;;  %v6888_v16 = vld [vmem:[%s9009_s2 + $0x20] sm:$0xff]  }
 0x347   : > { %6477 = vmatprep.subr.bf16.mxu0 %v9028_v31  ;;  %v2552_v2 = vsel %vm9036_vm15, %v2549_v52, %v2551_v18 }
 0x348   : > { %6360 = vmatmul.mubr.msk.bf16.vlgmr.msra.gmra.mxu1 %vm832_vm2, %v1773_v10  ;;  %v6892_v10 = vld [vmem:[%s9009_s2 + $0x8] sm:$0xff]  }
 0x349   : > { %6404 = vmatpush3.bf16.msra.mxu1 %v6873_v5  ;;  %6363 = vmatprep.mubr.msk.bf16.mxu1 %vm6997_vm1, %v9028_v31  ;;  %v6889_v5 = vld [vmem:[%s9009_s2 + $0x18] sm:$0xff]  }
 0x34a   : > { %6405 = vmatprep.subr.bf16.mxu1 %v9028_v31  ;;  %6478 = vmatpush3.bf16.msra.mxu0 %v6881_v57  ;;  %v2550_v57 = vsel %vm9036_vm15, %v2547_v55, %v2549_v52 }
 0x34b   : > { %3281 = vmatprep.subr.bf16.mxu0 %v9050_v60 }
 0x34d   : > { %6436 = vmatmul.mubr.msk.bf16.gmra.mxu0 %vm832_vm2, %v2244_v61  ;;  %6406 = vmatpush3.bf16.msra.mxu1 %v6876_v4  ;;  %v6893_v4 = vld [vmem:[#allocation2 + $0x30] ss:$0 sps:$4 sm:$0x77]   ;;  %v6898_v61 = vld [vmem:[%s7108_s30 + $0x54] ss:$8 sps:$4 sm:$0xff]  }
 0x34e   : > { %6439 = vmatprep.mubr.msk.bf16.mxu0 %vm6997_vm1, %v9028_v31  ;;  %6451 = vmatprep.subr.bf16.mxu1 %v9028_v31  ;;  %v2553_v23 = vrot.slane %v6893_v4, 3 }
 0x350   : > { %6364 = vmatmul.mubr.msk.bf16.gmra.mxu1 %vm832_vm2, %v1775_v6  ;;  %v2554_v6 = vsel %vm9036_vm15, %v2551_v18, %v2553_v23 }
 0x351   : > { %6367 = vmatprep.mubr.msk.bf16.mxu1 %vm6997_vm1, %v9028_v31 }
 0x355   : > { %6440 = vmatmul.mubr.msk.bf16.gmra.mxu0 %vm832_vm2, %v2246_v21  ;;  %v7859_v21 = vld [vmem:[%s9017_s10 + $0x8] sm:$0xff] }
 0x356   : > { %6443 = vmatprep.mubr.msk.bf16.mxu0 %vm6997_vm1, %v9028_v31 }
 0x358   : > { %6368 = vmatmul.mubr.msk.bf16.gmra.mxu1 %vm832_vm2, %v1777_v22  ;;  %v7867_v22 = vld [vmem:[%s9017_s10] sm:$0xff] }
 0x359   : > { %6371 = vmatprep.mubr.msk.bf16.mxu1 %vm6997_vm1, %v9028_v31 }
 0x35d   : > { %6444 = vmatmul.mubr.msk.bf16.gmra.mxu0 %vm832_vm2, %v2248_v40  ;;  %v6907_v40 = vld [vmem:[%s7108_s30 + $0x80] ss:$8 sps:$4 sm:$0xff]  }
 0x35e   : > { %6447 = vmatprep.mubr.msk.bf16.mxu0 %vm6997_vm1, %v9028_v31 }
 0x360   : > { %6372 = vmatmul.mubr.msk.bf16.gmra.mxu1 %vm832_vm2, %v1779_v32  ;;  %v2419_v32 = vshll.u32 %v6893_v4, 16 }
 0x361   : > { %6375 = vmatprep.mubr.msk.bf16.mxu1 %vm6997_vm1, %v9028_v31 }
 0x362   : > { %v2421_v36 = vrot.slane %v2419_v32, 3 }
 0x365   : > { %6448 = vmatmul.mubr.msk.bf16.gmra.mxu0 %vm832_vm2, %v2250_v51 }
 0x366   : > { %6479 = vmatprep.mubr.msk.bf16.mxu0 %vm6997_vm1, %v9028_v31 }
 0x368   : > { %6376 = vmatmul.mubr.msk.bf16.gmra.mxu1 %vm832_vm2, %v1781_v17 }
 0x369   : > { %6407 = vmatprep.mubr.msk.bf16.mxu1 %vm6997_vm1, %v9028_v31 }
 0x36d   : > { %6480 = vmatmul.mubr.msk.bf16.vlgmr.msra.gmra.mxu0 %vm832_vm2, %v2546_v62 }
 0x36e   : > { %3282 = vmatpush1.bf16.msra.mxu0 %v6885_v41  ;;  %6483 = vmatprep.mubr.msk.bf16.mxu0 %vm6997_vm1, %v9028_v31 }
 0x36f   : > { %3283 = vmatprep.subr.bf16.mxu0 %v9050_v60 }
 0x370   : > { %6408 = vmatmul.mubr.msk.bf16.vlgmr.msra.gmra.mxu1 %vm832_vm2, %v7553_v12  ;;  %v2548_v12 = vsel %vm9036_vm15, %v2545_v49, %v2547_v55 }
 0x371   : > { %6452 = vmatpush3.bf16.msra.mxu1 %v6884_v27  ;;  %6411 = vmatprep.mubr.msk.bf16.mxu1 %vm6997_vm1, %v9028_v31 }
 0x372   : > { %3284 = vmatpush1.bf16.msra.mxu0 %v6886_v56  ;;  %6453 = vmatprep.subr.bf16.mxu1 %v9028_v31 }
 0x373   : > { %3285 = vmatprep.subr.bf16.mxu0 %v9050_v60 }
 0x375   : > { %6484 = vmatmul.mubr.msk.bf16.gmra.mxu0 %vm832_vm2, %v2548_v12  ;;  %6454 = vmatpush3.bf16.msra.mxu1 %v6890_v0 }
 0x376   : > { %3286 = vmatpush1.bf16.msra.mxu0 %v6887_v50  ;;  %6487 = vmatprep.mubr.msk.bf16.mxu0 %vm6997_vm1, %v9028_v31 }
 0x377   : > { %3287 = vmatprep.subr.bf16.mxu0 %v9050_v60  ;;  %6499 = vmatprep.subr.mxu1 %v9028_v31 }
 0x378   : > { %6412 = vmatmul.mubr.msk.bf16.gmra.mxu1 %vm832_vm2, %v7556_v13  ;;  %v6891_v13 = vld [vmem:[%s9009_s2 + $0x10] sm:$0xff]  }
 0x379   : > { %6415 = vmatprep.mubr.msk.bf16.mxu1 %vm6997_vm1, %v9028_v31 }
 0x37a   : > { %3288 = vmatpush1.bf16.msra.mxu0 %v6888_v16 }
 0x37b   : > { %3289 = vmatprep.subr.bf16.mxu0 %v9050_v60 }
 0x37d   : > { %6488 = vmatmul.mubr.msk.bf16.gmra.mxu0 %vm832_vm2, %v2550_v57 }
 0x37e   : > { %3290 = vmatpush1.bf16.msra.mxu0 %v6889_v5  ;;  %6491 = vmatprep.mubr.msk.bf16.mxu0 %vm6997_vm1, %v9028_v31 }
 0x37f   : > { %3291 = vmatprep.subr.bf16.mxu0 %v9050_v60 }
 0x380   : > { %6416 = vmatmul.mubr.msk.bf16.gmra.mxu1 %vm832_vm2, %v7565_v19  ;;  %v6894_v19 = vld [vmem:[%s9009_s2] sm:$0xff]  }
 0x381   : > { %6419 = vmatprep.mubr.msk.bf16.mxu1 %vm6997_vm1, %v9028_v31 }
 0x382   : > { %3292 = vmatpush1.bf16.msra.mxu0 %v6891_v13 }
 0x383   : > { %3293 = vmatprep.subr.bf16.mxu0 %v9050_v60 }
 0x385   : > { %6492 = vmatmul.mubr.msk.bf16.gmra.mxu0 %vm832_vm2, %v2552_v2 }
 0x386   : > { %3294 = vmatpush1.bf16.msra.mxu0 %v6892_v10  ;;  %6495 = vmatprep.mubr.msk.bf16.mxu0 %vm6997_vm1, %v9028_v31 }
 0x387   : > { %3295 = vmatprep.subr.bf16.mxu0 %v9050_v60 }
 0x388   : > { %6420 = vmatmul.mubr.msk.bf16.gmra.mxu1 %vm832_vm2, %v7578_v38  ;;  %v6896_v38 = vld [vmem:[%s7108_s30 + $0x50] ss:$8 sps:$4 sm:$0xff]  }
 0x389   : > { %6423 = vmatprep.mubr.msk.bf16.mxu1 %vm6997_vm1, %v9028_v31 }
 0x38a   : > { %3296 = vmatpush1.bf16.msra.mxu0 %v6894_v19 }
 0x38b   : > { %3311 = vmatprep.subr.bf16.mxu0 %v9050_v60  ;;  %v6901_v60 = vld [vmem:[%s7108_s30 + $0x60] ss:$8 sps:$4 sm:$0xff]  }
 0x38d   : > { %6496 = vmatmul.mubr.msk.bf16.gmra.mxu0 %vm832_vm2, %v2554_v6 }
 0x38e   : > { %3312 = vmatpush2.bf16.msra.mxu0 %v6895_v58  ;;  %5910 = vmatprep.mubr.msk.bf16.mxu0 %vm9051_vm6, %v6898_v61  ;;  %vm9055_vm6 = vmmov %vm9054_vm0 }
 0x38f   : > { %6553 = vmatprep.subr.bf16.mxu0 %v9028_v31 }
 0x390   : > { %6424 = vmatmul.mubr.msk.bf16.gmra.mxu1 %vm832_vm2, %v7581_v45  ;;  %v6902_v45 = vld [vmem:[%s7108_s30 + $0x74] ss:$8 sps:$4 sm:$0xff]  }
 0x391   : > { %6455 = vmatprep.mubr.msk.bf16.mxu1 %vm6997_vm1, %v9028_v31 }
 0x395   : > { %3314 = vmatmul.mubr.bf16.vlgmr.msra.gmra.mxu0 %v6896_v38 }
 0x396   : > { %5911 = vmatprep.mubr.msk.bf16.mxu0 %vm9052_vm9, %v6899_v14  ;;  %vm9056_vm9 = vcmask 1040384  }
 0x398   : > { %6456 = vmatmul.mubr.msk.bf16.vlgmr.msra.gmra.mxu1 %vm832_vm2, %v7596_v34  ;;  %v7852_v34 = vld [vmem:[%s9017_s10 + $0x10] sm:$0xff] }
 0x399   : > { %6459 = vmatprep.mubr.msk.bf16.mxu1 %vm6997_vm1, %v9028_v31  ;;  %6500 = vmatpush3.msra.mxu1 %v7844_v33 }
 0x39a   : > { %6501 = vmatprep.subr.mxu1 %v9028_v31 }
 0x39b   : > { %6502 = vmatpush3.msra.mxu1 %v7852_v34 }
 0x39c   : > { %6503 = vmatprep.subr.mxu1 %v9028_v31 }
 0x39d   : > { %3322 = vmatmul.mubr.bf16.gmra.mxu0 %v6901_v60  ;;  %6504 = vmatpush3.msra.mxu1 %v7859_v21 }
 0x39e   : > { %5912 = vmatprep.mubr.msk.bf16.mxu0 %vm9053_vm10, %v6902_v45  ;;  %6505 = vmatprep.subr.mxu1 %v9028_v31  ;;  %vm9058_vm10 = vmmov %vm9056_vm9 }
 0x39f   : > { %6506 = vmatpush3.msra.mxu1 %v7867_v22 }
 0x3a0   : > { %6460 = vmatmul.mubr.msk.bf16.gmra.mxu1 %vm832_vm2, %v7606_v37  ;;  %6510 = vmatprep.subr.mxu1 %v9028_v31  ;;  %v2416_v37 = vshrl.u32 %v6893_v4, 16 }
 0x3a1   : > { %6463 = vmatprep.mubr.msk.bf16.mxu1 %vm6997_vm1, %v9028_v31 }
 0x3a2   : > { %v2418_v3 = vrot.slane %v2416_v37, 2 }
 0x3a5   : > { %3330 = vmatmul.mubr.bf16.gmra.mxu0 %v6904_v25 }
 0x3a6   : > { %5913 = vmatprep.mubr.msk.bf16.mxu0 %vm9054_vm0, %v6905_v1  ;;  %vm9059_vm0 = vcmask 64512  }
 0x3a8   : > { %6464 = vmatmul.mubr.msk.bf16.gmra.mxu1 %vm832_vm2, %v7609_v35  ;;  %v2422_v35 = vor.u32 %v2421_v36, %v2418_v3 }
 0x3a9   : > { %6467 = vmatprep.mubr.msk.bf16.mxu1 %vm6997_vm1, %v9028_v31 }
 0x3aa   : > { %v2423_v43 = vsel %vm9037_vm13, %v7603_v29, %v2422_v35 }
 0x3ad   : > { %3338 = vmatmul.mubr.bf16.gmra.mxu0 %v6907_v40 }
 0x3ae   : > { %5914 = vmatprep.mubr.msk.bf16.mxu0 %vm9055_vm6, %v6908_v28 }
 0x3b0   : > { %6468 = vmatmul.mubr.msk.bf16.gmra.mxu1 %vm832_vm2, %v7617_v42 }
 0x3b1   : > { %6471 = vmatprep.mubr.msk.bf16.mxu1 %vm6997_vm1, %v9028_v31 }
 0x3b5   : > { %v1678_v48 = vpop.f32.mrf.mxu0  ;;  %3346 = vmatmul.mubr.bf16.gmra.mxu0 %v6910_v47 }
 0x3b6   : > { %6557 = vmatprep.mubr.msk.bf16.mxu0 %vm6997_vm1, %v9028_v31 }
 0x3b7   : > { %v6337_v51 = vpop.f32.mrf.mxu0 }
 0x3b8   : > { %v1462_v17 = vpop.f32.mrf.mxu1  ;;  %6472 = vmatmul.mubr.msk.bf16.gmra.mxu1 %vm832_vm2, %v2423_v43 }
 0x3b9   : > { %v1681_v24 = vpop.f32.mrf.mxu0  ;;  %6507 = vmatprep.mubr.msk.f32.mxu1 %vm6997_vm1, %v9028_v31 }
 0x3ba   : > { %v6289_v42 = vpop.f32.mrf.mxu1 }
 0x3bb   : > { %v6338_v49 = vpop.f32.mrf.mxu0 }
 0x3bc   : > { %v1465_v41 = vpop.f32.mrf.mxu1 }
 0x3bd   : > { %v1686_v62 = vpop.f32.mrf.mxu0 }
 0x3be   : > { %v6290_v27 = vpop.f32.mrf.mxu1 }
 0x3bf   : > { %v6341_v56 = vpop.f32.mrf.mxu0 }
 0x3c0   : > { %v1470_v55 = vpop.f32.mrf.mxu1 }
 0x3c1   : > { %v1689_v0 = vpop.f32.mrf.mxu0 }
 0x3c2   : > { %v6293_v50 = vpop.f32.mrf.mxu1 }
 0x3c3   : > { %v6342_v12 = vpop.f32.mrf.mxu0 }
 0x3c4   : > { %v1473_v16 = vpop.f32.mrf.mxu1 }
 0x3c5   : > { %v1694_v52 = vpop.f32.mrf.mxu0 }
 0x3c6   : > { %v6294_v29 = vpop.f32.mrf.mxu1 }
 0x3c7   : > { %v6345_v5 = vpop.f32.mrf.mxu0 }
 0x3c8   : > { %v1478_v57 = vpop.f32.mrf.mxu1 }
 0x3c9   : > { %v1697_v13 = vpop.f32.mrf.mxu0 }
 0x3ca   : > { %v6297_v18 = vpop.f32.mrf.mxu1 }
 0x3cb   : > { %v6346_v10 = vpop.f32.mrf.mxu0 }
 0x3cc   : > { %v1481_v2 = vpop.f32.mrf.mxu1 }
 0x3cd   : > { %v1702_v4 = vpop.f32.mrf.mxu0 }
 0x3ce   : > { %v6298_v19 = vpop.f32.mrf.mxu1 }
 0x3cf   : > { %v6349_v23 = vpop.f32.mrf.mxu0 }
 0x3d0   : > { %v1486_v58 = vpop.f32.mrf.mxu1 }
 0x3d1   : > { %v1705_v61 = vpop.f32.mrf.mxu0 }
 0x3d2   : > { %v6301_v6 = vpop.f32.mrf.mxu1 }
 0x3d3   : > { %v6350_v38 = vpop.f32.mrf.mxu0 }
 0x3d4   : > { %v1489_v14 = vpop.f32.mrf.mxu1 }
 0x3d5   : > { %v7897_v60 = vpop.f32.mrf.mxu0 }
 0x3d6   : > { %v6302_v45 = vpop.f32.mrf.mxu1 }
 0x3d7   : > { %v6353_v25 = vpop.f32.mrf.mxu0 }
 0x3d8   : > { %v1494_v1 = vpop.f32.mrf.mxu1 }
 0x3d9   : > { %v7899_v40 = vpop.f32.mrf.mxu0 }
 0x3da   : > { %v6305_v28 = vpop.f32.mrf.mxu1 }
 0x3db   : > { %v6354_v37 = vpop.f32.mrf.mxu0 }
 0x3dc   : > { %v1497_v32 = vpop.f32.mrf.mxu1 }
 0x3dd   : > { %v7901_v3 = vpop.f32.mrf.mxu0 }
 0x3de   : > { %v6306_v36 = vpop.f32.mrf.mxu1 }
 0x3df   : > { %v6385_v47 = vpop.f32.mrf.mxu0 }
 0x3e0   : > { %v1557_v35 = vpop.f32.mrf.mxu1 }
 0x3e1   : > { %v1558_v51 = vadd.f32 %v1557_v35, %v1462_v17  ;;  %v7903_v43 = vpop.f32.mrf.mxu0 }
 0x3e2   : > { %v6313_v42 = vpop.f32.mrf.mxu1 }
 0x3e3   : > { %v6386_v49 = vpop.f32.mrf.mxu0  ;;  %v1717_v27 = vadd.f32 %v1678_v48, %v1558_v51 }
 0x3e4   : > { %v1560_v56 = vpop.f32.mrf.mxu1 }
 0x3e5   : > { %v1561_v50 = vadd.f32 %v1560_v56, %v1465_v41  ;;  %v7905_v12 = vpop.f32.mrf.mxu0 }
 0x3e6   : > { %v6314_v29 = vpop.f32.mrf.mxu1 }
 0x3e7   : > { %v6389_v5 = vpop.f32.mrf.mxu0  ;;  %v1718_v18 = vadd.f32 %v1681_v24, %v1561_v50 }
 0x3e8   : > { %v1565_v10 = vpop.f32.mrf.mxu1 }
 0x3e9   : > { %v1566_v19 = vadd.f32 %v1565_v10, %v1470_v55  ;;  %v7907_v23 = vpop.f32.mrf.mxu0 }
 0x3ea   : > { %v6317_v6 = vpop.f32.mrf.mxu1 }
 0x3eb   : > { %v6390_v38 = vpop.f32.mrf.mxu0  ;;  %v1719_v45 = vadd.f32 %v1686_v62, %v1566_v19 }
 0x3ec   : > { %v1568_v17 = vpop.f32.mrf.mxu1 }
 0x3ed   : > { %v1569_v25 = vadd.f32 %v1568_v17, %v1473_v16  ;;  %v7909_v28 = vpop.f32.mrf.mxu0 }
 0x3ee   : > { %v6318_v37 = vpop.f32.mrf.mxu1 }
 0x3ef   : > { %v6393_v48 = vpop.f32.mrf.mxu0  ;;  %v1720_v36 = vadd.f32 %v1689_v0, %v1569_v25 }
 0x3f0   : > { %v1573_v41 = vpop.f32.mrf.mxu1 }
 0x3f1   : > { %v1574_v47 = vadd.f32 %v1573_v41, %v1478_v57  ;;  %v7911_v35 = vpop.f32.mrf.mxu0 }
 0x3f2   : > { %v6321_v51 = vpop.f32.mrf.mxu1 }
 0x3f3   : > { %v6394_v24 = vpop.f32.mrf.mxu0  ;;  %v1721_v42 = vadd.f32 %v1694_v52, %v1574_v47 }
 0x3f4   : > { %v1576_v55 = vpop.f32.mrf.mxu1 }
 0x3f5   : > { %v1577_v49 = vadd.f32 %v1576_v55, %v1481_v2  ;;  %v7913_v56 = vpop.f32.mrf.mxu0 }
 0x3f6   : > { %v6322_v50 = vpop.f32.mrf.mxu1 }
 0x3f7   : > { %v6397_v62 = vpop.f32.mrf.mxu0  ;;  %v1722_v29 = vadd.f32 %v1697_v13, %v1577_v49 }
 0x3f8   : > { %v1581_v16 = vpop.f32.mrf.mxu1 }
 0x3f9   : > { %v1582_v5 = vadd.f32 %v1581_v16, %v1486_v58  ;;  %v7915_v10 = vpop.f32.mrf.mxu0 }
 0x3fa   : > { %v6325_v19 = vpop.f32.mrf.mxu1 }
 0x3fb   : > { %v6398_v0 = vpop.f32.mrf.mxu0  ;;  %v1723_v6 = vadd.f32 %v1702_v4, %v1582_v5 }
 0x3fc   : > { %v1584_v57 = vpop.f32.mrf.mxu1 }
 0x3fd   : > { %v1585_v38 = vadd.f32 %v1584_v57, %v1489_v14  ;;  %v7917_v17 = vpop.f32.mrf.mxu0 }
 0x3fe   : > { %v6326_v25 = vpop.f32.mrf.mxu1 }
 0x3ff   : > { %v6401_v52 = vpop.f32.mrf.mxu0  ;;  %v1724_v37 = vadd.f32 %v1705_v61, %v1585_v38 }
 0x400   : > { %v1589_v2 = vpop.f32.mrf.mxu1 }
 0x401   : > { %v1590_v48 = vadd.f32 %v1589_v2, %v1494_v1  ;;  %v7919_v41 = vpop.f32.mrf.mxu0 }
 0x402   : > { %v6329_v47 = vpop.f32.mrf.mxu1 }
 0x403   : > { %v6402_v13 = vpop.f32.mrf.mxu0  ;;  %v1725_v58 = vadd.f32 %v7897_v60, %v1590_v48 }
 0x404   : > { %v1592_v51 = vpop.f32.mrf.mxu1 }
 0x405   : > { %v1593_v24 = vadd.f32 %v1592_v51, %v1497_v32  ;;  %v7922_v55 = vpop.f32.mrf.mxu0 }
 0x406   : > { %v6330_v4 = vpop.f32.mrf.mxu1 }
 0x407   : > { %v6433_v49 = vpop.f32.mrf.mxu0  ;;  %v1726_v14 = vadd.f32 %v7899_v40, %v1593_v24 }
 0x408   : > { %v1843_v50 = vpop.f32.mrf.mxu1 }
 0x409   : > { %v1882_v62 = vadd.f32 %v1843_v50, %v1717_v27  ;;  %v7925_v16 = vpop.f32.mrf.mxu0 }
 0x40a   : > { %v6361_v61 = vpop.f32.mrf.mxu1 }
 0x40b   : > { %v6434_v1 = vpop.f32.mrf.mxu0  ;;  %v2055_v5 = vadd.f32 %v7901_v3, %v1882_v62 }
 0x40c   : > { %v1846_v19 = vpop.f32.mrf.mxu1 }
 0x40d   : > { %v1883_v0 = vadd.f32 %v1846_v19, %v1718_v18  ;;  %v7928_v57 = vpop.f32.mrf.mxu0 }
 0x40e   : > { %v6362_v60 = vpop.f32.mrf.mxu1 }
 0x40f   : > { %v6437_v32 = vpop.f32.mrf.mxu0  ;;  %v2056_v38 = vadd.f32 %v7903_v43, %v1883_v0 }
 0x410   : > { %v1851_v25 = vpop.f32.mrf.mxu1 }
 0x411   : > { %v1884_v52 = vadd.f32 %v1851_v25, %v1719_v45  ;;  %v7931_v2 = vpop.f32.mrf.mxu0 }
 0x412   : > { %v6365_v40 = vpop.f32.mrf.mxu1 }
 0x413   : > { %v6438_v27 = vpop.f32.mrf.mxu0  ;;  %v2057_v48 = vadd.f32 %v7905_v12, %v1884_v52 }
 0x414   : > { %v1854_v47 = vpop.f32.mrf.mxu1 }
 0x415   : > { %v1885_v13 = vadd.f32 %v1854_v47, %v1720_v36  ;;  %v7934_v51 = vpop.f32.mrf.mxu0 }
 0x416   : > { %v6366_v3 = vpop.f32.mrf.mxu1 }
 0x417   : > { %v6441_v18 = vpop.f32.mrf.mxu0  ;;  %v2058_v24 = vadd.f32 %v7907_v23, %v1885_v13 }
 0x418   : > { %v1859_v4 = vpop.f32.mrf.mxu1 }
 0x419   : > { %v1886_v49 = vadd.f32 %v1859_v4, %v1721_v42  ;;  %v7937_v50 = vpop.f32.mrf.mxu0 }
 0x41a   : > { %v6369_v43 = vpop.f32.mrf.mxu1 }
 0x41b   : > { %v6442_v45 = vpop.f32.mrf.mxu0  ;;  %v2059_v62 = vadd.f32 %v7909_v28, %v1886_v49 }
 0x41c   : > { %v1862_v61 = vpop.f32.mrf.mxu1 }
 0x41d   : > { %v1887_v1 = vadd.f32 %v1862_v61, %v1722_v29  ;;  %v7940_v19 = vpop.f32.mrf.mxu0 }
 0x41e   : > { %v6370_v12 = vpop.f32.mrf.mxu1 }
 0x41f   : > { %v6445_v36 = vpop.f32.mrf.mxu0  ;;  %v2060_v0 = vadd.f32 %v7911_v35, %v1887_v1 }
 0x420   : > { %v1867_v60 = vpop.f32.mrf.mxu1 }
 0x421   : > { %v1888_v32 = vadd.f32 %v1867_v60, %v1723_v6  ;;  %v7943_v25 = vpop.f32.mrf.mxu0 }
 0x422   : > { %v6373_v23 = vpop.f32.mrf.mxu1 }
 0x423   : > { %v6446_v42 = vpop.f32.mrf.mxu0  ;;  %v2061_v52 = vadd.f32 %v7913_v56, %v1888_v32 }
 0x424   : > { %v1870_v40 = vpop.f32.mrf.mxu1 }
 0x425   : > { %v1889_v27 = vadd.f32 %v1870_v40, %v1724_v37  ;;  %v7946_v47 = vpop.f32.mrf.mxu0 }
 0x426   : > { %v6374_v28 = vpop.f32.mrf.mxu1 }
 0x427   : > { %v6449_v29 = vpop.f32.mrf.mxu0  ;;  %v2062_v13 = vadd.f32 %v7915_v10, %v1889_v27 }
 0x428   : > { %v1875_v3 = vpop.f32.mrf.mxu1 }
 0x429   : > { %v1890_v18 = vadd.f32 %v1875_v3, %v1725_v58  ;;  %v7949_v4 = vpop.f32.mrf.mxu0 }
 0x42a   : > { %v6377_v35 = vpop.f32.mrf.mxu1 }
 0x42b   : > { %v6450_v6 = vpop.f32.mrf.mxu0  ;;  %v2063_v49 = vadd.f32 %v7917_v17, %v1890_v18 }
 0x42c   : > { %v1878_v43 = vpop.f32.mrf.mxu1 }
 0x42d   : > { %v1891_v45 = vadd.f32 %v1878_v43, %v1726_v14  ;;  %v7952_v61 = vpop.f32.mrf.mxu0 }
 0x42e   : > { %v6378_v56 = vpop.f32.mrf.mxu1 }
 0x42f   : > { %v6481_v37 = vpop.f32.mrf.mxu0  ;;  %v2064_v1 = vadd.f32 %v7919_v41, %v1891_v45 }
 0x430   : > { %v2147_v12 = vpop.f32.mrf.mxu1 }
 0x431   : > { %v2186_v36 = vadd.f32 %v2147_v12, %v2055_v5  ;;  %v7955_v60 = vpop.f32.mrf.mxu0 }
 0x432   : > { %v6409_v10 = vpop.f32.mrf.mxu1 }
 0x433   : > { %v6482_v58 = vpop.f32.mrf.mxu0  ;;  %v2351_v32 = vadd.f32 %v7922_v55, %v2186_v36 }
 0x434   : > { %v2150_v23 = vpop.f32.mrf.mxu1 }
 0x435   : > { %v2187_v42 = vadd.f32 %v2150_v23, %v2056_v38  ;;  %v7958_v40 = vpop.f32.mrf.mxu0 }
 0x436   : > { %v6410_v17 = vpop.f32.mrf.mxu1 }
 0x437   : > { %v6485_v14 = vpop.f32.mrf.mxu0  ;;  %v2352_v27 = vadd.f32 %v7925_v16, %v2187_v42 }
 0x438   : > { %v2155_v28 = vpop.f32.mrf.mxu1 }
 0x439   : > { %v2188_v29 = vadd.f32 %v2155_v28, %v2057_v48  ;;  %v7961_v3 = vpop.f32.mrf.mxu0 }
 0x43a   : > { %v6413_v41 = vpop.f32.mrf.mxu1 }
 0x43b   : > { %v6486_v5 = vpop.f32.mrf.mxu0  ;;  %v2353_v18 = vadd.f32 %v7928_v57, %v2188_v29 }
 0x43c   : > { %v2158_v35 = vpop.f32.mrf.mxu1 }
 0x43d   : > { %v2189_v6 = vadd.f32 %v2158_v35, %v2058_v24  ;;  %v7964_v43 = vpop.f32.mrf.mxu0 }
 0x43e   : > { %v6414_v55 = vpop.f32.mrf.mxu1 }
 0x43f   : > { %v6489_v38 = vpop.f32.mrf.mxu0  ;;  %v2354_v45 = vadd.f32 %v7931_v2, %v2189_v6 }
 0x440   : > { %v2163_v56 = vpop.f32.mrf.mxu1 }
 0x441   : > { %v2190_v37 = vadd.f32 %v2163_v56, %v2059_v62  ;;  %v7967_v12 = vpop.f32.mrf.mxu0 }
 0x442   : > { %v6417_v16 = vpop.f32.mrf.mxu1 }
 0x443   : > { %v6490_v48 = vpop.f32.mrf.mxu0  ;;  %v2355_v36 = vadd.f32 %v7934_v51, %v2190_v37 }
 0x444   : > { %v2166_v10 = vpop.f32.mrf.mxu1 }
 0x445   : > { %v2191_v58 = vadd.f32 %v2166_v10, %v2060_v0  ;;  %v7970_v23 = vpop.f32.mrf.mxu0 }
 0x446   : > { %v6418_v57 = vpop.f32.mrf.mxu1 }
 0x447   : > { %v6493_v24 = vpop.f32.mrf.mxu0  ;;  %v7973_v42 = vadd.f32 %v7937_v50, %v2191_v58 }
 0x448   : > { %v2171_v17 = vpop.f32.mrf.mxu1 }
 0x449   : > { %v2192_v14 = vadd.f32 %v2171_v17, %v2061_v52  ;;  %v7975_v2 = vpop.f32.mrf.mxu0 }
 0x44a   : > { %v6421_v62 = vpop.f32.mrf.mxu1 }
 0x44b   : > { %v6494_v28 = vpop.f32.mrf.mxu0  ;;  %v7978_v29 = vadd.f32 %v7940_v19, %v2192_v14 }
 0x44c   : > { %v2174_v41 = vpop.f32.mrf.mxu1 }
 0x44d   : > { %v2193_v51 = vadd.f32 %v2174_v41, %v2062_v13  ;;  %v7980_v5 = vpop.f32.mrf.mxu0 }
 0x44e   : > { %v6422_v0 = vpop.f32.mrf.mxu1 }
 0x44f   : > { %v6497_v35 = vpop.f32.mrf.mxu0  ;;  %v7983_v6 = vadd.f32 %v7943_v25, %v2193_v51 }
 0x450   : > { %v2179_v50 = vpop.f32.mrf.mxu1 }
 0x451   : > { %v2194_v55 = vadd.f32 %v2179_v50, %v2063_v49  ;;  %v7985_v38 = vpop.f32.mrf.mxu0 }
 0x452   : > { %v6425_v52 = vpop.f32.mrf.mxu1 }
 0x453   : > { %v6498_v56 = vpop.f32.mrf.mxu0  ;;  %v7988_v37 = vadd.f32 %v7946_v47, %v2194_v55 }
 0x454   : > { %v2182_v19 = vpop.f32.mrf.mxu1 }
 0x455   : > { %v2195_v16 = vadd.f32 %v2182_v19, %v2064_v1  ;;  %v7990_v48 = vpop.f32.mrf.mxu0 }
 0x456   : > { %v6426_v13 = vpop.f32.mrf.mxu1 }
 0x457   : > { %v3317_v10 = vpop.f32.mrf.mxu0  ;;  %v7993_v58 = vadd.f32 %v7949_v4, %v2195_v16  ;;  %v8009_v13 = vld [vmem:[%s9014_s7] ss:$0 sm:$0xff] }
 0x458   : > { %v2485_v25 = vpop.f32.mrf.mxu1 }
 0x459   : > { %v2524_v57 = vadd.f32 %v2485_v25, %v2351_v32  ;;  %v7995_v24 = vpop.f32.mrf.mxu0 }
 0x45a   : > { %v6457_v49 = vpop.f32.mrf.mxu1 }
 0x45b   : > { %v2655_v17 = vadd.f32 %v7952_v61, %v2524_v57  ;;  %v3320_v14 = vpop.f32.mrf.mxu0 }
 0x45c   : > { %v2488_v62 = vpop.f32.mrf.mxu1 }
 0x45d   : > { %v7998_v47 = vpop.f32.mrf.mxu0  ;;  %v2525_v51 = vadd.f32 %v2488_v62, %v2352_v27 }
 0x45e   : > { %v6458_v28 = vpop.f32.mrf.mxu1 }
 0x45f   : > { %v3325_v1 = vpop.f32.mrf.mxu0  ;;  %v2656_v32 = vadd.f32 %v7955_v60, %v2525_v51 }
 0x460   : > { %v2493_v41 = vpop.f32.mrf.mxu1 }
 0x461   : > { %v8000_v0 = vpop.f32.mrf.mxu0  ;;  %v2526_v4 = vadd.f32 %v2493_v41, %v2353_v18  ;;  %v8012_v10 = vadd.f32 %v8009_v13, %v2656_v32 }
 0x462   : > { %v6461_v35 = vpop.f32.mrf.mxu1 }
 0x463   : > { %v3328_v50 = vpop.f32.mrf.mxu0  ;;  %v2657_v19 = vadd.f32 %v7958_v40, %v2526_v4  ;;  %v2682_v28 = vmul.f32 %v8012_v10, %v7221_v46 }
 0x464   : > { %v2496_v55 = vpop.f32.mrf.mxu1 }
 0x465   : > { %v8003_v52 = vpop.f32.mrf.mxu0  ;;  %v2527_v56 = vadd.f32 %v2496_v55, %v2354_v45  ;;  %v8018_v45 = vadd.f32 %v8009_v13, %v2655_v17  ;;  %v8021_v40 = vadd.f32 %v8009_v13, %v2657_v19  ;;  %v2717_v50 = vmul.f32 %v2682_v28, %v8012_v10 }
 0x466   : > { %v6462_v61 = vpop.f32.mrf.mxu1 }
 0x467   : > { %v3333_v16 = vpop.f32.mrf.mxu0  ;;  %v2658_v60 = vadd.f32 %v7961_v3, %v2527_v56  ;;  %v2681_v17 = vmul.f32 %v8018_v45, %v7209_v39  ;;  %v2683_v41 = vmul.f32 %v8021_v40, %v7219_v44 }
 0x468   : > { %v2501_v27 = vpop.f32.mrf.mxu1 }
 0x469   : > { %v2528_v18 = vadd.f32 %v2501_v27, %v2355_v36  ;;  %v8014_v25 = vpop.f32.mrf.mxu0  ;;  %v8029_v36 = vadd.f32 %v8009_v13, %v2658_v60  ;;  %v2716_v16 = vmul.f32 %v2681_v17, %v8018_v45 }
 0x46a   : > { %v6465_v57 = vpop.f32.mrf.mxu1 }
 0x46b   : > { %v3336_v49 = vpop.f32.mrf.mxu0  ;;  %v2659_v14 = vadd.f32 %v7964_v43, %v2528_v18  ;;  %v2684_v61 = vmul.f32 %v8029_v36, %v7236_v54 }
 0x46c   : > { %v2504_v62 = vpop.f32.mrf.mxu1  ;;  %v2691_v49 = vsel %vm832_vm2, %v2681_v17, 0.0 }
 0x46d   : > { %v8026_v1 = vpop.f32.mrf.mxu0  ;;  %v2529_v51 = vadd.f32 %v2504_v62, %v7973_v42  ;;  %v8037_v43 = vadd.f32 %v8009_v13, %v2659_v14  ;;  %v2718_v42 = vmul.f32 %v2683_v41, %v8021_v40  ;;  %v2727_v14 = vsel %vm832_vm2, %v2717_v50, 0.0 }
 0x46e   : > { %v6466_v3 = vpop.f32.mrf.mxu1 }
 0x46f   : > { %v3341_v35 = vpop.f32.mrf.mxu0  ;;  %v2660_v55 = vadd.f32 %v7967_v12, %v2529_v51  ;;  %v2692_v12 = vsel %vm832_vm2, %v2682_v28, 0.0  ;;  %v2694_v51 = vsel %vm832_vm2, %v2683_v41, 0.0  ;;  %v2729_v50 = vsel %vm832_vm2, %v2718_v42, 0.0 }
 0x470   : > { %v2509_v4 = vpop.f32.mrf.mxu1  ;;  %v2693_v17 = vadd.f32 %v2692_v12, %v2691_v49 }
 0x471   : > { %v2530_v32 = vadd.f32 %v2509_v4, %v7978_v29  ;;  %v8042_v56 = vpop.f32.mrf.mxu0  ;;  %v8049_v27 = vadd.f32 %v8009_v13, %v2660_v55  ;;  %v2685_v29 = vmul.f32 %v8037_v43, %v7244_v59  ;;  %v2726_v55 = vsel %vm832_vm2, %v2716_v16, 0.0 }
 0x472   : > { %v6469_v19 = vpop.f32.mrf.mxu1  ;;  %v2728_v63 = vadd.f32 %v2727_v14, %v2726_v55  ;;  %v2695_v11 = vadd.f32 %v2694_v51, %v2693_v17 }
 0x473   : > { %v2661_v18 = vadd.f32 %v7970_v23, %v2530_v32  ;;  %v3344_v60 = vpop.f32.mrf.mxu0  ;;  %v2719_v23 = vmul.f32 %v2684_v61, %v8029_v36  ;;  %v2686_v28 = vmul.f32 %v8049_v27, %v7258_v7  ;;  %v2696_v19 = vsel %vm832_vm2, %v2684_v61, 0.0 }
 0x474   : > { %v2512_v57 = vpop.f32.mrf.mxu1  ;;  %v2698_v12 = vsel %vm832_vm2, %v2685_v29, 0.0  ;;  %v2730_v49 = vadd.f32 %v2729_v50, %v2728_v63 }
 0x475   : > { %v8058_v62 = vadd.f32 %v8009_v13, %v2661_v18  ;;  %v8060_v3 = vpop.f32.mrf.mxu0  ;;  %v2531_v35 = vadd.f32 %v2512_v57, %v7983_v6  ;;  %v2720_v18 = vmul.f32 %v2685_v29, %v8037_v43  ;;  %v2731_v16 = vsel %vm832_vm2, %v2719_v23, 0.0 }
 0x476   : > { %v6470_v4 = vpop.f32.mrf.mxu1  ;;  %v2721_v42 = vmul.f32 %v2686_v28, %v8049_v27  ;;  %v2700_v51 = vsel %vm832_vm2, %v2686_v28, 0.0  ;;  %v2732_v55 = vadd.f32 %v2731_v16, %v2730_v49 }
 0x477   : > { %v3349_v32 = vpop.f32.mrf.mxu0  ;;  %v2687_v41 = vmul.f32 %v8058_v62, %v7268_v15  ;;  %v2662_v60 = vadd.f32 %v7975_v2, %v2531_v35  ;;  %v2697_v4 = vadd.f32 %v2696_v19, %v2695_v11  ;;  %v2733_v14 = vsel %vm832_vm2, %v2720_v18, 0.0 }
 0x478   : > { %v2517_v31 = vpop.f32.mrf.mxu1  ;;  %v2735_v11 = vsel %vm832_vm2, %v2721_v42, 0.0  ;;  %v2734_v28 = vadd.f32 %v2733_v14, %v2732_v55 }
 0x479   : > { %v8074_v6 = vpop.f32.mrf.mxu0  ;;  %v8080_v61 = vadd.f32 %v8009_v13, %v2662_v60  ;;  %v2532_v32 = vadd.f32 %v2517_v31, %v7988_v37  ;;  %v2722_v35 = vmul.f32 %v2687_v41, %v8058_v62  ;;  %v2699_v17 = vadd.f32 %v2698_v12, %v2697_v4 }
 0x47a   : > { %v6473_v57 = vpop.f32.mrf.mxu1  ;;  %v2702_v31 = vsel %vm832_vm2, %v2687_v41, 0.0  ;;  %v2736_v12 = vadd.f32 %v2735_v11, %v2734_v28 }
 0x47b   : > { %v3352_v2 = vpop.f32.mrf.mxu0  ;;  %v2688_v29 = vmul.f32 %v8080_v61, %v7281_v30  ;;  %v2663_v60 = vadd.f32 %v7980_v5, %v2532_v32  ;;  %v2701_v19 = vadd.f32 %v2700_v51, %v2699_v17  ;;  %v2737_v16 = vsel %vm832_vm2, %v2722_v35, 0.0 }
 0x47c   : > { %v2520_v23 = vpop.f32.mrf.mxu1  ;;  %v2738_v4 = vadd.f32 %v2737_v16, %v2736_v12 }
 0x47d   : > { %v2533_v63 = vadd.f32 %v2520_v23, %v7993_v58  ;;  %v2723_v37 = vmul.f32 %v2688_v29, %v8080_v61  ;;  %v8094_v18 = vadd.f32 %v8009_v13, %v2663_v60  ;;  %v2704_v5 = vsel %vm832_vm2, %v2688_v29, 0.0 }
 0x47e   : > { %v6474_v50 = vpop.f32.mrf.mxu1  ;;  %v2703_v58 = vadd.f32 %v2702_v31, %v2701_v19 }
 0x47f   : > { %v2664_v57 = vadd.f32 %v7985_v38, %v2533_v63  ;;  %v2689_v42 = vmul.f32 %v8094_v18, %v7294_v53  ;;  %v2739_v49 = vsel %vm832_vm2, %v2723_v37, 0.0 }
 0x480   : > { %v2705_v32 = vadd.f32 %v2704_v5, %v2703_v58  ;;  %v2740_v51 = vadd.f32 %v2739_v49, %v2738_v4  ;;  %v8118_v4 = vld [vmem:[%s9018_s11] sm:$0xff] }
 0x481   : > { %v8102_v41 = vadd.f32 %v8009_v13, %v2664_v57  ;;  %v2706_v2 = vsel %vm832_vm2, %v2689_v42, 0.0  ;;  %v2724_v38 = vmul.f32 %v2689_v42, %v8094_v18 }
 0x482   : > { %v2707_v35 = vadd.f32 %v2706_v2, %v2705_v32  ;;  %v9057_v32 = vmov 0.0  }
 0x483   : > { %v2690_v14 = vmul.f32 %v8102_v41, %v7306_v8  ;;  %v2741_v29 = vsel %vm832_vm2, %v2724_v38, 0.0 }
 0x484   : > { %v2742_v55 = vadd.f32 %v2741_v29, %v2740_v51 }
 0x485   : > { %v2708_v23 = vsel %vm832_vm2, %v2690_v14, 0.0  ;;  %v2725_v13 = vmul.f32 %v2690_v14, %v8102_v41 }
 0x486   : > { %v2709_v17 = vadd.f32 %v2708_v23, %v2707_v35 }
 0x487   : > { %v2743_v60 = vsel %vm832_vm2, %v2725_v13, 0.0 }
 0x488   : > { %v2710_v63 = vrot.slane %v2709_v17, 4  ;;  %v2744_v11 = vadd.f32 %v2743_v60, %v2742_v55  ;;  %v6976_v55 = vld [vmem:[%s9010_s3] ss:$0 sm:$0xff] }
 0x489   : > { %v8131_v60 = vadd.f32 %v6976_v55, %v7990_v48 }
 0x48a   : > { %v2711_v31 = vadd.f32 %v2710_v63, %v2709_v17  ;;  %v2745_v37 = vrot.slane %v2744_v11, 4  ;;  %v8128_v17 = vadd.f32 %v6976_v55, %v7995_v24  ;;  %v8134_v63 = vadd.f32 %v6976_v55, %v7998_v47 }
 0x48c   : > { %v2712_v50 = vrot.slane %v2711_v31, 2  ;;  %v2746_v28 = vadd.f32 %v2745_v37, %v2744_v11  ;;  %v3355_v11 = vmul.f32 %v8128_v17, %v7221_v46  ;;  %v3354_v37 = vmul.f32 %v8131_v60, %v7209_v39 }
 0x48d   : > { %v3356_v24 = vmul.f32 %v8134_v63, %v7219_v44 }
 0x48e   : > { %v2747_v19 = vrot.slane %v2746_v28, 2  ;;  %v2713_v57 = vadd.f32 %v2712_v50, %v2711_v31  ;;  %v8139_v31 = vadd.f32 %v6976_v55, %v8000_v0  ;;  %v8146_v50 = vadd.f32 %v6976_v55, %v8003_v52 }
 0x48f   : > { %v3390_v48 = vmul.f32 %v3355_v11, %v8128_v17  ;;  %v3389_v0 = vmul.f32 %v3354_v37, %v8131_v60 }
 0x490   : > { %v2714_v16 = vrot.slane %v2713_v57, 1  ;;  %v2748_v5 = vadd.f32 %v2747_v19, %v2746_v28  ;;  %v3357_v47 = vmul.f32 %v8139_v31, %v7236_v54  ;;  %v8152_v28 = vadd.f32 %v6976_v55, %v8014_v25 }
 0x491   : > { %v3391_v19 = vmul.f32 %v3356_v24, %v8134_v63  ;;  %v3400_v52 = vsel %vm832_vm2, %v3390_v48, 0.0  ;;  %v8166_v25 = vadd.f32 %v6976_v55, %v8042_v56  ;;  %v8178_v56 = vadd.f32 %v6976_v55, %v8060_v3  ;;  %v6912_v3 = vld [vmem:[%s7175_s21] sm:$0xff]  }
 0x492   : > { %v2749_v12 = vrot.slane %v2748_v5, 1  ;;  %v2715_v58 = vadd.f32 %v2714_v16, %v2713_v57  ;;  %v3358_v57 = vmul.f32 %v8146_v50, %v7244_v59  ;;  %v8159_v16 = vadd.f32 %v6976_v55, %v8026_v1  ;;  %v6911_v1 = vld [vmem:[%s9019_s12] sm:$0xff]  }
 0x494   : > { %v2750_v42 = vadd.f32 %v2749_v12, %v2748_v5  ;;  %v3392_v5 = vmul.f32 %v3357_v47, %v8139_v31  ;;  %v3359_v12 = vmul.f32 %v8152_v28, %v7258_v7 }
 0x496   : > { %v2751_v49 = vsel %vm9056_vm9, %v2715_v58, %v2750_v42  ;;  %v3399_v58 = vsel %vm832_vm2, %v3389_v0, 0.0  ;;  %v3365_v42 = vsel %vm832_vm2, %v3355_v11, 0.0  ;;  %v3404_v11 = vsel %vm832_vm2, %v3392_v5, 0.0  ;;  %vm9060_vm9 = vmmov %vm9055_vm6 }
 0x497   : > { %6508 = vmatmul.mubr.msk.f32.vlgmr.msra.gmra.mxu1 %vm832_vm2, %v2751_v49  ;;  %v3394_v48 = vmul.f32 %v3359_v12, %v8152_v28  ;;  %v3361_v0 = vmul.f32 %v8166_v25, %v7281_v30  ;;  %v3362_v5 = vmul.f32 %v8178_v56, %v7294_v53 }
 0x498   : > { %6511 = vmatpush3.msra.mxu1 %v8118_v4  ;;  %6512 = vmatprep.mubr.msk.f32.mxu1 %vm6997_vm1, %v9057_v32 }
 0x499   : > { %6515 = vmatprep.subr.bf16.mxu1 %v9057_v32 }
 0x557   : > { %v2821_v2 = vpop.f32.mrf.mxu1 }
 0x558   : > { %v2825_v38 = vmul.f32 0.00390625, %v2821_v2  ;;  %v3402_v2 = vsel %vm832_vm2, %v3391_v19, 0.0  ;;  %v8188_v19 = vadd.f32 %v6976_v55, %v8074_v6 }
 0x559   : > { %v6509_v14 = vpop.f32.mrf.mxu1 }
 0x55a   : > { %v2826_v51 = vmul.f32 %v2825_v38, %v2825_v38  ;;  %v3393_v14 = vmul.f32 %v3358_v57, %v8146_v50 }
 0x55c   : > { %v2828_v35 = vrot.slane %v2826_v51, 7  ;;  %v3360_v51 = vmul.f32 %v8159_v16, %v7268_v15 }
 0x55e   : > { %v2830_v29 = vsub.f32 %v2825_v38, %v2828_v35  ;;  %v3364_v35 = vsel %vm832_vm2, %v3354_v37, 0.0 }
 0x55f   : > { %v3366_v15 = vadd.f32 %v3365_v42, %v3364_v35  ;;  %v3408_v42 = vsel %vm832_vm2, %v3394_v48, 0.0 }
 0x560   : > { %v2831_v23 = vmax.f32 %v2830_v29, 0.0  ;;  %v3401_v29 = vadd.f32 %v3400_v52, %v3399_v58  ;;  %v3395_v52 = vmul.f32 %v3360_v51, %v8159_v16  ;;  %v3371_v58 = vsel %vm832_vm2, %v3358_v57, 0.0 }
 0x562   : > { %v2832_v13 = vadd.f32 1e-05, %v2831_v23  ;;  %v3367_v23 = vsel %vm832_vm2, %v3356_v24, 0.0  ;;  %v3403_v37 = vadd.f32 %v3402_v2, %v3401_v29  ;;  %v3406_v24 = vsel %vm832_vm2, %v3393_v14, 0.0 }
 0x563   : > { %v3368_v6 = vadd.f32 %v3367_v23, %v3366_v15  ;;  %v3373_v15 = vsel %vm832_vm2, %v3359_v12, 0.0  ;;  %v3410_v57 = vsel %vm832_vm2, %v3395_v52, 0.0  ;;  %v3397_v14 = vmul.f32 %v3362_v5, %v8178_v56 }
 0x564   : > { %6965 = vrsqrt.f32 %v2832_v13  ;;  %v3405_v55 = vadd.f32 %v3404_v11, %v3403_v37  ;;  %v3375_v23 = vsel %vm832_vm2, %v3360_v51, 0.0  ;;  %v6913_v11 = vld [vmem:[%s7175_s21 + $0x8] sm:$0xff]  }
 0x565   : > { %v3414_v37 = vsel %vm832_vm2, %v3397_v14, 0.0  ;;  %v6916_v14 = vld [vmem:[%s7175_s21 + $0x20] sm:$0xff]  }
 0x566   : > { %v3407_v2 = vadd.f32 %v3406_v24, %v3405_v55 }
 0x568   : > { %v3409_v29 = vadd.f32 %v3408_v42, %v3407_v2 }
 0x56a   : > { %v3411_v48 = vadd.f32 %v3410_v57, %v3409_v29 }
 0x571   : > { %v6966_v49 = vpop.eup %6965 }
 0x572   : > { %v2834_v13 = vsel %vm9058_vm10, %v2825_v38, %v6966_v49  ;;  %v3369_v38 = vsel %vm832_vm2, %v3357_v47, 0.0  ;;  %v3363_v47 = vmul.f32 %v8188_v19, %v7306_v8  ;;  %vm9061_vm10 = vmmov %vm9055_vm6 }
 0x573   : > { %6513 = vmatmul.mubr.msk.f32.vlgmr.msra.gmra.mxu1 %vm9059_vm0, %v2834_v13  ;;  %v3370_v49 = vadd.f32 %v3369_v38, %v3368_v6  ;;  %v3379_v38 = vsel %vm832_vm2, %v3362_v5, 0.0  ;;  %vm9062_vm0 = vmmov %vm9055_vm6 }
 0x574   : > { %6516 = vmatpush3.bf16.msra.mxu1 %v6911_v1  ;;  %6517 = vmatprep.mubr.msk.bf16.mxu1 %vm6997_vm1, %v9057_v32  ;;  %v3396_v1 = vmul.f32 %v3361_v0, %v8166_v25  ;;  %v3381_v52 = vsel %vm832_vm2, %v3363_v47, 0.0 }
 0x575   : > { %6537 = vmatprep.subr.mxu1 %v9057_v32  ;;  %v3372_v35 = vadd.f32 %v3371_v58, %v3370_v49  ;;  %v6915_v49 = vld [vmem:[%s7175_s21 + $0x18] sm:$0xff]  }
 0x576   : > { %v3412_v13 = vsel %vm832_vm2, %v3396_v1, 0.0 }
 0x577   : > { %6518 = vmatmul.mubr.msk.bf16.vlgmr.msra.gmra.mxu1 %vm9055_vm6, %v6912_v3  ;;  %v3374_v12 = vadd.f32 %v3373_v15, %v3372_v35  ;;  %v3377_v3 = vsel %vm832_vm2, %v3361_v0, 0.0  ;;  %v3413_v51 = vadd.f32 %v3412_v13, %v3411_v48  ;;  %vm9063_vm6 = vmmov %vm9062_vm0 }
 0x578   : > { %6538 = vmatpush3.msra.mxu1 %v7844_v33  ;;  %6521 = vmatprep.mubr.msk.bf16.mxu1 %vm6997_vm1, %v9057_v32  ;;  %v3398_v33 = vmul.f32 %v3363_v47, %v8188_v19 }
 0x579   : > { %6539 = vmatprep.subr.mxu1 %v9057_v32  ;;  %v3415_v0 = vadd.f32 %v3414_v37, %v3413_v51  ;;  %v549_v51 = vld [vmem:[%s9016_s9] sm:$0x1] }
 0x57a   : > { %6540 = vmatpush3.msra.mxu1 %v7852_v34  ;;  %v3376_v34 = vadd.f32 %v3375_v23, %v3374_v12  ;;  %v3416_v24 = vsel %vm832_vm2, %v3398_v33, 0.0  ;;  %v5868_v12 = vld [vmem:[%s9015_s8] ss:$0 sm:$0xff] }
 0x57b   : > { %6541 = vmatprep.subr.mxu1 %v9057_v32  ;;  %v3417_v55 = vadd.f32 %v3416_v24, %v3415_v0 }
 0x57c   : > { %6542 = vmatpush3.msra.mxu1 %v7859_v21  ;;  %v3378_v21 = vadd.f32 %v3377_v3, %v3376_v34 }
 0x57d   : > { %6543 = vmatprep.subr.mxu1 %v9057_v32  ;;  %v3418_v5 = vrot.slane %v3417_v55, 4 }
 0x57e   : > { %6544 = vmatpush3.msra.mxu1 %v7867_v22  ;;  %v3380_v6 = vadd.f32 %v3379_v38, %v3378_v21  ;;  %v6914_v22 = vld [vmem:[%s7175_s21 + $0x10] sm:$0xff]  }
 0x57f   : > { %6522 = vmatmul.mubr.msk.bf16.gmra.mxu1 %vm9060_vm9, %v6913_v11  ;;  %6548 = vmatprep.subr.mxu1 %v9057_v32  ;;  %v3419_v1 = vadd.f32 %v3418_v5, %v3417_v55  ;;  %vm9064_vm9 = vcmask 1040384  }
 0x580   : > { %6525 = vmatprep.mubr.msk.bf16.mxu1 %vm6997_vm1, %v9057_v32  ;;  %v3382_v58 = vadd.f32 %v3381_v52, %v3380_v6  ;;  %v8261_v52 = vld [vmem:[%s9020_s13] ss:$0 sm:$0xff] }
 0x581   : > { %v3420_v15 = vrot.slane %v3419_v1, 2 }
 0x582   : > { %v3383_v42 = vrot.slane %v3382_v58, 4 }
 0x583   : > { %v3421_v47 = vadd.f32 %v3420_v15, %v3419_v1 }
 0x584   : > { %v3384_v2 = vadd.f32 %v3383_v42, %v3382_v58 }
 0x585   : > { %v3422_v29 = vrot.slane %v3421_v47, 1 }
 0x586   : > { %v3385_v57 = vrot.slane %v3384_v2, 2 }
 0x587   : > { %6526 = vmatmul.mubr.msk.bf16.gmra.mxu1 %vm9061_vm10, %v6914_v22  ;;  %v3423_v13 = vadd.f32 %v3422_v29, %v3421_v47 }
 0x588   : > { %6529 = vmatprep.mubr.msk.bf16.mxu1 %vm6997_vm1, %v9057_v32  ;;  %v3386_v35 = vadd.f32 %v3385_v57, %v3384_v2 }
 0x58a   : > { %v3387_v23 = vrot.slane %v3386_v35, 1 }
 0x58c   : > { %v3388_v33 = vadd.f32 %v3387_v23, %v3386_v35 }
 0x58e   : > { %v3424_v11 = vsel %vm9064_vm9, %v3388_v33, %v3423_v13 }
 0x58f   : > { %6530 = vmatmul.mubr.msk.bf16.gmra.mxu1 %vm9062_vm0, %v6915_v49 }
 0x590   : > { %6533 = vmatprep.mubr.msk.bf16.mxu1 %vm6997_vm1, %v9057_v32 }
 0x597   : > { %6534 = vmatmul.mubr.msk.bf16.gmra.mxu1 %vm9063_vm6, %v6916_v14 }
 0x598   : > { %6545 = vmatprep.mubr.msk.f32.mxu1 %vm6997_vm1, %v9057_v32 }
 0x59f   : > { %6546 = vmatmul.mubr.msk.f32.vlgmr.msra.gmra.mxu1 %vm832_vm2, %v3424_v11 }
 0x5a0   : > { %6549 = vmatpush3.msra.mxu1 %v8118_v4  ;;  %6550 = vmatprep.mubr.msk.f32.mxu1 %vm6997_vm1, %v9057_v32 }
 0x5a1   : > { %6577 = vmatprep.subr.bf16.mxu1 %v9057_v32 }
 0x633   : > { %v2904_v48 = vpop.f32.mrf.mxu1 }
 0x634   : > { %v2914_v3 = vmul.f32 %v5868_v12, %v2904_v48 }
 0x635   : > { %v6514_v37 = vpop.f32.mrf.mxu1 }
 0x636   : > { %v2916_v34 = vrot.slane %v2914_v3, 1  ;;  %v8256_v4 = vrot.slane %v2914_v3, %v7366_v20 }
 0x637   : > { %v3049_v38 = vpop.f32.mrf.mxu1 }
 0x638   : > { %v2918_v24 = vmul.f32 %v2916_v34, %v2904_v48  ;;  %v2924_v22 = vmul.f32 %v8256_v4, %v8018_v45  ;;  %v2925_v58 = vmul.f32 %v8256_v4, %v8012_v10  ;;  %v3050_v1 = vadd.f32 %v8261_v52, %v3049_v38 }
 0x639   : > { %v6519_v21 = vpop.f32.mrf.mxu1  ;;  %v2926_v15 = vmul.f32 %v8256_v4, %v8021_v40  ;;  %v2927_v29 = vmul.f32 %v8256_v4, %v8029_v36 }
 0x63a   : > { %v2919_v0 = vsub.f32 %v549_v51, %v2918_v24  ;;  %v2928_v51 = vmul.f32 %v8256_v4, %v8037_v43 }
 0x63b   : > { %v3052_v6 = vpop.f32.mrf.mxu1 }
 0x63c   : > { %v8264_v55 = vrot.slane %v2919_v0, %v7372_v26  ;;  %v3053_v2 = vadd.f32 %v8261_v52, %v3052_v6 }
 0x63d   : > { %v6520_v5 = vpop.f32.mrf.mxu1 }
 0x63e   : > { %v2940_v42 = vadd.f32 %v8264_v55, %v2924_v22  ;;  %v2941_v49 = vadd.f32 %v8264_v55, %v2925_v58  ;;  %v2942_v35 = vadd.f32 %v8264_v55, %v2926_v15  ;;  %v2943_v48 = vadd.f32 %v8264_v55, %v2927_v29 }
 0x63f   : > { %v3057_v57 = vpop.f32.mrf.mxu1  ;;  %v2944_v0 = vadd.f32 %v8264_v55, %v2928_v51 }
 0x640   : > { %v3088_v47 = vadd.f32 %v3050_v1, %v2940_v42  ;;  %v3089_v14 = vadd.f32 %v3053_v2, %v2941_v49  ;;  %v3058_v45 = vadd.f32 %v8261_v52, %v3057_v57  ;;  %v2929_v42 = vmul.f32 %v8256_v4, %v8049_v27 }
 0x641   : > { %v6523_v10 = vpop.f32.mrf.mxu1 }
 0x642   : > { %vm3098_vm10 = vcmp.gt.f32.partialorder %v3088_v47, 0.0  ;;  %v3108_v40 = vmul.f32 0.2, %v3088_v47  ;;  %vm3099_vm0 = vcmp.gt.f32.partialorder %v3089_v14, 0.0  ;;  %v3109_v23 = vmul.f32 0.2, %v3089_v14 }
 0x643   : > { %v3090_v13 = vadd.f32 %v3058_v45, %v2942_v35  ;;  %v3060_v33 = vpop.f32.mrf.mxu1  ;;  %v2945_v49 = vadd.f32 %v8264_v55, %v2929_v42 }
 0x644   : > { %v3118_v11 = vsel %vm3098_vm10, %v3088_v47, %v3108_v40  ;;  %v3119_v12 = vsel %vm3099_vm0, %v3089_v14, %v3109_v23  ;;  %v3061_v36 = vadd.f32 %v8261_v52, %v3060_v33  ;;  %v2930_v14 = vmul.f32 %v8256_v4, %v8058_v62 }
 0x645   : > { %3128 = vst.msk [vmem:[%s8285_s24] sm:$0xff] %vm832_vm2, %v3118_v11  ;;  %3129 = vst.msk [vmem:[%s8285_s24 + $0x8] sm:$0xff] %vm832_vm2, %v3119_v12  ;;  %vm3100_vm6 = vcmp.gt.f32.partialorder %v3090_v13, 0.0  ;;  %v3110_v3 = vmul.f32 0.2, %v3090_v13  ;;  %v6524_v37 = vpop.f32.mrf.mxu1 }
 0x646   : > { %v3091_v34 = vadd.f32 %v3061_v36, %v2943_v48  ;;  %v2946_v35 = vadd.f32 %v8264_v55, %v2930_v14  ;;  %v2932_v37 = vmul.f32 %v8256_v4, %v8094_v18 }
 0x647   : > { %v3120_v38 = vsel %vm3100_vm6, %v3090_v13, %v3110_v3  ;;  %v3065_v24 = vpop.f32.mrf.mxu1  ;;  %v2931_v13 = vmul.f32 %v8256_v4, %v8080_v61 }
 0x648   : > { %3130 = vst.msk [vmem:[%s8285_s24 + $0x10] sm:$0xff] %vm832_vm2, %v3120_v38  ;;  %vm3101_vm9 = vcmp.gt.f32.partialorder %v3091_v34, 0.0  ;;  %v3111_v21 = vmul.f32 0.2, %v3091_v34  ;;  %v3066_v6 = vadd.f32 %v8261_v52, %v3065_v24  ;;  %v2948_v51 = vadd.f32 %v8264_v55, %v2932_v37 }
 0x649   : > { %v6527_v22 = vpop.f32.mrf.mxu1  ;;  %v2947_v11 = vadd.f32 %v8264_v55, %v2931_v13 }
 0x64a   : > { %v3121_v58 = vsel %vm3101_vm9, %v3091_v34, %v3111_v21  ;;  %v3092_v5 = vadd.f32 %v3066_v6, %v2944_v0  ;;  %v2933_v6 = vmul.f32 %v8256_v4, %v8102_v41 }
 0x64b   : > { %3131 = vst.msk [vmem:[%s8285_s24 + $0x18] sm:$0xff] %vm832_vm2, %v3121_v58  ;;  %v3068_v43 = vpop.f32.mrf.mxu1 }
 0x64c   : > { %vm3102_vm10 = vcmp.gt.f32.partialorder %v3092_v5, 0.0  ;;  %v3112_v1 = vmul.f32 0.2, %v3092_v5  ;;  %v3069_v2 = vadd.f32 %v8261_v52, %v3068_v43  ;;  %v2949_v58 = vadd.f32 %v8264_v55, %v2933_v6 }
 0x64d   : > { %v6528_v15 = vpop.f32.mrf.mxu1 }
 0x64e   : > { %v3122_v57 = vsel %vm3102_vm10, %v3092_v5, %v3112_v1  ;;  %v3093_v47 = vadd.f32 %v3069_v2, %v2945_v49 }
 0x64f   : > { %3132 = vst.msk [vmem:[%s8285_s24 + $0x20] sm:$0xff] %vm832_vm2, %v3122_v57  ;;  %v3073_v45 = vpop.f32.mrf.mxu1 }
 0x650   : > { %vm3103_vm0 = vcmp.gt.f32.partialorder %v3093_v47, 0.0  ;;  %v3113_v27 = vmul.f32 0.2, %v3093_v47  ;;  %v3074_v10 = vadd.f32 %v8261_v52, %v3073_v45 }
 0x651   : > { %v6531_v29 = vpop.f32.mrf.mxu1 }
 0x652   : > { %v3123_v40 = vsel %vm3103_vm0, %v3093_v47, %v3113_v27  ;;  %v3094_v23 = vadd.f32 %v3074_v10, %v2946_v35  ;;  %v6917_v35 = vld [vmem:[%s9013_s6 + $0x18] sm:$0xff]   ;;  %v6919_v10 = vld [vmem:[%s9013_s6 + $0x8] sm:$0xff]  }
 0x653   : > { %3133 = vst.msk [vmem:[%s8285_s24 + $0x28] sm:$0xff] %vm832_vm2, %v3123_v40  ;;  %v3076_v33 = vpop.f32.mrf.mxu1  ;;  %v3649_v29 = vld [vmem:[#allocation2 + $0x3c] sm:$0x3]  ;;  %6554 = vmatpush3.bf16.msra.mxu0 %v6917_v35  ;;  %v6918_v40 = vld [vmem:[%s9013_s6 + $0x10] sm:$0xff]  }
 0x654   : > { %vm3104_vm6 = vcmp.gt.f32.partialorder %v3094_v23, 0.0  ;;  %v3114_v62 = vmul.f32 0.2, %v3094_v23  ;;  %v3077_v12 = vadd.f32 %v8261_v52, %v3076_v33  ;;  %v3650_v13 = vsel %vm7347_vm8, 0, %v3649_v29  ;;  %6555 = vmatprep.subr.bf16.mxu0 %v9057_v32  ;;  %v3652_v33 = vld [vmem:[#allocation2 + $0x64] sm:$0xe] }
 0x655   : > { %v6532_v48 = vpop.f32.mrf.mxu1  ;;  %3651 = vst [vmem:[#allocation2 + $0x3c] sm:$0x3] %v3650_v13 }
 0x656   : > { %v3124_v36 = vsel %vm3104_vm6, %v3094_v23, %v3114_v62  ;;  %v3095_v3 = vadd.f32 %v3077_v12, %v2947_v11  ;;  %vm9065_vm6 = vcmask 1040384   ;;  %v6920_v23 = vld [vmem:[%s9013_s6] sm:$0xff]   ;;  %v3653_v11 = vsel %vm7357_vm11, 0, %v3652_v33 }
 0x657   : > { %3134 = vst.msk [vmem:[%s8285_s24 + $0x30] sm:$0xff] %vm832_vm2, %v3124_v36  ;;  %v3081_v34 = vpop.f32.mrf.mxu1  ;;  %6556 = vmatpush3.bf16.msra.mxu0 %v6918_v40  ;;  %3654 = vst [vmem:[#allocation2 + $0x64] sm:$0xe] %v3653_v11  ;;  %v6977_v48 = vld [vmem:[%s9011_s4] ss:$0 sm:$0xff] }
 0x658   : > { %vm3105_vm9 = vcmp.gt.f32.partialorder %v3095_v3, 0.0  ;;  %v3115_v61 = vmul.f32 0.2, %v3095_v3  ;;  %v3082_v38 = vadd.f32 %v8261_v52, %v3081_v34  ;;  %6601 = vmatprep.subr.bf16.mxu0 %v9057_v32 }
 0x659   : > { %v6535_v24 = vpop.f32.mrf.mxu1 }
 0x65a   : > { %v3125_v21 = vsel %vm3105_vm9, %v3095_v3, %v3115_v61  ;;  %v3096_v0 = vadd.f32 %v3082_v38, %v2948_v51  ;;  %vm9066_vm9 = vcmask 64512   ;;  %v6978_v51 = vld [vmem:[%s9012_s5] sm:$0x1] }
 0x65b   : > { %3135 = vst.msk [vmem:[%s8285_s24 + $0x38] sm:$0xff] %vm832_vm2, %v3125_v21  ;;  %v3084_v22 = vpop.f32.mrf.mxu1 }
 0x65c   : > { %vm3106_vm10 = vcmp.gt.f32.partialorder %v3096_v0, 0.0  ;;  %v3116_v18 = vmul.f32 0.2, %v3096_v0  ;;  %v3085_v5 = vadd.f32 %v8261_v52, %v3084_v22 }
 0x65d   : > { %v6536_v42 = vpop.f32.mrf.mxu1 }
 0x65e   : > { %v3126_v43 = vsel %vm3106_vm10, %v3096_v0, %v3116_v18  ;;  %v3097_v1 = vadd.f32 %v3085_v5, %v2949_v58 }
 0x65f   : > { %3136 = vst.msk [vmem:[%s8285_s24 + $0x40] sm:$0xff] %vm832_vm2, %v3126_v43  ;;  %v3494_v49 = vpop.f32.mrf.mxu1 }
 0x660   : > { %vm3107_vm0 = vcmp.gt.f32.partialorder %v3097_v1, 0.0  ;;  %v3117_v2 = vmul.f32 0.2, %v3097_v1  ;;  %v3498_v15 = vmul.f32 0.00390625, %v3494_v49 }
 0x661   : > { %v6547_v41 = vpop.f32.mrf.mxu1 }
 0x662   : > { %v3127_v4 = vsel %vm3107_vm0, %v3097_v1, %v3117_v2  ;;  %v3499_v57 = vmul.f32 %v3498_v15, %v3498_v15 }
 0x663   : > { %3137 = vst.msk [vmem:[%s8285_s24 + $0x48] sm:$0xff] %vm832_vm2, %v3127_v4 }
 0x664   : > { %v3501_v47 = vrot.slane %v3499_v57, 7 }
 0x666   : > { %v3503_v14 = vsub.f32 %v3498_v15, %v3501_v47 }
 0x668   : > { %v3504_v45 = vmax.f32 %v3503_v14, 0.0 }
 0x66a   : > { %v3505_v55 = vadd.f32 1e-05, %v3504_v45 }
 0x66c   : > { %6967 = vrsqrt.f32 %v3505_v55 }
 0x679   : > { %v6968_v52 = vpop.eup %6967 }
 0x67a   : > { %v3507_v27 = vsel %vm9065_vm6, %v3498_v15, %v6968_v52 }
 0x67b   : > { %6551 = vmatmul.mubr.msk.f32.vlgmr.msra.gmra.mxu1 %vm9066_vm9, %v3507_v27 }
 0x67c   : > { %6581 = vmatprep.mubr.msk.bf16.mxu1 %vm6997_vm1, %v9057_v32  ;;  %6578 = vmatpush3.bf16.msra.mxu1 %v6919_v10 }
 0x67d   : > { %6579 = vmatprep.subr.bf16.mxu1 %v9057_v32 }
 0x680   : > { %6580 = vmatpush3.bf16.msra.mxu1 %v6920_v23 }
 0x681   : > { %6625 = vmatprep.subr.bf16.mxu1 %v9057_v32 }
 0x73b   : > { %v3577_v12 = vpop.f32.mrf.mxu1 }
 0x73c   : > { %v3581_v36 = vmul.f32 %v6977_v48, %v3577_v12 }
 0x73d   : > { %v6552_v3 = vpop.f32.mrf.mxu1 }
 0x73e   : > { %v3583_v37 = vrot.slane %v3581_v36, 1  ;;  %v3590_v34 = vrot.slane %v3581_v36, %v7366_v20 }
 0x740   : > { %v3585_v61 = vmul.f32 %v3583_v37, %v3577_v12  ;;  %v3591_v24 = vmul.f32 %v3590_v34, %v8131_v60  ;;  %v3592_v21 = vmul.f32 %v3590_v34, %v8128_v17  ;;  %v3593_v0 = vmul.f32 %v3590_v34, %v8134_v63 }
 0x741   : > { %v3594_v6 = vmul.f32 %v3590_v34, %v8139_v31  ;;  %v3595_v22 = vmul.f32 %v3590_v34, %v8146_v50  ;;  %v3596_v18 = vmul.f32 %v3590_v34, %v8152_v28  ;;  %v3597_v5 = vmul.f32 %v3590_v34, %v8159_v16 }
 0x742   : > { %v3586_v38 = vsub.f32 %v6978_v51, %v3585_v61  ;;  %v3598_v42 = vmul.f32 %v3590_v34, %v8166_v25  ;;  %v3599_v43 = vmul.f32 %v3590_v34, %v8178_v56  ;;  %v3600_v60 = vmul.f32 %v3590_v34, %v8188_v19  ;;  %v9068_v34 = vld [vmem:[#allocation3_spill] sm:$0xff] }
 0x744   : > { %v3605_v58 = vrot.slane %v3586_v38, %v7372_v26 }
 0x746   : > { %v3607_v1 = vadd.f32 %v3605_v58, %v3591_v24  ;;  %v3608_v17 = vadd.f32 %v3605_v58, %v3592_v21  ;;  %v3609_v49 = vadd.f32 %v3605_v58, %v3593_v0  ;;  %v3610_v63 = vadd.f32 %v3605_v58, %v3594_v6 }
 0x747   : > { %v3611_v2 = vadd.f32 %v3605_v58, %v3595_v22  ;;  %v3612_v31 = vadd.f32 %v3605_v58, %v3596_v18  ;;  %v3613_v15 = vadd.f32 %v3605_v58, %v3597_v5  ;;  %v3614_v50 = vadd.f32 %v3605_v58, %v3598_v42 }
 0x748   : > { %v3615_v41 = vadd.f32 %v3605_v58, %v3599_v43  ;;  %v8375_v28 = vadd.f32 %v3605_v58, %v3600_v60  ;;  %vm3617_vm10 = vcmp.gt.f32.partialorder %v3607_v1, 0.0  ;;  %vm3618_vm0 = vcmp.gt.f32.partialorder %v3608_v17, 0.0 }
 0x749   : > { %vm3619_vm6 = vcmp.gt.f32.partialorder %v3609_v49, 0.0  ;;  %vm3620_vm9 = vcmp.gt.f32.partialorder %v3610_v63, 0.0  ;;  %vm3621_vm15 = vcmp.gt.f32.partialorder %v3611_v2, 0.0  ;;  %vm3622_vm13 = vcmp.gt.f32.partialorder %v3612_v31, 0.0 }
 0x74a   : > { %vm3623_vm14 = vcmp.gt.f32.partialorder %v3613_v15, 0.0  ;;  %vm3624_vm12 = vcmp.gt.f32.partialorder %v3614_v50, 0.0  ;;  %vm3625_vm4 = vcmp.gt.f32.partialorder %v3615_v41, 0.0  ;;  %v3627_v16 = vmul.f32 0.2, %v3607_v1 }
 0x74b   : > { %v3628_v25 = vmul.f32 0.2, %v3608_v17  ;;  %v3629_v56 = vmul.f32 0.2, %v3609_v49  ;;  %v3630_v19 = vmul.f32 0.2, %v3610_v63 }
 0x74c   : > { %v3631_v4 = vmul.f32 0.2, %v3611_v2  ;;  %v3632_v57 = vmul.f32 0.2, %v3612_v31  ;;  %v3633_v47 = vmul.f32 0.2, %v3613_v15  ;;  %v3637_v14 = vsel %vm3617_vm10, %v3607_v1, %v3627_v16 }
 0x74d   : > { %v3634_v45 = vmul.f32 0.2, %v3614_v50  ;;  %v3635_v55 = vmul.f32 0.2, %v3615_v41  ;;  %v8379_v52 = vmul.f32 0.2, %v8375_v28  ;;  %v3638_v27 = vsel %vm3618_vm0, %v3608_v17, %v3628_v25 }
 0x74e   : > { %v3639_v35 = vsel %vm3619_vm6, %v3609_v49, %v3629_v56  ;;  %v3640_v10 = vsel %vm3620_vm9, %v3610_v63, %v3630_v19  ;;  %v3641_v29 = vsel %vm3621_vm15, %v3611_v2, %v3631_v4  ;;  %v3642_v40 = vsel %vm3622_vm13, %v3612_v31, %v3632_v57  ;;  %v3807_v4 = vld [vmem:[#allocation2 + $0x3c] sm:$0xe] }
 0x74f   : > { %v3643_v23 = vsel %vm3623_vm14, %v3613_v15, %v3633_v47  ;;  %v3644_v13 = vsel %vm3624_vm12, %v3614_v50, %v3634_v45  ;;  %v3645_v33 = vsel %vm3625_vm4, %v3615_v41, %v3635_v55  ;;  %v3657_v11 = vmul.f32 %v3637_v14, %v7209_v39 }
 0x750   : > { %v3658_v12 = vmul.f32 %v3638_v27, %v7221_v46  ;;  %v3659_v48 = vmul.f32 %v3639_v35, %v7219_v44  ;;  %v3660_v36 = vmul.f32 %v3640_v10, %v7236_v54  ;;  %v3661_v3 = vmul.f32 %v3641_v29, %v7244_v59 }
 0x751   : > { %v3662_v37 = vmul.f32 %v3642_v40, %v7258_v7  ;;  %v3663_v61 = vmul.f32 %v3643_v23, %v9068_v34  ;;  %v3664_v51 = vmul.f32 %v3644_v13, %v7281_v30  ;;  %v3665_v38 = vmul.f32 %v3645_v33, %v7294_v53 }
 0x752   : > { %v6091_v24 = vpack.c.bf16 %v3657_v11, %v3657_v11  ;;  %v6092_v21 = vpack.c.bf16 %v3658_v12, %v3658_v12  ;;  %v6093_v0 = vpack.c.bf16 %v3659_v48, %v3659_v48  ;;  %v6094_v6 = vpack.c.bf16 %v3660_v36, %v3660_v36 }
 0x753   : > { %v6095_v22 = vpack.c.bf16 %v3661_v3, %v3661_v3  ;;  %v6096_v18 = vpack.c.bf16 %v3662_v37, %v3662_v37  ;;  %v6097_v58 = vpack.c.bf16 %v3663_v61, %v3663_v61  ;;  %v6098_v5 = vpack.c.bf16 %v3664_v51, %v3664_v51 }
 0x754   : > { %v3707_v42 = vshrl.u32 %v6092_v21, 16  ;;  %v3710_v43 = vshll.u32 %v6092_v21, 16  ;;  %v3717_v60 = vshrl.u32 %v6093_v0, 16  ;;  %v3720_v1 = vshll.u32 %v6093_v0, 16 }
 0x755   : > { %v3698_v17 = vshrl.u32 %v6091_v24, 16  ;;  %v3701_v49 = vshll.u32 %v6091_v24, 16  ;;  %v3727_v63 = vshrl.u32 %v6094_v6, 16  ;;  %v3730_v2 = vshll.u32 %v6094_v6, 16 }
 0x756   : > { %v3709_v31 = vrot.slane %v3707_v42, 6  ;;  %v3712_v15 = vrot.slane %v3710_v43, 7  ;;  %v3719_v50 = vrot.slane %v3717_v60, 6  ;;  %v3722_v41 = vrot.slane %v3720_v1, 7 }
 0x757   : > { %v3700_v16 = vrot.slane %v3698_v17, 6  ;;  %v3703_v25 = vrot.slane %v3701_v49, 7  ;;  %v3729_v56 = vrot.slane %v3727_v63, 6  ;;  %v3732_v19 = vrot.slane %v3730_v2, 7  ;;  %v3822_v2 = vld [vmem:[#allocation2 + $0x38] sm:$0xf] }
 0x758   : > { %v3713_v57 = vor.u32 %v3712_v15, %v3709_v31  ;;  %v3723_v47 = vor.u32 %v3722_v41, %v3719_v50  ;;  %v3737_v14 = vshrl.u32 %v6095_v22, 16  ;;  %v3740_v45 = vshll.u32 %v6095_v22, 16 }
 0x759   : > { %v3704_v55 = vor.u32 %v3703_v25, %v3700_v16  ;;  %v3733_v27 = vor.u32 %v3732_v19, %v3729_v56  ;;  %v3747_v35 = vshrl.u32 %v6096_v18, 16  ;;  %v3750_v10 = vshll.u32 %v6096_v18, 16 }
 0x75a   : > { %v3715_v29 = vrot.slane %v3713_v57, 4  ;;  %v3725_v40 = vrot.slane %v3723_v47, 4  ;;  %v3739_v23 = vrot.slane %v3737_v14, 6  ;;  %v3742_v13 = vrot.slane %v3740_v45, 7 }
 0x75b   : > { %v3705_v33 = vrot.slane %v3704_v55, 4  ;;  %v3808_v11 = vsel %vm7357_vm11, %v3704_v55, %v3807_v4  ;;  %v3735_v12 = vrot.slane %v3733_v27, 4  ;;  %v3749_v48 = vrot.slane %v3747_v35, 6  ;;  %v6928_v4 = vld [vmem:[%s9013_s6 + $0x38] sm:$0xff]  }
 0x75c   : > { %3809 = vst [vmem:[#allocation2 + $0x3c] sm:$0xe] %v3808_v11  ;;  %v3724_v3 = vsel %vm7406_vm3, %v3715_v29, %v3723_v47  ;;  %v3734_v37 = vsel %vm7406_vm3, %v3725_v40, %v3733_v27  ;;  %v3743_v61 = vor.u32 %v3742_v13, %v3739_v23  ;;  %v3752_v51 = vrot.slane %v3750_v10, 7  ;;  %v6929_v29 = vld [vmem:[%s9013_s6 + $0x30] sm:$0xff]  }
 0x75d   : > { %v3714_v24 = vsel %vm7406_vm3, %v3705_v33, %v3713_v57  ;;  %3811 = vst.msk [vmem:[#allocation2 + $0x44] sm:$0xf] %vm1124_vm5, %v3724_v3  ;;  %3812 = vst.msk [vmem:[#allocation2 + $0x48] sm:$0xf] %vm1124_vm5, %v3734_v37  ;;  %v3757_v62 = vshrl.u32 %v6097_v58, 16  ;;  %v3760_v21 = vshll.u32 %v6097_v58, 16  ;;  %v6099_v0 = vpack.c.bf16 %v3665_v38, %v3665_v38 }
 0x75e   : > { %3810 = vst.msk [vmem:[#allocation2 + $0x40] sm:$0xf] %vm1124_vm5, %v3714_v24  ;;  %v3744_v6 = vsel %vm7406_vm3, %v3735_v12, %v3743_v61  ;;  %v3745_v22 = vrot.slane %v3743_v61, 4  ;;  %v3753_v18 = vor.u32 %v3752_v51, %v3749_v48  ;;  %v3767_v42 = vshrl.u32 %v6098_v5, 16  ;;  %v6923_v3 = vld [vmem:[%s9013_s6 + $0x28] sm:$0xff]  }
 0x75f   : > { %3813 = vst.msk [vmem:[#allocation2 + $0x4c] sm:$0xf] %vm1124_vm5, %v3744_v6  ;;  %v3759_v43 = vrot.slane %v3757_v62, 6  ;;  %v3762_v60 = vrot.slane %v3760_v21, 7  ;;  %v3770_v1 = vshll.u32 %v6098_v5, 16  ;;  %v3777_v17 = vshrl.u32 %v6099_v0, 16 }
 0x760   : > { %v3754_v49 = vsel %vm7406_vm3, %v3745_v22, %v3753_v18  ;;  %v3755_v63 = vrot.slane %v3753_v18, 4  ;;  %v3769_v58 = vrot.slane %v3767_v42, 6  ;;  %v3780_v38 = vshll.u32 %v6099_v0, 16  ;;  %v6926_v6 = vld [vmem:[%s9013_s6 + $0x20] sm:$0xff]  }
 0x761   : > { %v3763_v31 = vor.u32 %v3762_v60, %v3759_v43  ;;  %3814 = vst.msk [vmem:[#allocation2 + $0x50] sm:$0xf] %vm1124_vm5, %v3754_v49  ;;  %v3772_v15 = vrot.slane %v3770_v1, 7  ;;  %v3779_v50 = vrot.slane %v3777_v17, 6  ;;  %vm3626_vm11 = vcmp.gt.f32.partialorder %v8375_v28, 0.0 }
 0x762   : > { %v3782_v41 = vrot.slane %v3780_v38, 7  ;;  %v3646_v16 = vsel %vm3626_vm11, %v8375_v28, %v8379_v52  ;;  %v3819_v18 = vld [vmem:[#allocation2 + $0x64] sm:$0x3]  ;;  %vm9080_vm0 = vcmask 1045504   ;;  %vm9081_vm6 = vsmask.f32 6400 }
 0x763   : > { %v8418_v5 = vld [vmem:[#allocation2 + $0x3c] sm:$0xf]  ;;  %v3764_v25 = vsel %vm7406_vm3, %v3755_v63, %v3763_v31  ;;  %v3765_v56 = vrot.slane %v3763_v31, 4  ;;  %v3773_v19 = vor.u32 %v3772_v15, %v3769_v58  ;;  %v3666_v57 = vmul.f32 %v3646_v16, %v7306_v8  ;;  %vm9082_vm9 = vmmov %vm9080_vm0 }
 0x764   : > { %v5931_v47 = vcombine.low %v3822_v2, %v8418_v5  ;;  %3815 = vst.msk [vmem:[#allocation2 + $0x54] sm:$0xf] %vm1124_vm5, %v3764_v25  ;;  %v3783_v45 = vor.u32 %v3782_v41, %v3779_v50  ;;  %vm9083_vm11 = vmmov %vm9081_vm6 }
 0x765   : > { %v8428_v14 = vld [vmem:[#allocation2 + $0x40] sm:$0xff]   ;;  %v3774_v28 = vsel %vm7406_vm3, %v3765_v56, %v3773_v19  ;;  %v3775_v52 = vrot.slane %v3773_v19, 4  ;;  %v6100_v55 = vpack.c.bf16 %v3666_v57, %v3666_v57  ;;  %v4237_v19 = vld [vmem:[#allocation2 + $0x3c] sm:$0xe] }
 0x766   : > { %6582 = vmatmul.mubr.msk.bf16.vlgmr.msra.gmra.mxu1 %vm832_vm2, %v5931_v47  ;;  %v3872_v27 = vshll.u32 %v5931_v47, 16  ;;  %3816 = vst.msk [vmem:[#allocation2 + $0x58] sm:$0xf] %vm1124_vm5, %v3774_v28  ;;  %v3877_v35 = vshll.u32 %v8428_v14, 16  ;;  %v3870_v23 = vshrl.u32 %v5931_v47, 16  ;;  %v8447_v37 = vld [vmem:[#allocation2 + $0x48] sm:$0xff]  }
 0x767   : > { %6585 = vmatprep.mubr.msk.bf16.mxu1 %vm6997_vm1, %v9057_v32  ;;  %v3784_v10 = vsel %vm7406_vm3, %v3775_v52, %v3783_v45  ;;  %6626 = vmatpush3.bf16.msra.mxu1 %v6928_v4  ;;  %v3787_v40 = vshrl.u32 %v6100_v55, 16  ;;  %v3790_v33 = vshll.u32 %v6100_v55, 16  ;;  %v3785_v61 = vrot.slane %v3783_v45, 4  ;;  %v8496_v25 = vld [vmem:[#allocation2 + $0x40] sm:$0xf]  ;;  %v8503_v57 = vld [vmem:[#allocation2 + $0x44] sm:$0xff]  }
 0x768   : > { %v3874_v13 = vrot.slane %v3872_v27, 1  ;;  %3817 = vst.msk [vmem:[#allocation2 + $0x5c] sm:$0xf] %vm1124_vm5, %v3784_v10  ;;  %6627 = vmatprep.subr.bf16.mxu1 %v9057_v32  ;;  %v3879_v11 = vrot.slane %v3877_v35, 1  ;;  %v3881_v21 = vshrl.u32 %v8428_v14, 16  ;;  %v3885_v0 = vshll.u32 %v8447_v37, 16 }
 0x769   : > { %v3789_v12 = vrot.slane %v3787_v40, 6  ;;  %v3792_v51 = vrot.slane %v3790_v33, 7  ;;  %v3889_v49 = vshrl.u32 %v8447_v37, 16  ;;  %v8501_v4 = vcombine.low %v4237_v19, %v8496_v25  ;;  %v4108_v27 = vld [vmem:[#allocation2 + $0x38] sm:$0xe]  ;;  %v6940_v33 = vld [vmem:[%s9013_s6 + $0x50] sm:$0xff]  }
 0x76a   : > { %v3875_v48 = vor.u32 %v3874_v13, %v3870_v23  ;;  %v3883_v42 = vor.u32 %v3881_v21, %v3879_v11  ;;  %v3887_v60 = vrot.slane %v3885_v0, 1  ;;  %v4281_v55 = vrot.slane %v8503_v57, 1  ;;  %v6939_v10 = vld [vmem:[%s9013_s6 + $0x58] sm:$0xff]   ;;  %v8522_v13 = vld [vmem:[#allocation2 + $0x4c] sm:$0xff]  }
 0x76b   : > { %6628 = vmatpush3.bf16.msra.mxu1 %v6929_v29  ;;  %v3793_v62 = vor.u32 %v3792_v51, %v3789_v12  ;;  %v8467_v1 = vld [vmem:[#allocation2 + $0x50] sm:$0xff]   ;;  %v4280_v45 = vrot.slane %v8501_v4, 1  ;;  %v5955_v40 = vcombine.low %v4108_v27, %v8418_v5  ;;  %v4283_v12 = vrot.slane %v8522_v13, 1 }
 0x76c   : > { %v3880_v24 = vsel %vm1356_vm7, %v3875_v48, %v3879_v11  ;;  %6673 = vmatprep.subr.bf16.mxu1 %v9057_v32  ;;  %v3888_v17 = vsel %vm1356_vm7, %v3883_v42, %v3887_v60  ;;  %v3893_v63 = vshll.u32 %v8467_v1, 16  ;;  %v3891_v9 = vor.u32 %v3889_v49, %v3887_v60  ;;  %v6933_v48 = vld [vmem:[%s9013_s6 + $0x48] sm:$0xff]  }
 0x76d   : > { %6558 = vmatmul.mubr.msk.bf16.vlgmr.msra.gmra.mxu0 %vm832_vm2, %v3880_v24  ;;  %v3794_v22 = vsel %vm7406_vm3, %v3785_v61, %v3793_v62  ;;  %v3795_v43 = vrot.slane %v3793_v62, 4  ;;  %v3897_v31 = vshrl.u32 %v8467_v1, 16  ;;  %v4116_v5 = vrot.slane %v5955_v40, 1  ;;  %v8542_v51 = vld [vmem:[#allocation2 + $0x54] sm:$0xff]  }
 0x76e   : > { %6602 = vmatpush3.bf16.msra.mxu0 %v6923_v3  ;;  %6586 = vmatmul.mubr.msk.bf16.gmra.mxu1 %vm832_vm2, %v8428_v14  ;;  %3818 = vst.msk [vmem:[#allocation2 + $0x60] sm:$0xf] %vm1124_vm5, %v3794_v22  ;;  %v3895_v58 = vrot.slane %v3893_v63, 1  ;;  %vm9070_vm5 = vcmask 1046528   ;;  %v4117_v11 = vrot.slane %v8428_v14, 1  ;;  %v6937_v14 = vld [vmem:[%s9013_s6 + $0x40] sm:$0xff]  }
 0x76f   : > { %6561 = vmatprep.mubr.msk.bf16.mxu0 %vm6997_vm1, %v9057_v32  ;;  %6589 = vmatprep.mubr.msk.bf16.mxu1 %vm6997_vm1, %v9057_v32  ;;  %v3820_v36 = vsel %vm7347_vm8, %v3795_v43, %v3819_v18  ;;  %v8482_v38 = vld [vmem:[#allocation2 + $0x58] sm:$0xff]   ;;  %v4282_v23 = vsel %vm9070_vm5, %v4280_v45, %v4281_v55  ;;  %vm9071_vm8 = vmmov %vm9070_vm5  ;;  %v4119_v24 = vrot.slane %v8447_v37, 1  ;;  %v4285_v62 = vrot.slane %v8542_v51, 1 }
 0x770   : > { %6603 = vmatprep.subr.bf16.mxu0 %v9057_v32  ;;  %3821 = vst [vmem:[#allocation2 + $0x64] sm:$0x3] %v3820_v36  ;;  %v3896_v2 = vsel %vm1356_vm7, %v3891_v9, %v3895_v58  ;;  %v3901_v15 = vshll.u32 %v8482_v38, 16  ;;  %v3899_v50 = vor.u32 %v3897_v31, %v3895_v58  ;;  %v3905_v47 = vshrl.u32 %v8482_v38, 16  ;;  %vm9072_vm3 = vmmov %vm9070_vm5 }
 0x771   : > { %v4118_v3 = vsel %vm9071_vm8, %v4116_v5, %v4117_v11  ;;  %v4284_v61 = vsel %vm9072_vm3, %v4281_v55, %v4283_v12  ;;  %vm9073_vm4 = vmmov %vm9072_vm3  ;;  %v4123_v60 = vrot.slane %v8482_v38, 1  ;;  %v4410_v9 = vshrl.u32 %v8501_v4, 16 }
 0x772   : > { %6604 = vmatpush3.bf16.msra.mxu0 %v6926_v6  ;;  %v3903_v41 = vrot.slane %v3901_v15, 1  ;;  %v4120_v21 = vsel %vm9073_vm4, %v4117_v11, %v4119_v24  ;;  %vm9075_vm12 = vmmov %vm9072_vm3  ;;  %v4421_v31 = vshll.u32 %v8503_v57, 16  ;;  %v4427_v45 = vshrl.u32 %v8522_v13, 16 }
 0x773   : > { %6649 = vmatprep.subr.bf16.mxu0 %v9057_v32  ;;  %vm9076_vm13 = vmmov %vm9072_vm3  ;;  %v4430_v55 = vshll.u32 %v8522_v13, 16  ;;  %v4583_v27 = vrot.slane %v8522_v13, 2  ;;  %v6943_v13 = vld [vmem:[%s9013_s6 + $0x60] sm:$0xff]   ;;  %v4436_v5 = vshrl.u32 %v8542_v51, 16  ;;  %v4439_v11 = vshll.u32 %v8542_v51, 16 }
 0x774   : > { %v3904_v56 = vsel %vm1356_vm7, %v3899_v50, %v3903_v41  ;;  %v3907_v52 = vor.u32 %v3905_v47, %v3903_v41  ;;  %vm9077_vm14 = vmmov %vm9072_vm3  ;;  %v4581_v50 = vrot.slane %v8503_v57, 2  ;;  %v4412_v41 = vrot.slane %v4410_v9, 1 }
 0x775   : > { %6562 = vmatmul.mubr.msk.bf16.gmra.mxu0 %vm832_vm2, %v3888_v17  ;;  %v8494_v16 = vld [vmem:[#allocation2 + $0x60] ss:$0 sps:$4 sm:$0x11]   ;;  %v4572_v17 = vld [vmem:[#allocation2 + $0x3c] sm:$0xc]  ;;  %vm9078_vm15 = vmmov %vm9072_vm3  ;;  %v4432_v40 = vrot.slane %v4430_v55, 2 }
 0x776   : > { %6590 = vmatmul.mubr.msk.bf16.gmra.mxu1 %vm832_vm2, %v8447_v37  ;;  %6565 = vmatprep.mubr.msk.bf16.mxu0 %vm6997_vm1, %v9057_v32  ;;  %v3909_v28 = vshll.u32 %v8494_v16, 16  ;;  %v8559_v6 = vld [vmem:[#allocation2 + $0x5c] sm:$0xff]   ;;  %v4121_v37 = vrot.slane %v8467_v1, 1  ;;  %v5996_v63 = vcombine.low %v4572_v17, %v8496_v25  ;;  %v4125_v58 = vrot.slane %v8494_v16, 1  ;;  %vm9079_vm10 = vmmov %vm9072_vm3 }
 0x777   : > { %6593 = vmatprep.mubr.msk.bf16.mxu1 %vm6997_vm1, %v9057_v32  ;;  %v4287_v22 = vrot.slane %v8559_v6, 1  ;;  %v6938_v43 = vld [vmem:[#allocation2 + $0x64] ss:$0 sps:$4 sm:$0x11]   ;;  %v6945_v25 = vld [vmem:[%s9013_s6 + $0x78] sm:$0xff]   ;;  %vm9084_vm5 = vmmov %vm9080_vm0 }
 0x778   : > { %v3911_v35 = vrot.slane %v3909_v28, 1  ;;  %v4122_v18 = vsel %vm9075_vm12, %v4119_v24, %v4121_v37  ;;  %v4124_v36 = vsel %vm9077_vm14, %v4121_v37, %v4123_v60  ;;  %v4580_v15 = vrot.slane %v5996_v63, 2  ;;  %v8641_v37 = vld [vmem:[#allocation2 + $0x44] sm:$0xf]  ;;  %vm9085_vm8 = vmmov %vm9081_vm6 }
 0x779   : > { %v4288_v42 = vsel %vm9076_vm13, %v4285_v62, %v4287_v22  ;;  %v4423_v28 = vrot.slane %v4421_v31, 2  ;;  %v4445_v24 = vshrl.u32 %v8559_v6, 16  ;;  %vm9087_vm4 = vmmov %vm9081_vm6  ;;  %vm9090_vm13 = vsmask.f32 5376 }
 0x77a   : > { %v3912_v29 = vsel %vm1356_vm7, %v3907_v52, %v3911_v35  ;;  %vm9074_vm7 = vmmov %vm9072_vm3  ;;  %v4582_v16 = vsel %vm9080_vm0, %v4580_v15, %v4581_v50  ;;  %v6942_v35 = vld [vmem:[%s9013_s6 + $0x68] sm:$0xff]  }
 0x77b   : > { %v4286_v0 = vsel %vm9074_vm7, %v4283_v12, %v4285_v62  ;;  %v4585_v12 = vrot.slane %v8542_v51, 2  ;;  %v4448_v62 = vshll.u32 %v8559_v6, 16  ;;  %vm9086_vm3 = vmmov %vm9080_vm0 }
 0x77c   : > { %vm9088_vm7 = vmmov %vm9080_vm0 }
 0x77d   : > { %6566 = vmatmul.mubr.msk.bf16.gmra.mxu0 %vm832_vm2, %v3896_v2  ;;  %v4418_v2 = vshrl.u32 %v8503_v57, 16  ;;  %vm9089_vm12 = vmmov %vm9087_vm4 }
 0x77e   : > { %6594 = vmatmul.mubr.msk.bf16.gmra.mxu1 %vm832_vm2, %v8467_v1  ;;  %6569 = vmatprep.mubr.msk.bf16.mxu0 %vm6997_vm1, %v9057_v32  ;;  %v4289_v1 = vrot.slane %v6938_v43, 1  ;;  %v6944_v43 = vld [vmem:[#allocation2 + $0x64] ss:$0 sps:$4 sm:$0x33]   ;;  %vm9091_vm14 = vmmov %vm9080_vm0 }
 0x77f   : > { %6597 = vmatprep.mubr.msk.bf16.mxu1 %vm6997_vm1, %v9057_v32  ;;  %v4420_v47 = vrot.slane %v4418_v2, 1  ;;  %v4589_v17 = vrot.slane %v6944_v43, 2  ;;  %v4457_v63 = vshll.u32 %v6944_v43, 16 }
 0x780   : > { %v4290_v49 = vsel %vm9078_vm15, %v4287_v22, %v4289_v1  ;;  %vm9092_vm15 = vmmov %vm9090_vm13 }
 0x781   : > { %v4424_v52 = vor.u32 %v4423_v28, %v4420_v47  ;;  %v8659_v28 = vld [vmem:[#allocation2 + $0x50] sm:$0xff]  }
 0x785   : > { %6570 = vmatmul.mubr.msk.bf16.gmra.mxu0 %vm832_vm2, %v3904_v56  ;;  %v4126_v56 = vsel %vm9079_vm10, %v4123_v60, %v4125_v58  ;;  %vm9093_vm10 = vmmov %vm9080_vm0 }
 0x786   : > { %6598 = vmatmul.mubr.msk.bf16.gmra.mxu1 %vm832_vm2, %v8482_v38  ;;  %6573 = vmatprep.mubr.msk.bf16.mxu0 %vm6997_vm1, %v9057_v32  ;;  %v4413_v38 = vshll.u32 %v8501_v4, 16  ;;  %v6946_v4 = vld [vmem:[%s9013_s6 + $0x70] sm:$0xff]   ;;  %vm9094_vm0 = vmmov %vm9090_vm13 }
 0x787   : > { %6629 = vmatprep.mubr.msk.bf16.mxu1 %vm6997_vm1, %v9057_v32 }
 0x788   : > { %v4415_v19 = vrot.slane %v4413_v38, 2 }
 0x78a   : > { %v4416_v57 = vor.u32 %v4415_v19, %v4412_v41  ;;  %v4459_v41 = vrot.slane %v4457_v63, 2 }
 0x78d   : > { %6574 = vmatmul.mubr.msk.bf16.gmra.mxu0 %vm832_vm2, %v3912_v29  ;;  %v4429_v29 = vrot.slane %v4427_v45, 1  ;;  %v4894_v45 = vshll.u32 %v8659_v28, 16 }
 0x78e   : > { %6630 = vmatmul.mubr.msk.bf16.vlgmr.msra.gmra.mxu1 %vm832_vm2, %v4282_v23  ;;  %6605 = vmatprep.mubr.msk.bf16.mxu0 %vm6997_vm1, %v9057_v32  ;;  %v4584_v23 = vsel %vm9082_vm9, %v4581_v50, %v4583_v27  ;;  %vm9096_vm9 = vmmov %vm9094_vm0 }
 0x78f   : > { %6633 = vmatprep.mubr.msk.bf16.mxu1 %vm6997_vm1, %v9057_v32  ;;  %6674 = vmatpush3.bf16.msra.mxu1 %v6939_v10  ;;  %v4425_v10 = vsel %vm9081_vm6, %v4416_v57, %v4424_v52  ;;  %vm9095_vm6 = vmmov %vm9086_vm3 }
 0x790   : > { %6675 = vmatprep.subr.bf16.mxu1 %v9057_v32 }
 0x793   : > { %6676 = vmatpush3.bf16.msra.mxu1 %v6940_v33  ;;  %v4433_v33 = vor.u32 %v4432_v40, %v4429_v29  ;;  %v8671_v29 = vld [vmem:[#allocation2 + $0x58] sm:$0xff]  }
 0x794   : > { %6721 = vmatprep.subr.bf16.mxu1 %v9057_v32  ;;  %v6979_v40 = vld [vmem:[%s9017_s10 + $0x18] sm:$0xff]  ;;  %v4749_v63 = vrot.slane %v8671_v29, 2 }
 0x795   : > { %6606 = vmatmul.mubr.msk.bf16.vlgmr.msra.gmra.mxu0 %vm832_vm2, %v4118_v3  ;;  %v4438_v3 = vrot.slane %v4436_v5, 1  ;;  %v4900_v5 = vshrl.u32 %v8671_v29, 16 }
 0x796   : > { %6650 = vmatpush3.bf16.msra.mxu0 %v6933_v48  ;;  %6634 = vmatmul.mubr.msk.bf16.gmra.mxu1 %vm832_vm2, %v4284_v61  ;;  %v4434_v48 = vsel %vm9083_vm11, %v4424_v52, %v4433_v33  ;;  %v4441_v61 = vrot.slane %v4439_v11, 2  ;;  %v4891_v52 = vshrl.u32 %v8659_v28, 16  ;;  %v4903_v11 = vshll.u32 %v8671_v29, 16  ;;  %vm9097_vm11 = vmmov %vm9086_vm3 }
 0x797   : > { %6609 = vmatprep.mubr.msk.bf16.mxu0 %vm6997_vm1, %v9057_v32  ;;  %6637 = vmatprep.mubr.msk.bf16.mxu1 %vm6997_vm1, %v9057_v32 }
 0x798   : > { %6651 = vmatprep.subr.bf16.mxu0 %v9057_v32  ;;  %v4442_v51 = vor.u32 %v4441_v61, %v4438_v3  ;;  %v6981_v3 = vld [vmem:[%s9017_s10 + $0x8] sm:$0xff] }
 0x79a   : > { %6652 = vmatpush3.bf16.msra.mxu0 %v6937_v14  ;;  %v4586_v14 = vsel %vm9084_vm5, %v4583_v27, %v4585_v12  ;;  %v4443_v22 = vsel %vm9085_vm8, %v4433_v33, %v4442_v51  ;;  %vm9098_vm5 = vmmov %vm9094_vm0 }
 0x79b   : > { %6697 = vmatprep.subr.bf16.mxu0 %v9057_v32  ;;  %vm9099_vm8 = vmmov %vm9086_vm3 }
 0x79d   : > { %6610 = vmatmul.mubr.msk.bf16.gmra.mxu0 %vm832_vm2, %v4120_v21  ;;  %v4587_v21 = vrot.slane %v8559_v6, 2 }
 0x79e   : > { %6638 = vmatmul.mubr.msk.bf16.gmra.mxu1 %vm832_vm2, %v4286_v0  ;;  %6613 = vmatprep.mubr.msk.bf16.mxu0 %vm6997_vm1, %v9057_v32  ;;  %v4701_v0 = vld [vmem:[#allocation2 + $0x40] sm:$0xc] }
 0x79f   : > { %6641 = vmatprep.mubr.msk.bf16.mxu1 %vm6997_vm1, %v9057_v32  ;;  %v4588_v60 = vsel %vm9086_vm3, %v4585_v12, %v4587_v21  ;;  %v6008_v1 = vcombine.low %v4701_v0, %v8641_v37  ;;  %v4590_v15 = vsel %vm9088_vm7, %v4587_v21, %v4589_v17  ;;  %v6980_v12 = vld [vmem:[%s9017_s10 + $0x10] sm:$0xff]  ;;  %v6982_v21 = vld [vmem:[%s9017_s10] sm:$0xff]  ;;  %vm9100_vm3 = vcmask 1044480  }
 0x7a0   : > { %v6953_v0 = vld [vmem:[%s9013_s6 + $0x80] sm:$0xff]   ;;  %vm9102_vm7 = vmmov %vm9100_vm3 }
 0x7a1   : > { %v4874_v9 = vshrl.u32 %v6008_v1, 16  ;;  %v4877_v58 = vshll.u32 %v6008_v1, 16 }
 0x7a5   : > { %6614 = vmatmul.mubr.msk.bf16.gmra.mxu0 %vm832_vm2, %v4122_v18  ;;  %v4447_v18 = vrot.slane %v4445_v24, 1  ;;  %v4905_v24 = vrot.slane %v4903_v11, 3 }
 0x7a6   : > { %6642 = vmatmul.mubr.msk.bf16.gmra.mxu1 %vm832_vm2, %v4288_v42  ;;  %6617 = vmatprep.mubr.msk.bf16.mxu0 %vm6997_vm1, %v9057_v32  ;;  %v4450_v42 = vrot.slane %v4448_v62, 2  ;;  %v8699_v62 = vld [vmem:[#allocation2 + $0x60] sm:$0xff]  }
 0x7a7   : > { %6645 = vmatprep.mubr.msk.bf16.mxu1 %vm6997_vm1, %v9057_v32 }
 0x7a8   : > { %v4451_v6 = vor.u32 %v4450_v42, %v4447_v18  ;;  %v4909_v42 = vshrl.u32 %v8699_v62, 16 }
 0x7aa   : > { %v4452_v31 = vsel %vm9087_vm4, %v4442_v51, %v4451_v6  ;;  %v4902_v51 = vrot.slane %v4900_v5, 2  ;;  %vm9101_vm4 = vmmov %vm9100_vm3 }
 0x7ac   : > { %v4906_v18 = vor.u32 %v4905_v24, %v4902_v51 }
 0x7ad   : > { %6618 = vmatmul.mubr.msk.bf16.gmra.mxu0 %vm832_vm2, %v4124_v36  ;;  %v8647_v36 = vld [vmem:[#allocation2 + $0x48] sm:$0xff]  }
 0x7ae   : > { %6646 = vmatmul.mubr.msk.bf16.gmra.mxu1 %vm832_vm2, %v4290_v49  ;;  %6621 = vmatprep.mubr.msk.bf16.mxu0 %vm6997_vm1, %v9057_v32  ;;  %v4454_v49 = vshrl.u32 %v6944_v43, 16  ;;  %v4882_v38 = vshrl.u32 %v8647_v36, 16  ;;  %v4885_v2 = vshll.u32 %v8647_v36, 16  ;;  %v4912_v43 = vshll.u32 %v8699_v62, 16 }
 0x7af   : > { %6677 = vmatprep.mubr.msk.bf16.mxu1 %vm6997_vm1, %v9057_v32 }
 0x7b0   : > { %v4456_v50 = vrot.slane %v4454_v49, 1  ;;  %v4884_v19 = vrot.slane %v4882_v38, 2  ;;  %v4887_v47 = vrot.slane %v4885_v2, 3  ;;  %v4914_v17 = vrot.slane %v4912_v43, 3 }
 0x7b1   : > { %v6954_v49 = vld [vmem:[#allocation2 + $0x68] ss:$0 sps:$4 sm:$0x77]  }
 0x7b2   : > { %v4888_v57 = vor.u32 %v4887_v47, %v4884_v19  ;;  %v4921_v38 = vshll.u32 %v6954_v49, 16  ;;  %v6955_v19 = vld [vmem:[#allocation2 + $0x68] ss:$0 sps:$4 sm:$0x33]  }
 0x7b5   : > { %6622 = vmatmul.mubr.msk.bf16.gmra.mxu0 %vm832_vm2, %v4126_v56  ;;  %v4879_v56 = vrot.slane %v4877_v58, 3  ;;  %v4918_v58 = vshrl.u32 %v6954_v49, 16 }
 0x7b6   : > { %6678 = vmatmul.mubr.msk.bf16.vlgmr.msra.gmra.mxu1 %vm832_vm2, %v4582_v16  ;;  %6653 = vmatprep.mubr.msk.bf16.mxu0 %vm6997_vm1, %v9057_v32  ;;  %v4460_v16 = vor.u32 %v4459_v41, %v4456_v50  ;;  %v4923_v50 = vrot.slane %v4921_v38, 3  ;;  %v4751_v41 = vrot.slane %v8699_v62, 2 }
 0x7b7   : > { %6681 = vmatprep.mubr.msk.bf16.mxu1 %vm6997_vm1, %v9057_v32  ;;  %6722 = vmatpush3.bf16.msra.mxu1 %v6945_v25  ;;  %v4876_v25 = vrot.slane %v4874_v9, 2 }
 0x7b8   : > { %6723 = vmatprep.subr.bf16.mxu1 %v9057_v32  ;;  %v4461_v55 = vsel %vm9089_vm12, %v4451_v6, %v4460_v16  ;;  %v4911_v6 = vrot.slane %v4909_v42, 2  ;;  %v4753_v16 = vrot.slane %v6955_v19, 2  ;;  %vm9103_vm12 = vmmov %vm9100_vm3 }
 0x7ba   : > { %v4915_v9 = vor.u32 %v4914_v17, %v4911_v6 }
 0x7bb   : > { %6724 = vmatpush3.bf16.msra.mxu1 %v6946_v4  ;;  %v4880_v4 = vor.u32 %v4879_v56, %v4876_v25  ;;  %v4752_v56 = vsel %vm9097_vm11, %v4749_v63, %v4751_v41 }
 0x7bc   : > { %6769 = vmatprep.subr.mxu1 %v9057_v32 }
 0x7bd   : > { %6654 = vmatmul.mubr.msk.bf16.vlgmr.msra.gmra.mxu0 %vm832_vm2, %v4425_v10  ;;  %v4889_v27 = vsel %vm9090_vm13, %v4880_v4, %v4888_v57  ;;  %v4896_v10 = vrot.slane %v4894_v45, 3  ;;  %v5036_v4 = vld [vmem:[#allocation2 + $0x40] sm:$0x8]  ;;  %vm9104_vm13 = vmmov %vm9100_vm3 }
 0x7be   : > { %6698 = vmatpush3.bf16.msra.mxu0 %v6942_v35  ;;  %6682 = vmatmul.mubr.msk.bf16.gmra.mxu1 %vm832_vm2, %v4584_v23  ;;  %v4893_v35 = vrot.slane %v4891_v52, 2  ;;  %v4744_v23 = vrot.slane %v6008_v1, 2  ;;  %v6037_v52 = vcombine.low %v5036_v4, %v8641_v37  ;;  %v5049_v37 = vrot.slane %v8671_v29, 3 }
 0x7bf   : > { %6657 = vmatprep.mubr.msk.bf16.mxu0 %vm6997_vm1, %v9057_v32  ;;  %6685 = vmatprep.mubr.msk.bf16.mxu1 %vm6997_vm1, %v9057_v32 }
 0x7c0   : > { %6699 = vmatprep.subr.bf16.mxu0 %v9057_v32  ;;  %v4897_v33 = vor.u32 %v4896_v10, %v4893_v35  ;;  %v5044_v45 = vrot.slane %v6037_v52, 3  ;;  %v5047_v35 = vrot.slane %v8659_v28, 3 }
 0x7c2   : > { %6700 = vmatpush3.bf16.msra.mxu0 %v6943_v13  ;;  %v4745_v13 = vrot.slane %v8647_v36, 2  ;;  %v4907_v1 = vsel %vm9094_vm0, %v4897_v33, %v4906_v18  ;;  %vm9108_vm0 = vcmask 130048  }
 0x7c3   : > { %6745 = vmatprep.subr.bf16.mxu0 %v9057_v32  ;;  %vm9111_vm11 = vmmov %vm9108_vm0 }
 0x7c4   : > { %v4746_v61 = vsel %vm9091_vm14, %v4744_v23, %v4745_v13  ;;  %vm9105_vm14 = vcmask 1040384  }
 0x7c5   : > { %6658 = vmatmul.mubr.msk.bf16.gmra.mxu0 %vm832_vm2, %v4434_v48  ;;  %v6949_v48 = vld [vmem:[%s9013_s6 + $0x88] sm:$0xff]  }
 0x7c6   : > { %6686 = vmatmul.mubr.msk.bf16.gmra.mxu1 %vm832_vm2, %v4586_v14  ;;  %6661 = vmatprep.mubr.msk.bf16.mxu0 %vm6997_vm1, %v9057_v32  ;;  %v4898_v14 = vsel %vm9092_vm15, %v4888_v57, %v4897_v33  ;;  %v4754_v57 = vsel %vm9099_vm8, %v4751_v41, %v4753_v16  ;;  %v5053_v33 = vrot.slane %v6954_v49, 3  ;;  %vm9106_vm15 = vmmov %vm9105_vm14 }
 0x7c7   : > { %6689 = vmatprep.mubr.msk.bf16.mxu1 %vm6997_vm1, %v9057_v32 }
 0x7cd   : > { %6662 = vmatmul.mubr.msk.bf16.gmra.mxu0 %vm832_vm2, %v4443_v22  ;;  %v4747_v22 = vrot.slane %v8659_v28, 2 }
 0x7ce   : > { %6690 = vmatmul.mubr.msk.bf16.gmra.mxu1 %vm832_vm2, %v4588_v60  ;;  %6665 = vmatprep.mubr.msk.bf16.mxu0 %vm6997_vm1, %v9057_v32 }
 0x7cf   : > { %6693 = vmatprep.mubr.msk.bf16.mxu1 %vm6997_vm1, %v9057_v32  ;;  %v4748_v60 = vsel %vm9093_vm10, %v4745_v13, %v4747_v22  ;;  %v4750_v2 = vsel %vm9095_vm6, %v4747_v22, %v4749_v63  ;;  %vm9107_vm10 = vcmask 64512   ;;  %vm9109_vm6 = vmmov %vm9108_vm0 }
 0x7d5   : > { %6666 = vmatmul.mubr.msk.bf16.gmra.mxu0 %vm832_vm2, %v4452_v31  ;;  %v4916_v31 = vsel %vm9096_vm9, %v4906_v18, %v4915_v9  ;;  %vm9110_vm9 = vmmov %vm9108_vm0 }
 0x7d6   : > { %6694 = vmatmul.mubr.msk.bf16.gmra.mxu1 %vm832_vm2, %v4590_v15  ;;  %6669 = vmatprep.mubr.msk.bf16.mxu0 %vm6997_vm1, %v9057_v32  ;;  %v4920_v15 = vrot.slane %v4918_v58, 2 }
 0x7d7   : > { %6725 = vmatprep.mubr.msk.bf16.mxu1 %vm6997_vm1, %v9057_v32 }
 0x7d8   : > { %v4924_v25 = vor.u32 %v4923_v50, %v4920_v15 }
 0x7da   : > { %v4925_v47 = vsel %vm9098_vm5, %v4915_v9, %v4924_v25  ;;  %vm9112_vm5 = vmmov %vm9108_vm0 }
 0x7dd   : > { %6670 = vmatmul.mubr.msk.bf16.gmra.mxu0 %vm832_vm2, %v4461_v55  ;;  %v5045_v55 = vrot.slane %v8647_v36, 3  ;;  %v5050_v36 = vsel %vm9102_vm7, %v5047_v35, %v5049_v37 }
 0x7de   : > { %6726 = vmatmul.mubr.msk.bf16.vlgmr.msra.gmra.mxu1 %vm832_vm2, %v4889_v27  ;;  %6701 = vmatprep.mubr.msk.bf16.mxu0 %vm6997_vm1, %v9057_v32 }
 0x7df   : > { %6729 = vmatprep.mubr.msk.bf16.mxu1 %vm6997_vm1, %v9057_v32  ;;  %6770 = vmatpush3.msra.mxu1 %v6979_v40  ;;  %v5046_v27 = vsel %vm9100_vm3, %v5044_v45, %v5045_v55  ;;  %v5048_v10 = vsel %vm9101_vm4, %v5045_v55, %v5047_v35  ;;  %v5051_v40 = vrot.slane %v8699_v62, 3 }
 0x7e0   : > { %6771 = vmatprep.subr.mxu1 %v9057_v32 }
 0x7e1   : > { %6772 = vmatpush3.msra.mxu1 %v6980_v12  ;;  %v5052_v28 = vsel %vm9103_vm12, %v5049_v37, %v5051_v40  ;;  %v5054_v11 = vsel %vm9104_vm13, %v5051_v40, %v5053_v33 }
 0x7e2   : > { %6773 = vmatprep.subr.mxu1 %v9057_v32 }
 0x7e3   : > { %6774 = vmatpush3.msra.mxu1 %v6981_v3 }
 0x7e4   : > { %6775 = vmatprep.subr.mxu1 %v9057_v32 }
 0x7e5   : > { %6702 = vmatmul.mubr.msk.bf16.vlgmr.msra.gmra.mxu0 %vm832_vm2, %v4746_v61  ;;  %6776 = vmatpush3.msra.mxu1 %v6982_v21 }
 0x7e6   : > { %6746 = vmatpush3.bf16.msra.mxu0 %v6949_v48  ;;  %6730 = vmatmul.mubr.msk.bf16.gmra.mxu1 %vm832_vm2, %v4898_v14 }
 0x7e7   : > { %6705 = vmatprep.mubr.msk.bf16.mxu0 %vm6997_vm1, %v9057_v32  ;;  %6733 = vmatprep.mubr.msk.bf16.mxu1 %vm6997_vm1, %v9057_v32 }
 0x7e8   : > { %6747 = vmatprep.subr.bf16.mxu0 %v9057_v32  ;;  %6780 = vmatprep.subr.mxu1 %v9057_v32 }
 0x7ea   : > { %6748 = vmatpush3.bf16.msra.mxu0 %v6953_v0 }
 0x7ed   : > { %6706 = vmatmul.mubr.msk.bf16.gmra.mxu0 %vm832_vm2, %v4748_v60 }
 0x7ee   : > { %6734 = vmatmul.mubr.msk.bf16.gmra.mxu1 %vm832_vm2, %v4907_v1  ;;  %6709 = vmatprep.mubr.msk.bf16.mxu0 %vm6997_vm1, %v9057_v32 }
 0x7ef   : > { %6737 = vmatprep.mubr.msk.bf16.mxu1 %vm6997_vm1, %v9057_v32 }
 0x7f5   : > { %6710 = vmatmul.mubr.msk.bf16.gmra.mxu0 %vm832_vm2, %v4750_v2 }
 0x7f6   : > { %6738 = vmatmul.mubr.msk.bf16.gmra.mxu1 %vm832_vm2, %v4916_v31  ;;  %6713 = vmatprep.mubr.msk.bf16.mxu0 %vm6997_vm1, %v9057_v32 }
 0x7f7   : > { %6741 = vmatprep.mubr.msk.bf16.mxu1 %vm6997_vm1, %v9057_v32 }
 0x7fd   : > { %6714 = vmatmul.mubr.msk.bf16.gmra.mxu0 %vm832_vm2, %v4752_v56 }
 0x7fe   : > { %6742 = vmatmul.mubr.msk.bf16.gmra.mxu1 %vm832_vm2, %v4925_v47  ;;  %6717 = vmatprep.mubr.msk.bf16.mxu0 %vm6997_vm1, %v9057_v32 }
 0x7ff   : > { %6777 = vmatprep.mubr.msk.f32.mxu1 %vm6997_vm1, %v9057_v32 }
 0x805   : > { %6718 = vmatmul.mubr.msk.bf16.gmra.mxu0 %vm832_vm2, %v4754_v57 }
 0x806   : > { %6749 = vmatprep.mubr.msk.bf16.mxu0 %vm6997_vm1, %v9057_v32 }
 0x80d   : > { %6750 = vmatmul.mubr.msk.bf16.vlgmr.msra.gmra.mxu0 %vm832_vm2, %v5046_v27 }
 0x80e   : > { %6753 = vmatprep.mubr.msk.bf16.mxu0 %vm6997_vm1, %v9057_v32 }
 0x815   : > { %6754 = vmatmul.mubr.msk.bf16.gmra.mxu0 %vm832_vm2, %v5048_v10 }
 0x816   : > { %6757 = vmatprep.mubr.msk.bf16.mxu0 %vm6997_vm1, %v9057_v32 }
 0x81d   : > { %6758 = vmatmul.mubr.msk.bf16.gmra.mxu0 %vm832_vm2, %v5050_v36 }
 0x81e   : > { %6761 = vmatprep.mubr.msk.bf16.mxu0 %vm6997_vm1, %v9057_v32 }
 0x825   : > { %6762 = vmatmul.mubr.msk.bf16.gmra.mxu0 %vm832_vm2, %v5052_v28 }
 0x826   : > { %v4069_v23 = vpop.f32.mrf.mxu1  ;;  %6765 = vmatprep.mubr.msk.bf16.mxu0 %vm6997_vm1, %v9057_v32 }
 0x828   : > { %v6583_v13 = vpop.f32.mrf.mxu1 }
 0x82a   : > { %v4072_v29 = vpop.f32.mrf.mxu1 }
 0x82c   : > { %v6584_v5 = vpop.f32.mrf.mxu1 }
 0x82d   : > { %v3974_v12 = vpop.f32.mrf.mxu0  ;;  %6766 = vmatmul.mubr.msk.bf16.gmra.mxu0 %vm832_vm2, %v5054_v11 }
 0x82e   : > { %v4070_v48 = vadd.f32 %v4069_v23, %v3974_v12  ;;  %v4077_v3 = vpop.f32.mrf.mxu1 }
 0x82f   : > { %v6559_v61 = vpop.f32.mrf.mxu0 }
 0x830   : > { %v6587_v14 = vpop.f32.mrf.mxu1 }
 0x831   : > { %v3977_v51 = vpop.f32.mrf.mxu0 }
 0x832   : > { %v4073_v24 = vadd.f32 %v4072_v29, %v3977_v51  ;;  %v4080_v62 = vpop.f32.mrf.mxu1 }
 0x833   : > { %v6560_v21 = vpop.f32.mrf.mxu0 }
 0x834   : > { %v6588_v0 = vpop.f32.mrf.mxu1 }
 0x835   : > { %v3982_v22 = vpop.f32.mrf.mxu0 }
 0x836   : > { %v4078_v18 = vadd.f32 %v4077_v3, %v3982_v22  ;;  %v4085_v42 = vpop.f32.mrf.mxu1 }
 0x837   : > { %v6563_v43 = vpop.f32.mrf.mxu0 }
 0x838   : > { %v6591_v60 = vpop.f32.mrf.mxu1 }
 0x839   : > { %v3985_v1 = vpop.f32.mrf.mxu0 }
 0x83a   : > { %v4081_v6 = vadd.f32 %v4080_v62, %v3985_v1  ;;  %v4088_v17 = vpop.f32.mrf.mxu1 }
 0x83b   : > { %v6564_v49 = vpop.f32.mrf.mxu0 }
 0x83c   : > { %v6592_v63 = vpop.f32.mrf.mxu1 }
 0x83d   : > { %v3990_v9 = vpop.f32.mrf.mxu0 }
 0x83e   : > { %v4086_v58 = vadd.f32 %v4085_v42, %v3990_v9  ;;  %v4093_v38 = vpop.f32.mrf.mxu1 }
 0x83f   : > { %v6567_v2 = vpop.f32.mrf.mxu0 }
 0x840   : > { %v6595_v31 = vpop.f32.mrf.mxu1 }
 0x841   : > { %v3993_v15 = vpop.f32.mrf.mxu0 }
 0x842   : > { %v4089_v50 = vadd.f32 %v4088_v17, %v3993_v15  ;;  %v4096_v41 = vpop.f32.mrf.mxu1 }
 0x843   : > { %v6568_v25 = vpop.f32.mrf.mxu0 }
 0x844   : > { %v6596_v56 = vpop.f32.mrf.mxu1 }
 0x845   : > { %v3998_v19 = vpop.f32.mrf.mxu0 }
 0x846   : > { %v4094_v47 = vadd.f32 %v4093_v38, %v3998_v19  ;;  %v4101_v16 = vpop.f32.mrf.mxu1 }
 0x847   : > { %v6571_v4 = vpop.f32.mrf.mxu0 }
 0x848   : > { %v6599_v57 = vpop.f32.mrf.mxu1 }
 0x849   : > { %v4001_v52 = vpop.f32.mrf.mxu0 }
 0x84a   : > { %v4097_v45 = vadd.f32 %v4096_v41, %v4001_v52  ;;  %v4104_v55 = vpop.f32.mrf.mxu1 }
 0x84b   : > { %v6572_v27 = vpop.f32.mrf.mxu0 }
 0x84c   : > { %v6600_v35 = vpop.f32.mrf.mxu1 }
 0x84d   : > { %v4006_v10 = vpop.f32.mrf.mxu0 }
 0x84e   : > { %v4102_v37 = vadd.f32 %v4101_v16, %v4006_v10  ;;  %v4352_v36 = vpop.f32.mrf.mxu1 }
 0x84f   : > { %v6575_v40 = vpop.f32.mrf.mxu0 }
 0x850   : > { %v6631_v28 = vpop.f32.mrf.mxu1 }
 0x851   : > { %v4009_v23 = vpop.f32.mrf.mxu0 }
 0x852   : > { %v4105_v13 = vadd.f32 %v4104_v55, %v4009_v23  ;;  %v4355_v33 = vpop.f32.mrf.mxu1 }
 0x853   : > { %v6576_v29 = vpop.f32.mrf.mxu0 }
 0x854   : > { %v6632_v5 = vpop.f32.mrf.mxu1 }
 0x855   : > { %v4188_v11 = vpop.f32.mrf.mxu0 }
 0x856   : > { %v4227_v12 = vadd.f32 %v4188_v11, %v4070_v48  ;;  %v4360_v3 = vpop.f32.mrf.mxu1 }
 0x857   : > { %v6607_v61 = vpop.f32.mrf.mxu0 }
 0x858   : > { %v6635_v14 = vpop.f32.mrf.mxu1  ;;  %v4391_v51 = vadd.f32 %v4352_v36, %v4227_v12 }
 0x859   : > { %v4191_v62 = vpop.f32.mrf.mxu0 }
 0x85a   : > { %v4228_v21 = vadd.f32 %v4191_v62, %v4073_v24  ;;  %v4363_v0 = vpop.f32.mrf.mxu1 }
 0x85b   : > { %v6608_v22 = vpop.f32.mrf.mxu0 }
 0x85c   : > { %v6636_v42 = vpop.f32.mrf.mxu1  ;;  %v4392_v43 = vadd.f32 %v4355_v33, %v4228_v21 }
 0x85d   : > { %v4196_v60 = vpop.f32.mrf.mxu0 }
 0x85e   : > { %v4229_v1 = vadd.f32 %v4196_v60, %v4078_v18  ;;  %v4368_v17 = vpop.f32.mrf.mxu1 }
 0x85f   : > { %v6611_v49 = vpop.f32.mrf.mxu0 }
 0x860   : > { %v6639_v63 = vpop.f32.mrf.mxu1  ;;  %v4393_v9 = vadd.f32 %v4360_v3, %v4229_v1 }
 0x861   : > { %v4199_v38 = vpop.f32.mrf.mxu0 }
 0x862   : > { %v4230_v2 = vadd.f32 %v4199_v38, %v4081_v6  ;;  %v4371_v31 = vpop.f32.mrf.mxu1 }
 0x863   : > { %v6612_v48 = vpop.f32.mrf.mxu0 }
 0x864   : > { %v6640_v15 = vpop.f32.mrf.mxu1  ;;  %v4394_v41 = vadd.f32 %v4363_v0, %v4230_v2 }
 0x865   : > { %v4204_v25 = vpop.f32.mrf.mxu0 }
 0x866   : > { %v4231_v56 = vadd.f32 %v4204_v25, %v4086_v58  ;;  %v4376_v19 = vpop.f32.mrf.mxu1 }
 0x867   : > { %v6615_v24 = vpop.f32.mrf.mxu0 }
 0x868   : > { %v6643_v16 = vpop.f32.mrf.mxu1  ;;  %v4395_v4 = vadd.f32 %v4368_v17, %v4231_v56 }
 0x869   : > { %v4207_v57 = vpop.f32.mrf.mxu0 }
 0x86a   : > { %v4232_v52 = vadd.f32 %v4207_v57, %v4089_v50  ;;  %v4379_v55 = vpop.f32.mrf.mxu1 }
 0x86b   : > { %v6616_v18 = vpop.f32.mrf.mxu0 }
 0x86c   : > { %v6644_v27 = vpop.f32.mrf.mxu1  ;;  %v4396_v35 = vadd.f32 %v4371_v31, %v4232_v52 }
 0x86d   : > { %v4212_v10 = vpop.f32.mrf.mxu0 }
 0x86e   : > { %v4233_v36 = vadd.f32 %v4212_v10, %v4094_v47  ;;  %v4384_v40 = vpop.f32.mrf.mxu1 }
 0x86f   : > { %v6619_v6 = vpop.f32.mrf.mxu0 }
 0x870   : > { %v6647_v28 = vpop.f32.mrf.mxu1  ;;  %v4397_v23 = vadd.f32 %v4376_v19, %v4233_v36 }
 0x871   : > { %v4215_v33 = vpop.f32.mrf.mxu0 }
 0x872   : > { %v4234_v29 = vadd.f32 %v4215_v33, %v4097_v45  ;;  %v4387_v5 = vpop.f32.mrf.mxu1 }
 0x873   : > { %v6620_v58 = vpop.f32.mrf.mxu0 }
 0x874   : > { %v6648_v11 = vpop.f32.mrf.mxu1  ;;  %v4398_v12 = vadd.f32 %v4379_v55, %v4234_v29 }
 0x875   : > { %v4220_v3 = vpop.f32.mrf.mxu0 }
 0x876   : > { %v4235_v61 = vadd.f32 %v4220_v3, %v4102_v37  ;;  %v4652_v14 = vpop.f32.mrf.mxu1 }
 0x877   : > { %v6623_v50 = vpop.f32.mrf.mxu0 }
 0x878   : > { %v6679_v62 = vpop.f32.mrf.mxu1  ;;  %v4399_v21 = vadd.f32 %v4384_v40, %v4235_v61 }
 0x879   : > { %v4223_v0 = vpop.f32.mrf.mxu0 }
 0x87a   : > { %v4236_v22 = vadd.f32 %v4223_v0, %v4105_v13  ;;  %v4655_v42 = vpop.f32.mrf.mxu1 }
 0x87b   : > { %v6624_v47 = vpop.f32.mrf.mxu0 }
 0x87c   : > { %v6680_v60 = vpop.f32.mrf.mxu1  ;;  %v4400_v1 = vadd.f32 %v4387_v5, %v4236_v22 }
 0x87d   : > { %v4523_v17 = vpop.f32.mrf.mxu0 }
 0x87e   : > { %v4562_v49 = vadd.f32 %v4523_v17, %v4391_v51  ;;  %v4660_v63 = vpop.f32.mrf.mxu1 }
 0x87f   : > { %v6655_v45 = vpop.f32.mrf.mxu0 }
 0x880   : > { %v6683_v38 = vpop.f32.mrf.mxu1  ;;  %v4691_v2 = vadd.f32 %v4652_v14, %v4562_v49 }
 0x881   : > { %v4526_v31 = vpop.f32.mrf.mxu0 }
 0x882   : > { %v4563_v48 = vadd.f32 %v4526_v31, %v4392_v43  ;;  %v4663_v15 = vpop.f32.mrf.mxu1 }
 0x883   : > { %v6656_v37 = vpop.f32.mrf.mxu0 }
 0x884   : > { %v6684_v25 = vpop.f32.mrf.mxu1  ;;  %v8770_v56 = vadd.f32 %v4655_v42, %v4563_v48 }
 0x885   : > { %v4531_v19 = vpop.f32.mrf.mxu0 }
 0x886   : > { %v4564_v24 = vadd.f32 %v4531_v19, %v4393_v9  ;;  %v4668_v13 = vpop.f32.mrf.mxu1 }
 0x887   : > { %v6659_v16 = vpop.f32.mrf.mxu0 }
 0x888   : > { %v6687_v57 = vpop.f32.mrf.mxu1  ;;  %v8772_v52 = vadd.f32 %v4660_v63, %v4564_v24 }
 0x889   : > { %v4534_v55 = vpop.f32.mrf.mxu0 }
 0x88a   : > { %v4565_v51 = vadd.f32 %v4534_v55, %v4394_v41  ;;  %v4671_v18 = vpop.f32.mrf.mxu1 }
 0x88b   : > { %v6660_v27 = vpop.f32.mrf.mxu0 }
 0x88c   : > { %v6688_v10 = vpop.f32.mrf.mxu1  ;;  %v8774_v36 = vadd.f32 %v4663_v15, %v4565_v51 }
 0x88d   : > { %v4539_v43 = vpop.f32.mrf.mxu0 }
 0x88e   : > { %v4566_v40 = vadd.f32 %v4539_v43, %v4395_v4  ;;  %v4676_v6 = vpop.f32.mrf.mxu1 }
 0x88f   : > { %v6663_v28 = vpop.f32.mrf.mxu0 }
 0x890   : > { %v6691_v33 = vpop.f32.mrf.mxu1  ;;  %v8776_v29 = vadd.f32 %v4668_v13, %v4566_v40 }
 0x891   : > { %v4542_v9 = vpop.f32.mrf.mxu0 }
 0x892   : > { %v4567_v5 = vadd.f32 %v4542_v9, %v4396_v35  ;;  %v4679_v58 = vpop.f32.mrf.mxu1 }
 0x893   : > { %v6664_v11 = vpop.f32.mrf.mxu0 }
 0x894   : > { %v6692_v3 = vpop.f32.mrf.mxu1  ;;  %v8778_v61 = vadd.f32 %v4671_v18, %v4567_v5 }
 0x895   : > { %v4547_v41 = vpop.f32.mrf.mxu0 }
 0x896   : > { %v4568_v14 = vadd.f32 %v4547_v41, %v4397_v23  ;;  %v4684_v50 = vpop.f32.mrf.mxu1 }
 0x897   : > { %v6667_v62 = vpop.f32.mrf.mxu0 }
 0x898   : > { %v6695_v0 = vpop.f32.mrf.mxu1  ;;  %v8780_v22 = vadd.f32 %v4676_v6, %v4568_v14 }
 0x899   : > { %v4550_v4 = vpop.f32.mrf.mxu0 }
 0x89a   : > { %v4569_v42 = vadd.f32 %v4550_v4, %v4398_v12  ;;  %v4687_v47 = vpop.f32.mrf.mxu1 }
 0x89b   : > { %v6668_v60 = vpop.f32.mrf.mxu0 }
 0x89c   : > { %v6696_v17 = vpop.f32.mrf.mxu1  ;;  %v8782_v49 = vadd.f32 %v4679_v58, %v4569_v42 }
 0x89d   : > { %v4555_v35 = vpop.f32.mrf.mxu0 }
 0x89e   : > { %v4570_v63 = vadd.f32 %v4555_v35, %v4399_v21  ;;  %v4987_v45 = vpop.f32.mrf.mxu1 }
 0x89f   : > { %v6671_v38 = vpop.f32.mrf.mxu0 }
 0x8a0   : > { %v6727_v31 = vpop.f32.mrf.mxu1  ;;  %v8784_v48 = vadd.f32 %v4684_v50, %v4570_v63 }
 0x8a1   : > { %v4558_v23 = vpop.f32.mrf.mxu0 }
 0x8a2   : > { %v4571_v15 = vadd.f32 %v4558_v23, %v4400_v1  ;;  %v4990_v37 = vpop.f32.mrf.mxu1 }
 0x8a3   : > { %v6672_v25 = vpop.f32.mrf.mxu0 }
 0x8a4   : > { %v6728_v19 = vpop.f32.mrf.mxu1  ;;  %v8786_v24 = vadd.f32 %v4687_v47, %v4571_v15 }
 0x8a5   : > { %v4816_v12 = vpop.f32.mrf.mxu0 }
 0x8a6   : > { %v4855_v13 = vadd.f32 %v4816_v12, %v4691_v2  ;;  %v4995_v16 = vpop.f32.mrf.mxu1 }
 0x8a7   : > { %v6703_v57 = vpop.f32.mrf.mxu0 }
 0x8a8   : > { %v6731_v55 = vpop.f32.mrf.mxu1  ;;  %v5026_v51 = vadd.f32 %v4987_v45, %v4855_v13 }
 0x8a9   : > { %v4819_v18 = vpop.f32.mrf.mxu0 }
 0x8aa   : > { %v4998_v21 = vpop.f32.mrf.mxu1  ;;  %v4856_v19 = vadd.f32 %v4819_v18, %v8770_v56  ;;  %v8803_v56 = vld [vmem:[%s9014_s7] ss:$0 sm:$0xff] }
 0x8ab   : > { %v6704_v27 = vpop.f32.mrf.mxu0 }
 0x8ac   : > { %v6732_v10 = vpop.f32.mrf.mxu1  ;;  %v5027_v55 = vadd.f32 %v4990_v37, %v4856_v19 }
 0x8ad   : > { %v4824_v43 = vpop.f32.mrf.mxu0 }
 0x8ae   : > { %v5003_v40 = vpop.f32.mrf.mxu1  ;;  %v4857_v57 = vadd.f32 %v4824_v43, %v8772_v52 }
 0x8af   : > { %v6707_v6 = vpop.f32.mrf.mxu0 }
 0x8b0   : > { %v6735_v28 = vpop.f32.mrf.mxu1 }
 0x8b1   : > { %v4827_v1 = vpop.f32.mrf.mxu0 }
 0x8b2   : > { %v5006_v33 = vpop.f32.mrf.mxu1  ;;  %v4858_v10 = vadd.f32 %v4827_v1, %v8774_v36 }
 0x8b3   : > { %v6708_v9 = vpop.f32.mrf.mxu0 }
 0x8b4   : > { %v6736_v5 = vpop.f32.mrf.mxu1 }
 0x8b5   : > { %v4832_v58 = vpop.f32.mrf.mxu0  ;;  %v5028_v5 = vadd.f32 %v4995_v16, %v4857_v57 }
 0x8b6   : > { %v5011_v11 = vpop.f32.mrf.mxu1  ;;  %v4859_v9 = vadd.f32 %v4832_v58, %v8776_v29 }
 0x8b7   : > { %v6711_v3 = vpop.f32.mrf.mxu0 }
 0x8b8   : > { %v6739_v2 = vpop.f32.mrf.mxu1  ;;  %v5030_v43 = vadd.f32 %v5003_v40, %v4859_v9 }
 0x8b9   : > { %v4835_v41 = vpop.f32.mrf.mxu0 }
 0x8ba   : > { %v8788_v14 = vpop.f32.mrf.mxu1  ;;  %v4860_v36 = vadd.f32 %v4835_v41, %v8778_v61 }
 0x8bb   : > { %v6712_v50 = vpop.f32.mrf.mxu0 }
 0x8bc   : > { %v6740_v62 = vpop.f32.mrf.mxu1  ;;  %v5031_v61 = vadd.f32 %v5006_v33, %v4860_v36 }
 0x8bd   : > { %v4840_v0 = vpop.f32.mrf.mxu0  ;;  %v5029_v62 = vadd.f32 %v4998_v21, %v4858_v10 }
 0x8be   : > { %v8790_v4 = vpop.f32.mrf.mxu1 }
 0x8bf   : > { %v6715_v42 = vpop.f32.mrf.mxu0 }
 0x8c0   : > { %v6743_v47 = vpop.f32.mrf.mxu1  ;;  %v4861_v42 = vadd.f32 %v4840_v0, %v8780_v22 }
 0x8c1   : > { %v4843_v60 = vpop.f32.mrf.mxu0 }
 0x8c2   : > { %v8792_v17 = vpop.f32.mrf.mxu1 }
 0x8c3   : > { %v6716_v35 = vpop.f32.mrf.mxu0 }
 0x8c4   : > { %v6744_v63 = vpop.f32.mrf.mxu1 }
 0x8c5   : > { %v4848_v45 = vpop.f32.mrf.mxu0 }
 0x8c7   : > { %v6719_v38 = vpop.f32.mrf.mxu0 }
 0x8c9   : > { %v8794_v31 = vpop.f32.mrf.mxu0 }
 0x8cb   : > { %v6720_v23 = vpop.f32.mrf.mxu0 }
 0x8cd   : > { %v5116_v15 = vpop.f32.mrf.mxu0 }
 0x8ce   : > { %v5155_v3 = vadd.f32 %v5116_v15, %v5026_v51 }
 0x8cf   : > { %v6751_v25 = vpop.f32.mrf.mxu0 }
 0x8d0   : > { %v8810_v29 = vadd.f32 %v8803_v56, %v5155_v3 }
 0x8d1   : > { %v5119_v12 = vpop.f32.mrf.mxu0 }
 0x8d2   : > { %v5156_v6 = vadd.f32 %v5119_v12, %v5027_v55  ;;  %v5175_v40 = vmul.f32 %v8810_v29, %v7209_v39  ;;  %v5032_v39 = vadd.f32 %v5011_v11, %v4861_v42  ;;  %v4863_v12 = vadd.f32 %v4848_v45, %v8784_v48 }
 0x8d3   : > { %v6752_v13 = vpop.f32.mrf.mxu0 }
 0x8d4   : > { %v8806_v52 = vadd.f32 %v8803_v56, %v5156_v6  ;;  %v5210_v15 = vmul.f32 %v5175_v40, %v8810_v29  ;;  %v5185_v13 = vsel %vm832_vm2, %v5175_v40, 0.0 }
 0x8d5   : > { %v5124_v27 = vpop.f32.mrf.mxu0 }
 0x8d6   : > { %v5157_v50 = vadd.f32 %v5124_v27, %v5028_v5  ;;  %v5176_v1 = vmul.f32 %v8806_v52, %v7221_v46  ;;  %v4862_v46 = vadd.f32 %v4843_v60, %v8782_v49  ;;  %v5220_v6 = vsel %vm832_vm2, %v5210_v15, 0.0 }
 0x8d7   : > { %v6755_v28 = vpop.f32.mrf.mxu0 }
 0x8d8   : > { %v8813_v51 = vadd.f32 %v8803_v56, %v5157_v50  ;;  %v5211_v23 = vmul.f32 %v5176_v1, %v8806_v52  ;;  %v5033_v11 = vadd.f32 %v8788_v14, %v4862_v46 }
 0x8d9   : > { %v5127_v2 = vpop.f32.mrf.mxu0 }
 0x8da   : > { %v5158_v18 = vadd.f32 %v5127_v2, %v5029_v62  ;;  %v5177_v63 = vmul.f32 %v8813_v51, %v7219_v44  ;;  %v5186_v44 = vsel %vm832_vm2, %v5176_v1, 0.0 }
 0x8db   : > { %v6756_v37 = vpop.f32.mrf.mxu0  ;;  %v5187_v48 = vadd.f32 %v5186_v44, %v5185_v13 }
 0x8dc   : > { %v8819_v47 = vadd.f32 %v8803_v56, %v5158_v18  ;;  %v5212_v49 = vmul.f32 %v5177_v63, %v8813_v51  ;;  %v5188_v55 = vsel %vm832_vm2, %v5177_v63, 0.0  ;;  %v5034_v37 = vadd.f32 %v8790_v4, %v4863_v12 }
 0x8dd   : > { %v5132_v16 = vpop.f32.mrf.mxu0  ;;  %v5189_v50 = vadd.f32 %v5188_v55, %v5187_v48 }
 0x8de   : > { %v5159_v21 = vadd.f32 %v5132_v16, %v5030_v43  ;;  %v5178_v0 = vmul.f32 %v8819_v47, %v7236_v54  ;;  %v5221_v54 = vsel %vm832_vm2, %v5211_v23, 0.0  ;;  %v5223_v9 = vsel %vm832_vm2, %v5212_v49, 0.0 }
 0x8df   : > { %v6759_v58 = vpop.f32.mrf.mxu0  ;;  %v5222_v2 = vadd.f32 %v5221_v54, %v5220_v6 }
 0x8e0   : > { %v8824_v41 = vadd.f32 %v8803_v56, %v5159_v21  ;;  %v5213_v27 = vmul.f32 %v5178_v0, %v8819_v47  ;;  %v5190_v14 = vsel %vm832_vm2, %v5178_v0, 0.0 }
 0x8e1   : > { %v5135_v35 = vpop.f32.mrf.mxu0  ;;  %v5224_v21 = vadd.f32 %v5223_v9, %v5222_v2 }
 0x8e2   : > { %v5160_v38 = vadd.f32 %v5135_v35, %v5031_v61  ;;  %v5179_v25 = vmul.f32 %v8824_v41, %v7244_v59  ;;  %v5225_v36 = vsel %vm832_vm2, %v5213_v27, 0.0 }
 0x8e3   : > { %v6760_v22 = vpop.f32.mrf.mxu0  ;;  %v5226_v61 = vadd.f32 %v5225_v36, %v5224_v21 }
 0x8e4   : > { %v8833_v33 = vadd.f32 %v8803_v56, %v5160_v38  ;;  %v5214_v45 = vmul.f32 %v5179_v25, %v8824_v41  ;;  %v5192_v18 = vsel %vm832_vm2, %v5179_v25, 0.0 }
 0x8e5   : > { %v5140_v19 = vpop.f32.mrf.mxu0 }
 0x8e6   : > { %v5161_v60 = vadd.f32 %v5140_v19, %v5032_v39  ;;  %v5180_v59 = vmul.f32 %v8833_v33, %v7258_v7  ;;  %v4864_v7 = vadd.f32 %v8794_v31, %v8786_v24  ;;  %v5227_v1 = vsel %vm832_vm2, %v5214_v45, 0.0 }
 0x8e7   : > { %v6763_v57 = vpop.f32.mrf.mxu0  ;;  %v5228_v0 = vadd.f32 %v5227_v1, %v5226_v61  ;;  %v6984_v1 = vld [vmem:[%s9018_s11] sm:$0xff] }
 0x8e8   : > { %v8849_v10 = vadd.f32 %v8803_v56, %v5161_v60  ;;  %v5215_v43 = vmul.f32 %v5180_v59, %v8833_v33  ;;  %v5194_v24 = vsel %vm832_vm2, %v5180_v59, 0.0  ;;  %v5035_v63 = vadd.f32 %v8792_v17, %v4864_v7 }
 0x8e9   : > { %v5143_v28 = vpop.f32.mrf.mxu0 }
 0x8ea   : > { %v5181_v5 = vmul.f32 %v8849_v10, %v9068_v34  ;;  %v5162_v3 = vadd.f32 %v5143_v28, %v5033_v11  ;;  %v5191_v34 = vadd.f32 %v5190_v14, %v5189_v50  ;;  %v5229_v38 = vsel %vm832_vm2, %v5215_v43, 0.0 }
 0x8eb   : > { %v6764_v62 = vpop.f32.mrf.mxu0  ;;  %v5230_v44 = vadd.f32 %v5229_v38, %v5228_v0  ;;  %v6959_v0 = vld [vmem:[%s7175_s21 + $0x30] sm:$0xff]  }
 0x8ec   : > { %v8864_v16 = vadd.f32 %v8803_v56, %v5162_v3  ;;  %v5216_v31 = vmul.f32 %v5181_v5, %v8849_v10  ;;  %v5193_v40 = vadd.f32 %v5192_v18, %v5191_v34  ;;  %v5196_v46 = vsel %vm832_vm2, %v5181_v5, 0.0 }
 0x8ed   : > { %v5148_v58 = vpop.f32.mrf.mxu0 }
 0x8ee   : > { %v5182_v4 = vmul.f32 %v8864_v16, %v7281_v30  ;;  %v5163_v42 = vadd.f32 %v5148_v58, %v5034_v37  ;;  %v5195_v39 = vadd.f32 %v5194_v24, %v5193_v40  ;;  %v5231_v30 = vsel %vm832_vm2, %v5216_v31, 0.0 }
 0x8ef   : > { %v6767_v35 = vpop.f32.mrf.mxu0  ;;  %v5232_v11 = vadd.f32 %v5231_v30, %v5230_v44  ;;  %v6962_v30 = vld [vmem:[%s7175_s21 + $0x48] sm:$0xff]  }
 0x8f0   : > { %v5217_v23 = vmul.f32 %v5182_v4, %v8864_v16  ;;  %v8876_v22 = vadd.f32 %v8803_v56, %v5163_v42  ;;  %v5198_v25 = vsel %vm832_vm2, %v5182_v4, 0.0  ;;  %v5197_v49 = vadd.f32 %v5196_v46, %v5195_v39  ;;  %v6960_v39 = vld [vmem:[%s7175_s21 + $0x38] sm:$0xff]  }
 0x8f1   : > { %v5151_v15 = vpop.f32.mrf.mxu0 }
 0x8f2   : > { %v5183_v19 = vmul.f32 %v8876_v22, %v7294_v53  ;;  %v5164_v17 = vadd.f32 %v5151_v15, %v5035_v63  ;;  %v5233_v12 = vsel %vm832_vm2, %v5217_v23, 0.0  ;;  %v5199_v55 = vadd.f32 %v5198_v25, %v5197_v49  ;;  %v6957_v63 = vld [vmem:[%s9019_s12] sm:$0xff]   ;;  %v6958_v23 = vld [vmem:[%s7175_s21 + $0x28] sm:$0xff]  }
 0x8f3   : > { %v6768_v60 = vpop.f32.mrf.mxu0  ;;  %v5234_v59 = vadd.f32 %v5233_v12, %v5232_v11  ;;  %v6961_v15 = vld [vmem:[%s7175_s21 + $0x40] sm:$0xff]  }
 0x8f4   : > { %v5200_v13 = vsel %vm832_vm2, %v5183_v19, 0.0  ;;  %v5218_v54 = vmul.f32 %v5183_v19, %v8876_v22  ;;  %v8886_v57 = vadd.f32 %v8803_v56, %v5164_v17  ;;  %v6985_v19 = vld [vmem:[%s9015_s8] ss:$0 sm:$0xff] }
 0x8f5   : > { %v5201_v6 = vadd.f32 %v5200_v13, %v5199_v55  ;;  %v8939_v55 = vld [vmem:[%s9020_s13] ss:$0 sm:$0xff] }
 0x8f6   : > { %v5235_v27 = vsel %vm832_vm2, %v5218_v54, 0.0  ;;  %v5184_v53 = vmul.f32 %v8886_v57, %v7306_v8 }
 0x8f7   : > { %v5236_v28 = vadd.f32 %v5235_v27, %v5234_v59 }
 0x8f8   : > { %v5202_v48 = vsel %vm832_vm2, %v5184_v53, 0.0  ;;  %v5219_v45 = vmul.f32 %v5184_v53, %v8886_v57 }
 0x8f9   : > { %v5203_v9 = vadd.f32 %v5202_v48, %v5201_v6 }
 0x8fa   : > { %v5237_v14 = vsel %vm832_vm2, %v5219_v45, 0.0 }
 0x8fb   : > { %v5204_v5 = vrot.slane %v5203_v9, 4  ;;  %v5238_v56 = vadd.f32 %v5237_v14, %v5236_v28 }
 0x8fd   : > { %v5205_v3 = vadd.f32 %v5204_v5, %v5203_v9  ;;  %v5239_v7 = vrot.slane %v5238_v56, 4 }
 0x8ff   : > { %v5206_v2 = vrot.slane %v5205_v3, 2  ;;  %v5240_v50 = vadd.f32 %v5239_v7, %v5238_v56 }
 0x901   : > { %v5207_v62 = vadd.f32 %v5206_v2, %v5205_v3  ;;  %v5241_v37 = vrot.slane %v5240_v50, 2 }
 0x903   : > { %v5208_v36 = vrot.slane %v5207_v62, 1  ;;  %v5242_v8 = vadd.f32 %v5241_v37, %v5240_v50 }
 0x905   : > { %v5243_v18 = vrot.slane %v5242_v8, 1  ;;  %v5209_v43 = vadd.f32 %v5208_v36, %v5207_v62 }
 0x907   : > { %v5244_v21 = vadd.f32 %v5243_v18, %v5242_v8 }
 0x909   : > { %v5245_v34 = vsel %vm9105_vm14, %v5209_v43, %v5244_v21 }
 0x90a   : > { %6778 = vmatmul.mubr.msk.f32.vlgmr.msra.gmra.mxu1 %vm832_vm2, %v5245_v34 }
 0x90b   : > { %6781 = vmatpush3.msra.mxu1 %v6984_v1  ;;  %6782 = vmatprep.mubr.msk.f32.mxu1 %vm6997_vm1, %v9057_v32 }
 0x90c   : > { %6785 = vmatprep.subr.bf16.mxu1 %v9057_v32 }
 0x9ca   : > { %v5315_v58 = vpop.f32.mrf.mxu1 }
 0x9cb   : > { %v5319_v24 = vmul.f32 0.00390625, %v5315_v58 }
 0x9cc   : > { %v6779_v31 = vpop.f32.mrf.mxu1 }
 0x9cd   : > { %v5320_v4 = vmul.f32 %v5319_v24, %v5319_v24 }
 0x9cf   : > { %v5322_v42 = vrot.slane %v5320_v4, 7 }
 0x9d1   : > { %v5324_v61 = vsub.f32 %v5319_v24, %v5322_v42 }
 0x9d3   : > { %v5325_v40 = vmax.f32 %v5324_v61, 0.0 }
 0x9d5   : > { %v5326_v35 = vadd.f32 1e-05, %v5325_v40 }
 0x9d7   : > { %6969 = vrsqrt.f32 %v5326_v35 }
 0x9e4   : > { %v6970_v38 = vpop.eup %6969 }
 0x9e5   : > { %v5328_v46 = vsel %vm9106_vm15, %v5319_v24, %v6970_v38 }
 0x9e6   : > { %6783 = vmatmul.mubr.msk.f32.vlgmr.msra.gmra.mxu1 %vm9107_vm10, %v5328_v46 }
 0x9e7   : > { %6786 = vmatpush3.bf16.msra.mxu1 %v6957_v63  ;;  %6787 = vmatprep.mubr.msk.bf16.mxu1 %vm6997_vm1, %v9057_v32 }
 0x9ea   : > { %6788 = vmatmul.mubr.msk.bf16.vlgmr.msra.gmra.mxu1 %vm9108_vm0, %v6958_v23 }
 0x9eb   : > { %6791 = vmatprep.mubr.msk.bf16.mxu1 %vm6997_vm1, %v9057_v32 }
 0x9f2   : > { %6792 = vmatmul.mubr.msk.bf16.gmra.mxu1 %vm9109_vm6, %v6959_v0 }
 0x9f3   : > { %6795 = vmatprep.mubr.msk.bf16.mxu1 %vm6997_vm1, %v9057_v32 }
 0x9fa   : > { %6796 = vmatmul.mubr.msk.bf16.gmra.mxu1 %vm9110_vm9, %v6960_v39 }
 0x9fb   : > { %6799 = vmatprep.mubr.msk.bf16.mxu1 %vm6997_vm1, %v9057_v32 }
 0xa02   : > { %6800 = vmatmul.mubr.msk.bf16.gmra.mxu1 %vm9111_vm11, %v6961_v15 }
 0xa03   : > { %6803 = vmatprep.mubr.msk.bf16.mxu1 %vm6997_vm1, %v9057_v32  ;;  %v6986_v32 = vld [vmem:[%s9016_s9] sm:$0x1] }
 0xa0a   : > { %6804 = vmatmul.mubr.msk.bf16.gmra.mxu1 %vm9112_vm5, %v6962_v30 }
 0xaa6   : > { %v5398_v25 = vpop.f32.mrf.mxu1 }
 0xaa7   : > { %v5402_v17 = vmul.f32 %v6985_v19, %v5398_v25 }
 0xaa8   : > { %v6784_v44 = vpop.f32.mrf.mxu1 }
 0xaa9   : > { %v5404_v49 = vrot.slane %v5402_v17, 1  ;;  %v8931_v13 = vrot.slane %v5402_v17, %v7366_v20 }
 0xaaa   : > { %v5538_v60 = vpop.f32.mrf.mxu1 }
 0xaab   : > { %v5406_v12 = vmul.f32 %v5404_v49, %v5398_v25  ;;  %v5412_v59 = vmul.f32 %v8931_v13, %v8810_v29  ;;  %v5413_v20 = vmul.f32 %v8931_v13, %v8806_v52  ;;  %v5539_v45 = vadd.f32 %v8939_v55, %v5538_v60 }
 0xaac   : > { %v6789_v54 = vpop.f32.mrf.mxu1  ;;  %v5414_v14 = vmul.f32 %v8931_v13, %v8813_v51  ;;  %v5415_v7 = vmul.f32 %v8931_v13, %v8819_v47  ;;  %v5416_v34 = vmul.f32 %v8931_v13, %v8824_v41  ;;  %v5417_v35 = vmul.f32 %v8931_v13, %v8833_v33 }
 0xaad   : > { %v5407_v11 = vsub.f32 %v6986_v32, %v5406_v12  ;;  %v5418_v15 = vmul.f32 %v8931_v13, %v8849_v10  ;;  %v5419_v60 = vmul.f32 %v8931_v13, %v8864_v16 }
 0xaae   : > { %v5541_v27 = vpop.f32.mrf.mxu1 }
 0xaaf   : > { %v8942_v53 = vrot.slane %v5407_v11, %v7372_v26  ;;  %v5542_v9 = vadd.f32 %v8939_v55, %v5541_v27 }
 0xab0   : > { %v6790_v6 = vpop.f32.mrf.mxu1 }
 0xab1   : > { %v5428_v48 = vadd.f32 %v8942_v53, %v5412_v59  ;;  %v5429_v28 = vadd.f32 %v8942_v53, %v5413_v20  ;;  %v5430_v52 = vadd.f32 %v8942_v53, %v5414_v14  ;;  %v5431_v8 = vadd.f32 %v8942_v53, %v5415_v7 }
 0xab2   : > { %v5546_v26 = vpop.f32.mrf.mxu1  ;;  %v5432_v31 = vadd.f32 %v8942_v53, %v5416_v34  ;;  %v5433_v38 = vadd.f32 %v8942_v53, %v5417_v35  ;;  %v5434_v25 = vadd.f32 %v8942_v53, %v5418_v15  ;;  %v5435_v54 = vadd.f32 %v8942_v53, %v5419_v60 }
 0xab3   : > { %v5577_v5 = vadd.f32 %v5539_v45, %v5428_v48  ;;  %v5578_v56 = vadd.f32 %v5542_v9, %v5429_v28  ;;  %v5547_v29 = vadd.f32 %v8939_v55, %v5546_v26  ;;  %v5420_v20 = vmul.f32 %v8931_v13, %v8876_v22 }
 0xab4   : > { %v6793_v3 = vpop.f32.mrf.mxu1  ;;  %v5421_v26 = vmul.f32 %v8931_v13, %v8886_v57 }
 0xab5   : > { %vm5587_vm1 = vcmp.gt.f32.partialorder %v5577_v5, 0.0  ;;  %v5597_v2 = vmul.f32 0.2, %v5577_v5  ;;  %vm5588_vm8 = vcmp.gt.f32.partialorder %v5578_v56, 0.0  ;;  %v5598_v50 = vmul.f32 0.2, %v5578_v56 }
 0xab6   : > { %v5579_v62 = vadd.f32 %v5547_v29, %v5430_v52  ;;  %v5549_v51 = vpop.f32.mrf.mxu1  ;;  %v5436_v48 = vadd.f32 %v8942_v53, %v5420_v20 }
 0xab7   : > { %v5607_v37 = vsel %vm5587_vm1, %v5577_v5, %v5597_v2  ;;  %v5608_v36 = vsel %vm5588_vm8, %v5578_v56, %v5598_v50  ;;  %v5550_v18 = vadd.f32 %v8939_v55, %v5549_v51  ;;  %v5437_v56 = vadd.f32 %v8942_v53, %v5421_v26 }
 0xab8   : > { %6069 = vst.msk [vmem:[%s8285_s24 + $0x50] sm:$0xff] %vm832_vm2, %v5607_v37  ;;  %6070 = vst.msk [vmem:[%s8285_s24 + $0x58] sm:$0xff] %vm832_vm2, %v5608_v36  ;;  %vm5589_vm3 = vcmp.gt.f32.partialorder %v5579_v62, 0.0  ;;  %v5599_v47 = vmul.f32 0.2, %v5579_v62  ;;  %v6794_v43 = vpop.f32.mrf.mxu1 }
 0xab9   : > { %v5580_v21 = vadd.f32 %v5550_v18, %v5431_v8 }
 0xaba   : > { %v5609_v1 = vsel %vm5589_vm3, %v5579_v62, %v5599_v47  ;;  %v5554_v58 = vpop.f32.mrf.mxu1 }
 0xabb   : > { %6071 = vst.msk [vmem:[%s8285_s24 + $0x60] sm:$0xff] %vm832_vm2, %v5609_v1  ;;  %vm5590_vm4 = vcmp.gt.f32.partialorder %v5580_v21, 0.0  ;;  %v5600_v24 = vmul.f32 0.2, %v5580_v21  ;;  %v5555_v4 = vadd.f32 %v8939_v55, %v5554_v58 }
 0xabc   : > { %v6797_v42 = vpop.f32.mrf.mxu1 }
 0xabd   : > { %v5610_v61 = vsel %vm5590_vm4, %v5580_v21, %v5600_v24  ;;  %v5581_v40 = vadd.f32 %v5555_v4, %v5432_v31 }
 0xabe   : > { %6072 = vst.msk [vmem:[%s8285_s24 + $0x68] sm:$0xff] %vm832_vm2, %v5610_v61  ;;  %v5557_v41 = vpop.f32.mrf.mxu1 }
 0xabf   : > { %vm5591_vm7 = vcmp.gt.f32.partialorder %v5581_v40, 0.0  ;;  %v5601_v63 = vmul.f32 0.2, %v5581_v40  ;;  %v5558_v46 = vadd.f32 %v8939_v55, %v5557_v41 }
 0xac0   : > { %v6798_v23 = vpop.f32.mrf.mxu1 }
 0xac1   : > { %v5611_v0 = vsel %vm5591_vm7, %v5581_v40, %v5601_v63  ;;  %v5582_v39 = vadd.f32 %v5558_v46, %v5433_v38 }
 0xac2   : > { %6073 = vst.msk [vmem:[%s8285_s24 + $0x70] sm:$0xff] %vm832_vm2, %v5611_v0  ;;  %v5562_v30 = vpop.f32.mrf.mxu1 }
 0xac3   : > { %vm5592_vm12 = vcmp.gt.f32.partialorder %v5582_v39, 0.0  ;;  %v5602_v33 = vmul.f32 0.2, %v5582_v39  ;;  %v5563_v19 = vadd.f32 %v8939_v55, %v5562_v30 }
 0xac4   : > { %v6801_v17 = vpop.f32.mrf.mxu1 }
 0xac5   : > { %v5612_v44 = vsel %vm5592_vm12, %v5582_v39, %v5602_v33  ;;  %v5583_v49 = vadd.f32 %v5563_v19, %v5434_v25 }
 0xac6   : > { %6074 = vst.msk [vmem:[%s8285_s24 + $0x78] sm:$0xff] %vm832_vm2, %v5612_v44  ;;  %v5565_v12 = vpop.f32.mrf.mxu1 }
 0xac7   : > { %vm5593_vm13 = vcmp.gt.f32.partialorder %v5583_v49, 0.0  ;;  %v5603_v10 = vmul.f32 0.2, %v5583_v49  ;;  %v5566_v32 = vadd.f32 %v8939_v55, %v5565_v12 }
 0xac8   : > { %v6802_v11 = vpop.f32.mrf.mxu1 }
 0xac9   : > { %v5613_v27 = vsel %vm5593_vm13, %v5583_v49, %v5603_v10  ;;  %v5584_v59 = vadd.f32 %v5566_v32, %v5435_v54 }
 0xaca   : > { %6075 = vst.msk [vmem:[%s8285_s24 + $0x80] sm:$0xff] %vm832_vm2, %v5613_v27  ;;  %v5570_v6 = vpop.f32.mrf.mxu1 }
 0xacb   : > { %vm5594_vm14 = vcmp.gt.f32.partialorder %v5584_v59, 0.0  ;;  %v5604_v16 = vmul.f32 0.2, %v5584_v59  ;;  %v5571_v45 = vadd.f32 %v8939_v55, %v5570_v6 }
 0xacc   : > { %v6805_v28 = vpop.f32.mrf.mxu1 }
 0xacd   : > { %v5614_v9 = vsel %vm5594_vm14, %v5584_v59, %v5604_v16  ;;  %v5585_v14 = vadd.f32 %v5571_v45, %v5436_v48 }
 0xace   : > { %6076 = vst.msk [vmem:[%s8285_s24 + $0x88] sm:$0xff] %vm832_vm2, %v5614_v9  ;;  %v5573_v22 = vpop.f32.mrf.mxu1 }
 0xacf   : > { %vm5595_vm15 = vcmp.gt.f32.partialorder %v5585_v14, 0.0  ;;  %v5605_v5 = vmul.f32 0.2, %v5585_v14  ;;  %v5574_v29 = vadd.f32 %v8939_v55, %v5573_v22 }
 0xad0   : > { %v6806_v52 = vpop.f32.mrf.mxu1 }
 0xad1   : > { %v5615_v3 = vsel %vm5595_vm15, %v5585_v14, %v5605_v5  ;;  %v5586_v7 = vadd.f32 %v5574_v29, %v5437_v56 }
 0xad2   : > { %6077 = vst.msk [vmem:[%s8285_s24 + $0x90] sm:$0xff] %vm832_vm2, %v5615_v3 }
 0xad3   : > { %vm5596_vm10 = vcmp.gt.f32.partialorder %v5586_v7, 0.0  ;;  %v5606_v2 = vmul.f32 0.2, %v5586_v7 }
 0xad5   : > { %v5616_v50 = vsel %vm5596_vm10, %v5586_v7, %v5606_v2 }
 0xad6   : > { %6078 = vst.msk [vmem:[%s8285_s24 + $0x98] sm:$0xff] %vm832_vm2, %v5616_v50 }
 0xad7 PF: > { %s25_s18 = sadd.s32 1, %s6993_s18  }
 0xad8   : > { %p22_p4 = scmp.ge.s32.totalorder %s25_s18, 4  }
 0xada   :  { %24 = sbr.rel (!%p22_p4) target bundleno = 1 (0x1), region = 125 }

</bundles_post_ra>
